<compile_context>
chip_gen: v7x
topology: tpu7x:2x2x1
jax: 0.10.0
libtpu: 0.0.40
codegen_flags: <defaults>
</compile_context>

<pallas_src>
import functools

import jax
import jax.numpy as jnp
from jax import lax
from jax.experimental import pallas as pl
from jax.experimental.pallas import tpu as pltpu  # noqa: F401  (TPU backend)

D_MODEL = 32
HEADS = 4
D_K = D_MODEL // HEADS
D_FF = 4 * D_MODEL
EPS = 1e-6
NEG_INF = -1e9
BIAS_PAD = 128  # lane width used for the packed bias block


# ---------------------------------------------------------------------------
# in-kernel helpers (use pl.reciprocal -> kernel only)
# ---------------------------------------------------------------------------
def _norm_rows(x, alpha, bias):
    # PyTorch NormLayer: alpha*(x-mean)/(std+eps)+bias ; torch.std is unbiased
    # (divides by N-1) and eps is added to the std (not the variance).
    d = x.shape[-1]
    mean = jnp.mean(x, axis=-1, keepdims=True)
    var = jnp.sum((x - mean) ** 2, axis=-1, keepdims=True) * (1.0 / (d - 1))
    std = jnp.sqrt(var)
    inv = pl.reciprocal(std + EPS, approx=True)
    return alpha[None, :] * (x - mean) * inv + bias[None, :]


def _mha_core(q, k, v, mask_for_batch, B, Sq, Sk, wo_bf16, bo):
    """q: (B*Sq, D) f32, k/v: (B*Sk, D) f32, wo_bf16: (D, D) bf16, bo: (D,) f32."""
    scale = 1.0 / (float(D_K) ** 0.5)
    outs = []
    for b in range(B):                                # static batch loop
        qb = q[b * Sq:(b + 1) * Sq, :]
        kb = k[b * Sk:(b + 1) * Sk, :]
        vb = v[b * Sk:(b + 1) * Sk, :]
        masked = (mask_for_batch(b) == 0.0)           # (Sq,Sk) or (1,Sk) bool
        acc = jnp.zeros((Sq, D_MODEL), jnp.float32)
        for h in range(HEADS):                        # static head loop
            sl = slice(h * D_K, (h + 1) * D_K)
            qh = qb[:, sl].astype(jnp.bfloat16)
            kh = kb[:, sl].astype(jnp.bfloat16)
            vh = vb[:, sl].astype(jnp.bfloat16)
            s = lax.dot_general(qh, kh, (((1,), (1,)), ((), ())),
                                preferred_element_type=jnp.float32) * scale
            s = jnp.where(masked, NEG_INF, s)
            s = s - jnp.max(s, axis=-1, keepdims=True)
            p = jnp.exp(s)
            p = p * pl.reciprocal(jnp.sum(p, axis=-1, keepdims=True), approx=True)
            pv = jnp.dot(p.astype(jnp.bfloat16), vh,
                         preferred_element_type=jnp.float32)
            # accumulate into the output projection (no lane concat of heads)
            acc = acc + jnp.dot(pv.astype(jnp.bfloat16), wo_bf16[sl, :],
                                preferred_element_type=jnp.float32)
        outs.append(acc)
    out = outs[0] if B == 1 else jnp.concatenate(outs, axis=0)
    return out + bo[None, :]


# ---------------------------------------------------------------------------
# Pallas kernel: the whole decoder layer in one invocation (no grid)
# ---------------------------------------------------------------------------
def decoder_layer_kernel(B, S, Se,
                         x_ref, e_ref, trgm_ref, srcm_ref,
                         norm_ref, bias_ref,
                         wqkv1_ref, wo1_ref,
                         wq2_ref, wkv2_ref, wo2_ref,
                         w1_ref, w2_ref,
                         o_ref):
    D = D_MODEL
    x = x_ref[...]            # (B*S, D)  f32
    e = e_ref[...]            # (B*Se, D) f32
    norms = norm_ref[...]     # (6, D)    f32
    biases = bias_ref[...]    # (7, 128)  f32

    # --- sublayer 1: masked self-attention --------------------------------
    x2 = _norm_rows(x, norms[0], norms[1])
    qkv = jnp.dot(x2.astype(jnp.bfloat16), wqkv1_ref[...],
                  preferred_element_type=jnp.float32) + biases[0, :3 * D][None, :]
    attn1 = _mha_core(qkv[:, :D], qkv[:, D:2 * D], qkv[:, 2 * D:3 * D],
                      lambda b: trgm_ref[b], B, S, S,
                      wo1_ref[...], biases[1, :D])
    x = x + attn1

    # --- sublayer 2: cross-attention over encoder outputs -----------------
    x2 = _norm_rows(x, norms[2], norms[3])
    q2 = jnp.dot(x2.astype(jnp.bfloat16), wq2_ref[...],
                 preferred_element_type=jnp.float32) + biases[2, :D][None, :]
    kv = jnp.dot(e.astype(jnp.bfloat16), wkv2_ref[...],
                 preferred_element_type=jnp.float32) + biases[3, :2 * D][None, :]
    attn2 = _mha_core(q2, kv[:, :D], kv[:, D:2 * D],
                      lambda b: srcm_ref[b], B, S, Se,
                      wo2_ref[...], biases[4, :D])
    x = x + attn2

    # --- sublayer 3: feed-forward ------------------------------------------
    x2 = _norm_rows(x, norms[4], norms[5])
    h = jnp.dot(x2.astype(jnp.bfloat16), w1_ref[...],
                preferred_element_type=jnp.float32) + biases[5, :D_FF][None, :]
    h = jnp.maximum(h, 0.0)
    ff = jnp.dot(h.astype(jnp.bfloat16), w2_ref[...],
                 preferred_element_type=jnp.float32) + biases[6, :D][None, :]
    x = x + ff

    o_ref[...] = x


# ---------------------------------------------------------------------------
# wrapper: packs / fuses / casts the PyTorch-layout params, calls pallas_call
# ---------------------------------------------------------------------------
def decoder_layer(x, e_outputs, src_mask, trg_mask, params):
    B, S, D = x.shape
    _, Se, _ = e_outputs.shape

    (a1, n1b, a2, n2b, a3, n3b,
     wq1, bq1, wk1, bk1, wv1, bv1, wo1, bo1,
     wq2, bq2, wk2, bk2, wv2, bv2, wo2, bo2,
     w1, fb1, w2, fb2) = params

    # pack the small 1-D params
    norm_pack = jnp.stack([a1, n1b, a2, n2b, a3, n3b])                 # (6, D)

    bqkv1 = jnp.concatenate([bq1, bk1, bv1])                           # (3D,)
    bkv2 = jnp.concatenate([bk2, bv2])                                 # (2D,)

    def pad128(v):
        return jnp.pad(v, (0, BIAS_PAD - v.shape[0]))

    bias_pack = jnp.stack([pad128(bqkv1), pad128(bo1), pad128(bq2),
                           pad128(bkv2), pad128(bo2),
                           pad128(fb1), pad128(fb2)])                  # (7, 128)

    # fuse QKV / KV projections and cast all matmul weights to bf16
    bf = jnp.bfloat16
    wqkv1 = jnp.concatenate([wq1, wk1, wv1], axis=1).astype(bf)        # (D, 3D)
    wkv2 = jnp.concatenate([wk2, wv2], axis=1).astype(bf)              # (D, 2D)

    out = pl.pallas_call(
        functools.partial(decoder_layer_kernel, B, S, Se),
        out_shape=jax.ShapeDtypeStruct((B * S, D), jnp.float32),
    )(x.reshape(B * S, D), e_outputs.reshape(B * Se, D),
      trg_mask, src_mask,
      norm_pack, bias_pack,
      wqkv1, wo1.astype(bf),
      wq2.astype(bf), wkv2, wo2.astype(bf),
      w1.astype(bf), w2.astype(bf))

    return out.reshape(B, S, D)


# ---------------------------------------------------------------------------
# pure-JAX f32 reference (same math as the PyTorch module) for a sanity check
# ---------------------------------------------------------------------------
def _norm_ref(x, alpha, bias):
    d = x.shape[-1]
    mean = jnp.mean(x, axis=-1, keepdims=True)
    var = jnp.sum((x - mean) ** 2, axis=-1, keepdims=True) / (d - 1)
    std = jnp.sqrt(var)
    return alpha[None, :] * (x - mean) / (std + EPS) + bias[None, :]


def _mha_ref(q_in, k_in, v_in, mask, wq, bq, wk, bk, wv, bv, wo, bo):
    q = jnp.dot(q_in, wq) + bq[None, :]
    k = jnp.dot(k_in, wk) + bk[None, :]
    v = jnp.dot(v_in, wv) + bv[None, :]
    scale = 1.0 / jnp.sqrt(jnp.float32(D_K))
    head_outs = []
    for h in range(HEADS):
        sl = slice(h * D_K, (h + 1) * D_K)
        qh, kh, vh = q[:, sl], k[:, sl], v[:, sl]
        scores = jnp.dot(qh, kh.T) * scale
        scores = jnp.where(mask == 0.0, NEG_INF, scores)
        scores = jax.nn.softmax(scores, axis=-1)
        head_outs.append(jnp.dot(scores, vh))
    concat = jnp.concatenate(head_outs, axis=-1)
    return jnp.dot(concat, wo) + bo[None, :]


def ref_forward(x, e_outputs, src_mask, trg_mask, params):
    (a1, n1b, a2, n2b, a3, n3b,
     wq1, bq1, wk1, bk1, wv1, bv1, wo1, bo1,
     wq2, bq2, wk2, bk2, wv2, bv2, wo2, bo2,
     w1, fb1, w2, fb2) = params

    def one(xb, eb, smb, tmb):
        x2 = _norm_ref(xb, a1, n1b)
        xb = xb + _mha_ref(x2, x2, x2, tmb, wq1, bq1, wk1, bk1, wv1, bv1, wo1, bo1)
        x2 = _norm_ref(xb, a2, n2b)
        xb = xb + _mha_ref(x2, eb, eb, smb, wq2, bq2, wk2, bk2, wv2, bv2, wo2, bo2)
        x2 = _norm_ref(xb, a3, n3b)
        h = jnp.maximum(jnp.dot(x2, w1) + fb1[None, :], 0.0)
        return xb + jnp.dot(h, w2) + fb2[None, :]

    return jax.vmap(one)(x, e_outputs, src_mask, trg_mask)


# ---------------------------------------------------------------------------
# deterministic parameter init (matches the shapes implied by __init__)
# ---------------------------------------------------------------------------
def init_params(key):
    keys = iter(jax.random.split(key, 32))
    w = lambda shp: (0.05 * jax.random.normal(next(keys), shp)).astype(jnp.float32)
    zeros = lambda shp: jnp.zeros(shp, jnp.float32)
    ones = lambda shp: jnp.ones(shp, jnp.float32)

    params = []
    # norm_1 / norm_2 / norm_3 : alpha, bias
    for _ in range(3):
        params += [ones((D_MODEL,)), zeros((D_MODEL,))]
    # attn_1 / attn_2 : q, k, v, out linears (stored as [in, out])
    for _ in range(2):
        for _ in range(4):
            params += [w((D_MODEL, D_MODEL)), w((D_MODEL,))]
    # feed-forward: linear1 (D -> 4D), linear2 (4D -> D)
    params += [w((D_MODEL, D_FF)), w((D_FF,)),
               w((D_FF, D_MODEL)), w((D_MODEL,))]
    return params


if __name__ == "__main__":
    key = jax.random.PRNGKey(0)
    k_x, k_e, k_p = jax.random.split(key, 3)

    B, S, Se = 2, 8, 8
    x = jax.random.normal(k_x, (B, S, D_MODEL), jnp.float32)
    e_outputs = jax.random.normal(k_e, (B, Se, D_MODEL), jnp.float32)

    # causal target mask (B, S, S); src mask (B, 1, Se) with last position masked
    trg_mask = jnp.broadcast_to(jnp.tril(jnp.ones((S, S), jnp.float32)), (B, S, S))
    src_mask = jnp.ones((B, 1, Se), jnp.float32).at[:, :, -1].set(0.0)

    params = init_params(k_p)

    out = decoder_layer(x, e_outputs, src_mask, trg_mask, params)
    out = jax.block_until_ready(out)

    ref = jax.block_until_ready(ref_forward(x, e_outputs, src_mask, trg_mask, params))
    assert out.shape == (B, S, D_MODEL)
    assert jnp.allclose(out, ref, atol=2e-2, rtol=2e-2), "mismatch vs reference"

    print("KERNEL_OK")
</pallas_src>

<mosaic_0001>
module attributes {stable_mosaic.version = 11 : i64} {
  func.func @decoder_layer_kernel(%arg0: memref<16x32xf32, #tpu.memory_space<vmem>>, %arg1: memref<16x32xf32, #tpu.memory_space<vmem>>, %arg2: memref<2x8x8xf32, #tpu.memory_space<vmem>>, %arg3: memref<2x1x8xf32, #tpu.memory_space<vmem>>, %arg4: memref<6x32xf32, #tpu.memory_space<vmem>>, %arg5: memref<7x128xf32, #tpu.memory_space<vmem>>, %arg6: memref<32x96xbf16, #tpu.memory_space<vmem>>, %arg7: memref<32x32xbf16, #tpu.memory_space<vmem>>, %arg8: memref<32x32xbf16, #tpu.memory_space<vmem>>, %arg9: memref<32x64xbf16, #tpu.memory_space<vmem>>, %arg10: memref<32x32xbf16, #tpu.memory_space<vmem>>, %arg11: memref<32x128xbf16, #tpu.memory_space<vmem>>, %arg12: memref<128x32xbf16, #tpu.memory_space<vmem>>, %arg13: memref<16x32xf32, #tpu.memory_space<vmem>>) attributes {dimension_semantics = [], scalar_prefetch = 0 : i64, scratch_operands = 0 : i64, tpu.core_type = #tpu.core_type<tc>} {
    %c0 = arith.constant 0 : index
    %c0_0 = arith.constant 0 : index
    %0 = vector.load %arg0[%c0, %c0_0] : memref<16x32xf32, #tpu.memory_space<vmem>>, vector<16x32xf32>
    %c0_1 = arith.constant 0 : index
    %c0_2 = arith.constant 0 : index
    %1 = vector.load %arg1[%c0_1, %c0_2] : memref<16x32xf32, #tpu.memory_space<vmem>>, vector<16x32xf32>
    %c0_3 = arith.constant 0 : index
    %c0_4 = arith.constant 0 : index
    %2 = vector.load %arg4[%c0_3, %c0_4] : memref<6x32xf32, #tpu.memory_space<vmem>>, vector<6x32xf32>
    %c0_5 = arith.constant 0 : index
    %c0_6 = arith.constant 0 : index
    %3 = vector.load %arg5[%c0_5, %c0_6] : memref<7x128xf32, #tpu.memory_space<vmem>>, vector<7x128xf32>
    %4 = vector.extract_strided_slice %2 {offsets = [0, 0], sizes = [1, 32], strides = [1, 1]} : vector<6x32xf32> to vector<1x32xf32>
    %5 = vector.shape_cast %4 : vector<1x32xf32> to vector<32xf32>
    %6 = vector.extract_strided_slice %2 {offsets = [1, 0], sizes = [1, 32], strides = [1, 1]} : vector<6x32xf32> to vector<1x32xf32>
    %7 = vector.shape_cast %6 : vector<1x32xf32> to vector<32xf32>
    %cst = arith.constant dense<0.000000e+00> : vector<16xf32>
    %8 = vector.multi_reduction <add>, %0, %cst [1] : vector<16x32xf32> to vector<16xf32>
    %9 = vector.shape_cast %8 : vector<16xf32> to vector<16x1xf32>
    %cst_7 = arith.constant 3.200000e+01 : f32
    %10 = vector.broadcast %cst_7 : f32 to vector<16x1xf32>
    %11 = arith.divf %9, %10 : vector<16x1xf32>
    %12 = vector.broadcast %11 : vector<16x1xf32> to vector<16x32xf32>
    %13 = arith.subf %0, %12 : vector<16x32xf32>
    %14 = arith.mulf %13, %13 : vector<16x32xf32>
    %cst_8 = arith.constant dense<0.000000e+00> : vector<16xf32>
    %15 = vector.multi_reduction <add>, %14, %cst_8 [1] : vector<16x32xf32> to vector<16xf32>
    %16 = vector.shape_cast %15 : vector<16xf32> to vector<16x1xf32>
    %cst_9 = arith.constant 0.0322580636 : f32
    %17 = vector.broadcast %cst_9 : f32 to vector<16x1xf32>
    %18 = arith.mulf %16, %17 : vector<16x1xf32>
    %19 = math.sqrt %18 : vector<16x1xf32>
    %cst_10 = arith.constant 9.99999997E-7 : f32
    %20 = vector.broadcast %cst_10 : f32 to vector<16x1xf32>
    %21 = arith.addf %19, %20 : vector<16x1xf32>
    %22 = tpu.reciprocal %21 {approx = true} : vector<16x1xf32> -> vector<16x1xf32>
    %23 = vector.shape_cast %5 : vector<32xf32> to vector<1x32xf32>
    %24 = vector.broadcast %11 : vector<16x1xf32> to vector<16x32xf32>
    %25 = arith.subf %0, %24 : vector<16x32xf32>
    %26 = vector.broadcast %23 : vector<1x32xf32> to vector<16x32xf32>
    %27 = arith.mulf %26, %25 : vector<16x32xf32>
    %28 = vector.broadcast %22 : vector<16x1xf32> to vector<16x32xf32>
    %29 = arith.mulf %27, %28 : vector<16x32xf32>
    %30 = vector.shape_cast %7 : vector<32xf32> to vector<1x32xf32>
    %31 = vector.broadcast %30 : vector<1x32xf32> to vector<16x32xf32>
    %32 = arith.addf %29, %31 : vector<16x32xf32>
    %33 = arith.truncf %32 : vector<16x32xf32> to vector<16x32xbf16>
    %c0_11 = arith.constant 0 : index
    %c0_12 = arith.constant 0 : index
    %34 = vector.load %arg6[%c0_11, %c0_12] : memref<32x96xbf16, #tpu.memory_space<vmem>>, vector<32x96xbf16>
    %cst_13 = arith.constant dense<0.000000e+00> : vector<16x96xf32>
    %35 = tpu.matmul %33, %34, %cst_13 {dimension_numbers = #tpu.dot_dimension_numbers<[1], [0], [0], [1], [0, 0, 1, 1], [], []>} : vector<16x32xbf16>, vector<32x96xbf16>, vector<16x96xf32> -> vector<16x96xf32>
    %36 = vector.extract_strided_slice %3 {offsets = [0, 0], sizes = [1, 96], strides = [1, 1]} : vector<7x128xf32> to vector<1x96xf32>
    %37 = vector.shape_cast %36 : vector<1x96xf32> to vector<96xf32>
    %38 = vector.shape_cast %37 : vector<96xf32> to vector<1x96xf32>
    %39 = vector.broadcast %38 : vector<1x96xf32> to vector<16x96xf32>
    %40 = arith.addf %35, %39 : vector<16x96xf32>
    %41 = vector.extract_strided_slice %40 {offsets = [0, 0], sizes = [16, 32], strides = [1, 1]} : vector<16x96xf32> to vector<16x32xf32>
    %42 = vector.extract_strided_slice %40 {offsets = [0, 32], sizes = [16, 32], strides = [1, 1]} : vector<16x96xf32> to vector<16x32xf32>
    %43 = vector.extract_strided_slice %40 {offsets = [0, 64], sizes = [16, 32], strides = [1, 1]} : vector<16x96xf32> to vector<16x32xf32>
    %c0_14 = arith.constant 0 : index
    %c0_15 = arith.constant 0 : index
    %44 = vector.load %arg7[%c0_14, %c0_15] : memref<32x32xbf16, #tpu.memory_space<vmem>>, vector<32x32xbf16>
    %45 = vector.extract_strided_slice %3 {offsets = [1, 0], sizes = [1, 32], strides = [1, 1]} : vector<7x128xf32> to vector<1x32xf32>
    %46 = vector.shape_cast %45 : vector<1x32xf32> to vector<32xf32>
    %47 = vector.extract_strided_slice %41 {offsets = [0, 0], sizes = [8, 32], strides = [1, 1]} : vector<16x32xf32> to vector<8x32xf32>
    %48 = vector.extract_strided_slice %42 {offsets = [0, 0], sizes = [8, 32], strides = [1, 1]} : vector<16x32xf32> to vector<8x32xf32>
    %49 = vector.extract_strided_slice %43 {offsets = [0, 0], sizes = [8, 32], strides = [1, 1]} : vector<16x32xf32> to vector<8x32xf32>
    %c0_16 = arith.constant 0 : index
    %c0_17 = arith.constant 0 : index
    %c0_18 = arith.constant 0 : index
    %50 = vector.load %arg2[%c0_16, %c0_17, %c0_18] : memref<2x8x8xf32, #tpu.memory_space<vmem>>, vector<1x8x8xf32>
    %51 = vector.shape_cast %50 : vector<1x8x8xf32> to vector<8x8xf32>
    %cst_19 = arith.constant 0.000000e+00 : f32
    %52 = vector.broadcast %cst_19 : f32 to vector<8x8xf32>
    %53 = arith.cmpf oeq, %51, %52 : vector<8x8xf32>
    %cst_20 = arith.constant 0.000000e+00 : f32
    %54 = vector.broadcast %cst_20 : f32 to vector<8x32xf32>
    %55 = vector.extract_strided_slice %47 {offsets = [0, 0], sizes = [8, 8], strides = [1, 1]} : vector<8x32xf32> to vector<8x8xf32>
    %56 = arith.truncf %55 : vector<8x8xf32> to vector<8x8xbf16>
    %57 = vector.extract_strided_slice %48 {offsets = [0, 0], sizes = [8, 8], strides = [1, 1]} : vector<8x32xf32> to vector<8x8xf32>
    %58 = arith.truncf %57 : vector<8x8xf32> to vector<8x8xbf16>
    %59 = vector.extract_strided_slice %49 {offsets = [0, 0], sizes = [8, 8], strides = [1, 1]} : vector<8x32xf32> to vector<8x8xf32>
    %60 = arith.truncf %59 : vector<8x8xf32> to vector<8x8xbf16>
    %cst_21 = arith.constant dense<0.000000e+00> : vector<8x8xf32>
    %61 = tpu.matmul %56, %58, %cst_21 {dimension_numbers = #tpu.dot_dimension_numbers<[1], [1], [0], [0], [0, 0, 1, 0], [], []>} : vector<8x8xbf16>, vector<8x8xbf16>, vector<8x8xf32> -> vector<8x8xf32>
    %cst_22 = arith.constant 0.353553385 : f32
    %62 = vector.broadcast %cst_22 : f32 to vector<8x8xf32>
    %63 = arith.mulf %61, %62 : vector<8x8xf32>
    %cst_23 = arith.constant -1.000000e+09 : f32
    %64 = vector.broadcast %cst_23 : f32 to vector<8x8xf32>
    %65 = arith.select %53, %64, %63 : vector<8x8xi1>, vector<8x8xf32>
    %cst_24 = arith.constant dense<0xFF800000> : vector<8xf32>
    %66 = vector.multi_reduction <maximumf>, %65, %cst_24 [1] : vector<8x8xf32> to vector<8xf32>
    %67 = vector.shape_cast %66 : vector<8xf32> to vector<8x1xf32>
    %68 = vector.broadcast %67 : vector<8x1xf32> to vector<8x8xf32>
    %69 = arith.subf %65, %68 : vector<8x8xf32>
    %70 = math.exp %69 : vector<8x8xf32>
    %cst_25 = arith.constant dense<0.000000e+00> : vector<8xf32>
    %71 = vector.multi_reduction <add>, %70, %cst_25 [1] : vector<8x8xf32> to vector<8xf32>
    %72 = vector.shape_cast %71 : vector<8xf32> to vector<8x1xf32>
    %73 = tpu.reciprocal %72 {approx = true} : vector<8x1xf32> -> vector<8x1xf32>
    %74 = vector.broadcast %73 : vector<8x1xf32> to vector<8x8xf32>
    %75 = arith.mulf %70, %74 : vector<8x8xf32>
    %76 = arith.truncf %75 : vector<8x8xf32> to vector<8x8xbf16>
    %cst_26 = arith.constant dense<0.000000e+00> : vector<8x8xf32>
    %77 = tpu.matmul %76, %60, %cst_26 {dimension_numbers = #tpu.dot_dimension_numbers<[1], [0], [0], [1], [0, 0, 1, 1], [], []>} : vector<8x8xbf16>, vector<8x8xbf16>, vector<8x8xf32> -> vector<8x8xf32>
    %78 = arith.truncf %77 : vector<8x8xf32> to vector<8x8xbf16>
    %79 = vector.extract_strided_slice %44 {offsets = [0, 0], sizes = [8, 32], strides = [1, 1]} : vector<32x32xbf16> to vector<8x32xbf16>
    %cst_27 = arith.constant dense<0.000000e+00> : vector<8x32xf32>
    %80 = tpu.matmul %78, %79, %cst_27 {dimension_numbers = #tpu.dot_dimension_numbers<[1], [0], [0], [1], [0, 0, 1, 1], [], []>} : vector<8x8xbf16>, vector<8x32xbf16>, vector<8x32xf32> -> vector<8x32xf32>
    %81 = arith.addf %54, %80 : vector<8x32xf32>
    %82 = vector.extract_strided_slice %47 {offsets = [0, 8], sizes = [8, 8], strides = [1, 1]} : vector<8x32xf32> to vector<8x8xf32>
    %83 = arith.truncf %82 : vector<8x8xf32> to vector<8x8xbf16>
    %84 = vector.extract_strided_slice %48 {offsets = [0, 8], sizes = [8, 8], strides = [1, 1]} : vector<8x32xf32> to vector<8x8xf32>
    %85 = arith.truncf %84 : vector<8x8xf32> to vector<8x8xbf16>
    %86 = vector.extract_strided_slice %49 {offsets = [0, 8], sizes = [8, 8], strides = [1, 1]} : vector<8x32xf32> to vector<8x8xf32>
    %87 = arith.truncf %86 : vector<8x8xf32> to vector<8x8xbf16>
    %cst_28 = arith.constant dense<0.000000e+00> : vector<8x8xf32>
    %88 = tpu.matmul %83, %85, %cst_28 {dimension_numbers = #tpu.dot_dimension_numbers<[1], [1], [0], [0], [0, 0, 1, 0], [], []>} : vector<8x8xbf16>, vector<8x8xbf16>, vector<8x8xf32> -> vector<8x8xf32>
    %cst_29 = arith.constant 0.353553385 : f32
    %89 = vector.broadcast %cst_29 : f32 to vector<8x8xf32>
    %90 = arith.mulf %88, %89 : vector<8x8xf32>
    %cst_30 = arith.constant -1.000000e+09 : f32
    %91 = vector.broadcast %cst_30 : f32 to vector<8x8xf32>
    %92 = arith.select %53, %91, %90 : vector<8x8xi1>, vector<8x8xf32>
    %cst_31 = arith.constant dense<0xFF800000> : vector<8xf32>
    %93 = vector.multi_reduction <maximumf>, %92, %cst_31 [1] : vector<8x8xf32> to vector<8xf32>
    %94 = vector.shape_cast %93 : vector<8xf32> to vector<8x1xf32>
    %95 = vector.broadcast %94 : vector<8x1xf32> to vector<8x8xf32>
    %96 = arith.subf %92, %95 : vector<8x8xf32>
    %97 = math.exp %96 : vector<8x8xf32>
    %cst_32 = arith.constant dense<0.000000e+00> : vector<8xf32>
    %98 = vector.multi_reduction <add>, %97, %cst_32 [1] : vector<8x8xf32> to vector<8xf32>
    %99 = vector.shape_cast %98 : vector<8xf32> to vector<8x1xf32>
    %100 = tpu.reciprocal %99 {approx = true} : vector<8x1xf32> -> vector<8x1xf32>
    %101 = vector.broadcast %100 : vector<8x1xf32> to vector<8x8xf32>
    %102 = arith.mulf %97, %101 : vector<8x8xf32>
    %103 = arith.truncf %102 : vector<8x8xf32> to vector<8x8xbf16>
    %cst_33 = arith.constant dense<0.000000e+00> : vector<8x8xf32>
    %104 = tpu.matmul %103, %87, %cst_33 {dimension_numbers = #tpu.dot_dimension_numbers<[1], [0], [0], [1], [0, 0, 1, 1], [], []>} : vector<8x8xbf16>, vector<8x8xbf16>, vector<8x8xf32> -> vector<8x8xf32>
    %105 = arith.truncf %104 : vector<8x8xf32> to vector<8x8xbf16>
    %106 = vector.extract_strided_slice %44 {offsets = [8, 0], sizes = [8, 32], strides = [1, 1]} : vector<32x32xbf16> to vector<8x32xbf16>
    %cst_34 = arith.constant dense<0.000000e+00> : vector<8x32xf32>
    %107 = tpu.matmul %105, %106, %cst_34 {dimension_numbers = #tpu.dot_dimension_numbers<[1], [0], [0], [1], [0, 0, 1, 1], [], []>} : vector<8x8xbf16>, vector<8x32xbf16>, vector<8x32xf32> -> vector<8x32xf32>
    %108 = arith.addf %81, %107 : vector<8x32xf32>
    %109 = vector.extract_strided_slice %47 {offsets = [0, 16], sizes = [8, 8], strides = [1, 1]} : vector<8x32xf32> to vector<8x8xf32>
    %110 = arith.truncf %109 : vector<8x8xf32> to vector<8x8xbf16>
    %111 = vector.extract_strided_slice %48 {offsets = [0, 16], sizes = [8, 8], strides = [1, 1]} : vector<8x32xf32> to vector<8x8xf32>
    %112 = arith.truncf %111 : vector<8x8xf32> to vector<8x8xbf16>
    %113 = vector.extract_strided_slice %49 {offsets = [0, 16], sizes = [8, 8], strides = [1, 1]} : vector<8x32xf32> to vector<8x8xf32>
    %114 = arith.truncf %113 : vector<8x8xf32> to vector<8x8xbf16>
    %cst_35 = arith.constant dense<0.000000e+00> : vector<8x8xf32>
    %115 = tpu.matmul %110, %112, %cst_35 {dimension_numbers = #tpu.dot_dimension_numbers<[1], [1], [0], [0], [0, 0, 1, 0], [], []>} : vector<8x8xbf16>, vector<8x8xbf16>, vector<8x8xf32> -> vector<8x8xf32>
    %cst_36 = arith.constant 0.353553385 : f32
    %116 = vector.broadcast %cst_36 : f32 to vector<8x8xf32>
    %117 = arith.mulf %115, %116 : vector<8x8xf32>
    %cst_37 = arith.constant -1.000000e+09 : f32
    %118 = vector.broadcast %cst_37 : f32 to vector<8x8xf32>
    %119 = arith.select %53, %118, %117 : vector<8x8xi1>, vector<8x8xf32>
    %cst_38 = arith.constant dense<0xFF800000> : vector<8xf32>
    %120 = vector.multi_reduction <maximumf>, %119, %cst_38 [1] : vector<8x8xf32> to vector<8xf32>
    %121 = vector.shape_cast %120 : vector<8xf32> to vector<8x1xf32>
    %122 = vector.broadcast %121 : vector<8x1xf32> to vector<8x8xf32>
    %123 = arith.subf %119, %122 : vector<8x8xf32>
    %124 = math.exp %123 : vector<8x8xf32>
    %cst_39 = arith.constant dense<0.000000e+00> : vector<8xf32>
    %125 = vector.multi_reduction <add>, %124, %cst_39 [1] : vector<8x8xf32> to vector<8xf32>
    %126 = vector.shape_cast %125 : vector<8xf32> to vector<8x1xf32>
    %127 = tpu.reciprocal %126 {approx = true} : vector<8x1xf32> -> vector<8x1xf32>
    %128 = vector.broadcast %127 : vector<8x1xf32> to vector<8x8xf32>
    %129 = arith.mulf %124, %128 : vector<8x8xf32>
    %130 = arith.truncf %129 : vector<8x8xf32> to vector<8x8xbf16>
    %cst_40 = arith.constant dense<0.000000e+00> : vector<8x8xf32>
    %131 = tpu.matmul %130, %114, %cst_40 {dimension_numbers = #tpu.dot_dimension_numbers<[1], [0], [0], [1], [0, 0, 1, 1], [], []>} : vector<8x8xbf16>, vector<8x8xbf16>, vector<8x8xf32> -> vector<8x8xf32>
    %132 = arith.truncf %131 : vector<8x8xf32> to vector<8x8xbf16>
    %133 = vector.extract_strided_slice %44 {offsets = [16, 0], sizes = [8, 32], strides = [1, 1]} : vector<32x32xbf16> to vector<8x32xbf16>
    %cst_41 = arith.constant dense<0.000000e+00> : vector<8x32xf32>
    %134 = tpu.matmul %132, %133, %cst_41 {dimension_numbers = #tpu.dot_dimension_numbers<[1], [0], [0], [1], [0, 0, 1, 1], [], []>} : vector<8x8xbf16>, vector<8x32xbf16>, vector<8x32xf32> -> vector<8x32xf32>
    %135 = arith.addf %108, %134 : vector<8x32xf32>
    %136 = vector.extract_strided_slice %47 {offsets = [0, 24], sizes = [8, 8], strides = [1, 1]} : vector<8x32xf32> to vector<8x8xf32>
    %137 = arith.truncf %136 : vector<8x8xf32> to vector<8x8xbf16>
    %138 = vector.extract_strided_slice %48 {offsets = [0, 24], sizes = [8, 8], strides = [1, 1]} : vector<8x32xf32> to vector<8x8xf32>
    %139 = arith.truncf %138 : vector<8x8xf32> to vector<8x8xbf16>
    %140 = vector.extract_strided_slice %49 {offsets = [0, 24], sizes = [8, 8], strides = [1, 1]} : vector<8x32xf32> to vector<8x8xf32>
    %141 = arith.truncf %140 : vector<8x8xf32> to vector<8x8xbf16>
    %cst_42 = arith.constant dense<0.000000e+00> : vector<8x8xf32>
    %142 = tpu.matmul %137, %139, %cst_42 {dimension_numbers = #tpu.dot_dimension_numbers<[1], [1], [0], [0], [0, 0, 1, 0], [], []>} : vector<8x8xbf16>, vector<8x8xbf16>, vector<8x8xf32> -> vector<8x8xf32>
    %cst_43 = arith.constant 0.353553385 : f32
    %143 = vector.broadcast %cst_43 : f32 to vector<8x8xf32>
    %144 = arith.mulf %142, %143 : vector<8x8xf32>
    %cst_44 = arith.constant -1.000000e+09 : f32
    %145 = vector.broadcast %cst_44 : f32 to vector<8x8xf32>
    %146 = arith.select %53, %145, %144 : vector<8x8xi1>, vector<8x8xf32>
    %cst_45 = arith.constant dense<0xFF800000> : vector<8xf32>
    %147 = vector.multi_reduction <maximumf>, %146, %cst_45 [1] : vector<8x8xf32> to vector<8xf32>
    %148 = vector.shape_cast %147 : vector<8xf32> to vector<8x1xf32>
    %149 = vector.broadcast %148 : vector<8x1xf32> to vector<8x8xf32>
    %150 = arith.subf %146, %149 : vector<8x8xf32>
    %151 = math.exp %150 : vector<8x8xf32>
    %cst_46 = arith.constant dense<0.000000e+00> : vector<8xf32>
    %152 = vector.multi_reduction <add>, %151, %cst_46 [1] : vector<8x8xf32> to vector<8xf32>
    %153 = vector.shape_cast %152 : vector<8xf32> to vector<8x1xf32>
    %154 = tpu.reciprocal %153 {approx = true} : vector<8x1xf32> -> vector<8x1xf32>
    %155 = vector.broadcast %154 : vector<8x1xf32> to vector<8x8xf32>
    %156 = arith.mulf %151, %155 : vector<8x8xf32>
    %157 = arith.truncf %156 : vector<8x8xf32> to vector<8x8xbf16>
    %cst_47 = arith.constant dense<0.000000e+00> : vector<8x8xf32>
    %158 = tpu.matmul %157, %141, %cst_47 {dimension_numbers = #tpu.dot_dimension_numbers<[1], [0], [0], [1], [0, 0, 1, 1], [], []>} : vector<8x8xbf16>, vector<8x8xbf16>, vector<8x8xf32> -> vector<8x8xf32>
    %159 = arith.truncf %158 : vector<8x8xf32> to vector<8x8xbf16>
    %160 = vector.extract_strided_slice %44 {offsets = [24, 0], sizes = [8, 32], strides = [1, 1]} : vector<32x32xbf16> to vector<8x32xbf16>
    %cst_48 = arith.constant dense<0.000000e+00> : vector<8x32xf32>
    %161 = tpu.matmul %159, %160, %cst_48 {dimension_numbers = #tpu.dot_dimension_numbers<[1], [0], [0], [1], [0, 0, 1, 1], [], []>} : vector<8x8xbf16>, vector<8x32xbf16>, vector<8x32xf32> -> vector<8x32xf32>
    %162 = arith.addf %135, %161 : vector<8x32xf32>
    %163 = vector.extract_strided_slice %41 {offsets = [8, 0], sizes = [8, 32], strides = [1, 1]} : vector<16x32xf32> to vector<8x32xf32>
    %164 = vector.extract_strided_slice %42 {offsets = [8, 0], sizes = [8, 32], strides = [1, 1]} : vector<16x32xf32> to vector<8x32xf32>
    %165 = vector.extract_strided_slice %43 {offsets = [8, 0], sizes = [8, 32], strides = [1, 1]} : vector<16x32xf32> to vector<8x32xf32>
    %c1 = arith.constant 1 : index
    %c0_49 = arith.constant 0 : index
    %c0_50 = arith.constant 0 : index
    %166 = vector.load %arg2[%c1, %c0_49, %c0_50] : memref<2x8x8xf32, #tpu.memory_space<vmem>>, vector<1x8x8xf32>
    %167 = vector.shape_cast %166 : vector<1x8x8xf32> to vector<8x8xf32>
    %cst_51 = arith.constant 0.000000e+00 : f32
    %168 = vector.broadcast %cst_51 : f32 to vector<8x8xf32>
    %169 = arith.cmpf oeq, %167, %168 : vector<8x8xf32>
    %cst_52 = arith.constant 0.000000e+00 : f32
    %170 = vector.broadcast %cst_52 : f32 to vector<8x32xf32>
    %171 = vector.extract_strided_slice %163 {offsets = [0, 0], sizes = [8, 8], strides = [1, 1]} : vector<8x32xf32> to vector<8x8xf32>
    %172 = arith.truncf %171 : vector<8x8xf32> to vector<8x8xbf16>
    %173 = vector.extract_strided_slice %164 {offsets = [0, 0], sizes = [8, 8], strides = [1, 1]} : vector<8x32xf32> to vector<8x8xf32>
    %174 = arith.truncf %173 : vector<8x8xf32> to vector<8x8xbf16>
    %175 = vector.extract_strided_slice %165 {offsets = [0, 0], sizes = [8, 8], strides = [1, 1]} : vector<8x32xf32> to vector<8x8xf32>
    %176 = arith.truncf %175 : vector<8x8xf32> to vector<8x8xbf16>
    %cst_53 = arith.constant dense<0.000000e+00> : vector<8x8xf32>
    %177 = tpu.matmul %172, %174, %cst_53 {dimension_numbers = #tpu.dot_dimension_numbers<[1], [1], [0], [0], [0, 0, 1, 0], [], []>} : vector<8x8xbf16>, vector<8x8xbf16>, vector<8x8xf32> -> vector<8x8xf32>
    %cst_54 = arith.constant 0.353553385 : f32
    %178 = vector.broadcast %cst_54 : f32 to vector<8x8xf32>
    %179 = arith.mulf %177, %178 : vector<8x8xf32>
    %cst_55 = arith.constant -1.000000e+09 : f32
    %180 = vector.broadcast %cst_55 : f32 to vector<8x8xf32>
    %181 = arith.select %169, %180, %179 : vector<8x8xi1>, vector<8x8xf32>
    %cst_56 = arith.constant dense<0xFF800000> : vector<8xf32>
    %182 = vector.multi_reduction <maximumf>, %181, %cst_56 [1] : vector<8x8xf32> to vector<8xf32>
    %183 = vector.shape_cast %182 : vector<8xf32> to vector<8x1xf32>
    %184 = vector.broadcast %183 : vector<8x1xf32> to vector<8x8xf32>
    %185 = arith.subf %181, %184 : vector<8x8xf32>
    %186 = math.exp %185 : vector<8x8xf32>
    %cst_57 = arith.constant dense<0.000000e+00> : vector<8xf32>
    %187 = vector.multi_reduction <add>, %186, %cst_57 [1] : vector<8x8xf32> to vector<8xf32>
    %188 = vector.shape_cast %187 : vector<8xf32> to vector<8x1xf32>
    %189 = tpu.reciprocal %188 {approx = true} : vector<8x1xf32> -> vector<8x1xf32>
    %190 = vector.broadcast %189 : vector<8x1xf32> to vector<8x8xf32>
    %191 = arith.mulf %186, %190 : vector<8x8xf32>
    %192 = arith.truncf %191 : vector<8x8xf32> to vector<8x8xbf16>
    %cst_58 = arith.constant dense<0.000000e+00> : vector<8x8xf32>
    %193 = tpu.matmul %192, %176, %cst_58 {dimension_numbers = #tpu.dot_dimension_numbers<[1], [0], [0], [1], [0, 0, 1, 1], [], []>} : vector<8x8xbf16>, vector<8x8xbf16>, vector<8x8xf32> -> vector<8x8xf32>
    %194 = arith.truncf %193 : vector<8x8xf32> to vector<8x8xbf16>
    %195 = vector.extract_strided_slice %44 {offsets = [0, 0], sizes = [8, 32], strides = [1, 1]} : vector<32x32xbf16> to vector<8x32xbf16>
    %cst_59 = arith.constant dense<0.000000e+00> : vector<8x32xf32>
    %196 = tpu.matmul %194, %195, %cst_59 {dimension_numbers = #tpu.dot_dimension_numbers<[1], [0], [0], [1], [0, 0, 1, 1], [], []>} : vector<8x8xbf16>, vector<8x32xbf16>, vector<8x32xf32> -> vector<8x32xf32>
    %197 = arith.addf %170, %196 : vector<8x32xf32>
    %198 = vector.extract_strided_slice %163 {offsets = [0, 8], sizes = [8, 8], strides = [1, 1]} : vector<8x32xf32> to vector<8x8xf32>
    %199 = arith.truncf %198 : vector<8x8xf32> to vector<8x8xbf16>
    %200 = vector.extract_strided_slice %164 {offsets = [0, 8], sizes = [8, 8], strides = [1, 1]} : vector<8x32xf32> to vector<8x8xf32>
    %201 = arith.truncf %200 : vector<8x8xf32> to vector<8x8xbf16>
    %202 = vector.extract_strided_slice %165 {offsets = [0, 8], sizes = [8, 8], strides = [1, 1]} : vector<8x32xf32> to vector<8x8xf32>
    %203 = arith.truncf %202 : vector<8x8xf32> to vector<8x8xbf16>
    %cst_60 = arith.constant dense<0.000000e+00> : vector<8x8xf32>
    %204 = tpu.matmul %199, %201, %cst_60 {dimension_numbers = #tpu.dot_dimension_numbers<[1], [1], [0], [0], [0, 0, 1, 0], [], []>} : vector<8x8xbf16>, vector<8x8xbf16>, vector<8x8xf32> -> vector<8x8xf32>
    %cst_61 = arith.constant 0.353553385 : f32
    %205 = vector.broadcast %cst_61 : f32 to vector<8x8xf32>
    %206 = arith.mulf %204, %205 : vector<8x8xf32>
    %cst_62 = arith.constant -1.000000e+09 : f32
    %207 = vector.broadcast %cst_62 : f32 to vector<8x8xf32>
    %208 = arith.select %169, %207, %206 : vector<8x8xi1>, vector<8x8xf32>
    %cst_63 = arith.constant dense<0xFF800000> : vector<8xf32>
    %209 = vector.multi_reduction <maximumf>, %208, %cst_63 [1] : vector<8x8xf32> to vector<8xf32>
    %210 = vector.shape_cast %209 : vector<8xf32> to vector<8x1xf32>
    %211 = vector.broadcast %210 : vector<8x1xf32> to vector<8x8xf32>
    %212 = arith.subf %208, %211 : vector<8x8xf32>
    %213 = math.exp %212 : vector<8x8xf32>
    %cst_64 = arith.constant dense<0.000000e+00> : vector<8xf32>
    %214 = vector.multi_reduction <add>, %213, %cst_64 [1] : vector<8x8xf32> to vector<8xf32>
    %215 = vector.shape_cast %214 : vector<8xf32> to vector<8x1xf32>
    %216 = tpu.reciprocal %215 {approx = true} : vector<8x1xf32> -> vector<8x1xf32>
    %217 = vector.broadcast %216 : vector<8x1xf32> to vector<8x8xf32>
    %218 = arith.mulf %213, %217 : vector<8x8xf32>
    %219 = arith.truncf %218 : vector<8x8xf32> to vector<8x8xbf16>
    %cst_65 = arith.constant dense<0.000000e+00> : vector<8x8xf32>
    %220 = tpu.matmul %219, %203, %cst_65 {dimension_numbers = #tpu.dot_dimension_numbers<[1], [0], [0], [1], [0, 0, 1, 1], [], []>} : vector<8x8xbf16>, vector<8x8xbf16>, vector<8x8xf32> -> vector<8x8xf32>
    %221 = arith.truncf %220 : vector<8x8xf32> to vector<8x8xbf16>
    %222 = vector.extract_strided_slice %44 {offsets = [8, 0], sizes = [8, 32], strides = [1, 1]} : vector<32x32xbf16> to vector<8x32xbf16>
    %cst_66 = arith.constant dense<0.000000e+00> : vector<8x32xf32>
    %223 = tpu.matmul %221, %222, %cst_66 {dimension_numbers = #tpu.dot_dimension_numbers<[1], [0], [0], [1], [0, 0, 1, 1], [], []>} : vector<8x8xbf16>, vector<8x32xbf16>, vector<8x32xf32> -> vector<8x32xf32>
    %224 = arith.addf %197, %223 : vector<8x32xf32>
    %225 = vector.extract_strided_slice %163 {offsets = [0, 16], sizes = [8, 8], strides = [1, 1]} : vector<8x32xf32> to vector<8x8xf32>
    %226 = arith.truncf %225 : vector<8x8xf32> to vector<8x8xbf16>
    %227 = vector.extract_strided_slice %164 {offsets = [0, 16], sizes = [8, 8], strides = [1, 1]} : vector<8x32xf32> to vector<8x8xf32>
    %228 = arith.truncf %227 : vector<8x8xf32> to vector<8x8xbf16>
    %229 = vector.extract_strided_slice %165 {offsets = [0, 16], sizes = [8, 8], strides = [1, 1]} : vector<8x32xf32> to vector<8x8xf32>
    %230 = arith.truncf %229 : vector<8x8xf32> to vector<8x8xbf16>
    %cst_67 = arith.constant dense<0.000000e+00> : vector<8x8xf32>
    %231 = tpu.matmul %226, %228, %cst_67 {dimension_numbers = #tpu.dot_dimension_numbers<[1], [1], [0], [0], [0, 0, 1, 0], [], []>} : vector<8x8xbf16>, vector<8x8xbf16>, vector<8x8xf32> -> vector<8x8xf32>
    %cst_68 = arith.constant 0.353553385 : f32
    %232 = vector.broadcast %cst_68 : f32 to vector<8x8xf32>
    %233 = arith.mulf %231, %232 : vector<8x8xf32>
    %cst_69 = arith.constant -1.000000e+09 : f32
    %234 = vector.broadcast %cst_69 : f32 to vector<8x8xf32>
    %235 = arith.select %169, %234, %233 : vector<8x8xi1>, vector<8x8xf32>
    %cst_70 = arith.constant dense<0xFF800000> : vector<8xf32>
    %236 = vector.multi_reduction <maximumf>, %235, %cst_70 [1] : vector<8x8xf32> to vector<8xf32>
    %237 = vector.shape_cast %236 : vector<8xf32> to vector<8x1xf32>
    %238 = vector.broadcast %237 : vector<8x1xf32> to vector<8x8xf32>
    %239 = arith.subf %235, %238 : vector<8x8xf32>
    %240 = math.exp %239 : vector<8x8xf32>
    %cst_71 = arith.constant dense<0.000000e+00> : vector<8xf32>
    %241 = vector.multi_reduction <add>, %240, %cst_71 [1] : vector<8x8xf32> to vector<8xf32>
    %242 = vector.shape_cast %241 : vector<8xf32> to vector<8x1xf32>
    %243 = tpu.reciprocal %242 {approx = true} : vector<8x1xf32> -> vector<8x1xf32>
    %244 = vector.broadcast %243 : vector<8x1xf32> to vector<8x8xf32>
    %245 = arith.mulf %240, %244 : vector<8x8xf32>
    %246 = arith.truncf %245 : vector<8x8xf32> to vector<8x8xbf16>
    %cst_72 = arith.constant dense<0.000000e+00> : vector<8x8xf32>
    %247 = tpu.matmul %246, %230, %cst_72 {dimension_numbers = #tpu.dot_dimension_numbers<[1], [0], [0], [1], [0, 0, 1, 1], [], []>} : vector<8x8xbf16>, vector<8x8xbf16>, vector<8x8xf32> -> vector<8x8xf32>
    %248 = arith.truncf %247 : vector<8x8xf32> to vector<8x8xbf16>
    %249 = vector.extract_strided_slice %44 {offsets = [16, 0], sizes = [8, 32], strides = [1, 1]} : vector<32x32xbf16> to vector<8x32xbf16>
    %cst_73 = arith.constant dense<0.000000e+00> : vector<8x32xf32>
    %250 = tpu.matmul %248, %249, %cst_73 {dimension_numbers = #tpu.dot_dimension_numbers<[1], [0], [0], [1], [0, 0, 1, 1], [], []>} : vector<8x8xbf16>, vector<8x32xbf16>, vector<8x32xf32> -> vector<8x32xf32>
    %251 = arith.addf %224, %250 : vector<8x32xf32>
    %252 = vector.extract_strided_slice %163 {offsets = [0, 24], sizes = [8, 8], strides = [1, 1]} : vector<8x32xf32> to vector<8x8xf32>
    %253 = arith.truncf %252 : vector<8x8xf32> to vector<8x8xbf16>
    %254 = vector.extract_strided_slice %164 {offsets = [0, 24], sizes = [8, 8], strides = [1, 1]} : vector<8x32xf32> to vector<8x8xf32>
    %255 = arith.truncf %254 : vector<8x8xf32> to vector<8x8xbf16>
    %256 = vector.extract_strided_slice %165 {offsets = [0, 24], sizes = [8, 8], strides = [1, 1]} : vector<8x32xf32> to vector<8x8xf32>
    %257 = arith.truncf %256 : vector<8x8xf32> to vector<8x8xbf16>
    %cst_74 = arith.constant dense<0.000000e+00> : vector<8x8xf32>
    %258 = tpu.matmul %253, %255, %cst_74 {dimension_numbers = #tpu.dot_dimension_numbers<[1], [1], [0], [0], [0, 0, 1, 0], [], []>} : vector<8x8xbf16>, vector<8x8xbf16>, vector<8x8xf32> -> vector<8x8xf32>
    %cst_75 = arith.constant 0.353553385 : f32
    %259 = vector.broadcast %cst_75 : f32 to vector<8x8xf32>
    %260 = arith.mulf %258, %259 : vector<8x8xf32>
    %cst_76 = arith.constant -1.000000e+09 : f32
    %261 = vector.broadcast %cst_76 : f32 to vector<8x8xf32>
    %262 = arith.select %169, %261, %260 : vector<8x8xi1>, vector<8x8xf32>
    %cst_77 = arith.constant dense<0xFF800000> : vector<8xf32>
    %263 = vector.multi_reduction <maximumf>, %262, %cst_77 [1] : vector<8x8xf32> to vector<8xf32>
    %264 = vector.shape_cast %263 : vector<8xf32> to vector<8x1xf32>
    %265 = vector.broadcast %264 : vector<8x1xf32> to vector<8x8xf32>
    %266 = arith.subf %262, %265 : vector<8x8xf32>
    %267 = math.exp %266 : vector<8x8xf32>
    %cst_78 = arith.constant dense<0.000000e+00> : vector<8xf32>
    %268 = vector.multi_reduction <add>, %267, %cst_78 [1] : vector<8x8xf32> to vector<8xf32>
    %269 = vector.shape_cast %268 : vector<8xf32> to vector<8x1xf32>
    %270 = tpu.reciprocal %269 {approx = true} : vector<8x1xf32> -> vector<8x1xf32>
    %271 = vector.broadcast %270 : vector<8x1xf32> to vector<8x8xf32>
    %272 = arith.mulf %267, %271 : vector<8x8xf32>
    %273 = arith.truncf %272 : vector<8x8xf32> to vector<8x8xbf16>
    %cst_79 = arith.constant dense<0.000000e+00> : vector<8x8xf32>
    %274 = tpu.matmul %273, %257, %cst_79 {dimension_numbers = #tpu.dot_dimension_numbers<[1], [0], [0], [1], [0, 0, 1, 1], [], []>} : vector<8x8xbf16>, vector<8x8xbf16>, vector<8x8xf32> -> vector<8x8xf32>
    %275 = arith.truncf %274 : vector<8x8xf32> to vector<8x8xbf16>
    %276 = vector.extract_strided_slice %44 {offsets = [24, 0], sizes = [8, 32], strides = [1, 1]} : vector<32x32xbf16> to vector<8x32xbf16>
    %cst_80 = arith.constant dense<0.000000e+00> : vector<8x32xf32>
    %277 = tpu.matmul %275, %276, %cst_80 {dimension_numbers = #tpu.dot_dimension_numbers<[1], [0], [0], [1], [0, 0, 1, 1], [], []>} : vector<8x8xbf16>, vector<8x32xbf16>, vector<8x32xf32> -> vector<8x32xf32>
    %278 = arith.addf %251, %277 : vector<8x32xf32>
    %279 = tpu.concatenate %162, %278 in 0 : vector<8x32xf32>, vector<8x32xf32> -> vector<16x32xf32>
    %280 = vector.shape_cast %46 : vector<32xf32> to vector<1x32xf32>
    %281 = vector.broadcast %280 : vector<1x32xf32> to vector<16x32xf32>
    %282 = arith.addf %279, %281 : vector<16x32xf32>
    %283 = arith.addf %0, %282 : vector<16x32xf32>
    %284 = vector.extract_strided_slice %2 {offsets = [2, 0], sizes = [1, 32], strides = [1, 1]} : vector<6x32xf32> to vector<1x32xf32>
    %285 = vector.shape_cast %284 : vector<1x32xf32> to vector<32xf32>
    %286 = vector.extract_strided_slice %2 {offsets = [3, 0], sizes = [1, 32], strides = [1, 1]} : vector<6x32xf32> to vector<1x32xf32>
    %287 = vector.shape_cast %286 : vector<1x32xf32> to vector<32xf32>
    %cst_81 = arith.constant dense<0.000000e+00> : vector<16xf32>
    %288 = vector.multi_reduction <add>, %283, %cst_81 [1] : vector<16x32xf32> to vector<16xf32>
    %289 = vector.shape_cast %288 : vector<16xf32> to vector<16x1xf32>
    %cst_82 = arith.constant 3.200000e+01 : f32
    %290 = vector.broadcast %cst_82 : f32 to vector<16x1xf32>
    %291 = arith.divf %289, %290 : vector<16x1xf32>
    %292 = vector.broadcast %291 : vector<16x1xf32> to vector<16x32xf32>
    %293 = arith.subf %283, %292 : vector<16x32xf32>
    %294 = arith.mulf %293, %293 : vector<16x32xf32>
    %cst_83 = arith.constant dense<0.000000e+00> : vector<16xf32>
    %295 = vector.multi_reduction <add>, %294, %cst_83 [1] : vector<16x32xf32> to vector<16xf32>
    %296 = vector.shape_cast %295 : vector<16xf32> to vector<16x1xf32>
    %cst_84 = arith.constant 0.0322580636 : f32
    %297 = vector.broadcast %cst_84 : f32 to vector<16x1xf32>
    %298 = arith.mulf %296, %297 : vector<16x1xf32>
    %299 = math.sqrt %298 : vector<16x1xf32>
    %cst_85 = arith.constant 9.99999997E-7 : f32
    %300 = vector.broadcast %cst_85 : f32 to vector<16x1xf32>
    %301 = arith.addf %299, %300 : vector<16x1xf32>
    %302 = tpu.reciprocal %301 {approx = true} : vector<16x1xf32> -> vector<16x1xf32>
    %303 = vector.shape_cast %285 : vector<32xf32> to vector<1x32xf32>
    %304 = vector.broadcast %291 : vector<16x1xf32> to vector<16x32xf32>
    %305 = arith.subf %283, %304 : vector<16x32xf32>
    %306 = vector.broadcast %303 : vector<1x32xf32> to vector<16x32xf32>
    %307 = arith.mulf %306, %305 : vector<16x32xf32>
    %308 = vector.broadcast %302 : vector<16x1xf32> to vector<16x32xf32>
    %309 = arith.mulf %307, %308 : vector<16x32xf32>
    %310 = vector.shape_cast %287 : vector<32xf32> to vector<1x32xf32>
    %311 = vector.broadcast %310 : vector<1x32xf32> to vector<16x32xf32>
    %312 = arith.addf %309, %311 : vector<16x32xf32>
    %313 = arith.truncf %312 : vector<16x32xf32> to vector<16x32xbf16>
    %c0_86 = arith.constant 0 : index
    %c0_87 = arith.constant 0 : index
    %314 = vector.load %arg8[%c0_86, %c0_87] : memref<32x32xbf16, #tpu.memory_space<vmem>>, vector<32x32xbf16>
    %cst_88 = arith.constant dense<0.000000e+00> : vector<16x32xf32>
    %315 = tpu.matmul %313, %314, %cst_88 {dimension_numbers = #tpu.dot_dimension_numbers<[1], [0], [0], [1], [0, 0, 1, 1], [], []>} : vector<16x32xbf16>, vector<32x32xbf16>, vector<16x32xf32> -> vector<16x32xf32>
    %316 = vector.extract_strided_slice %3 {offsets = [2, 0], sizes = [1, 32], strides = [1, 1]} : vector<7x128xf32> to vector<1x32xf32>
    %317 = vector.shape_cast %316 : vector<1x32xf32> to vector<32xf32>
    %318 = vector.shape_cast %317 : vector<32xf32> to vector<1x32xf32>
    %319 = vector.broadcast %318 : vector<1x32xf32> to vector<16x32xf32>
    %320 = arith.addf %315, %319 : vector<16x32xf32>
    %321 = arith.truncf %1 : vector<16x32xf32> to vector<16x32xbf16>
    %c0_89 = arith.constant 0 : index
    %c0_90 = arith.constant 0 : index
    %322 = vector.load %arg9[%c0_89, %c0_90] : memref<32x64xbf16, #tpu.memory_space<vmem>>, vector<32x64xbf16>
    %cst_91 = arith.constant dense<0.000000e+00> : vector<16x64xf32>
    %323 = tpu.matmul %321, %322, %cst_91 {dimension_numbers = #tpu.dot_dimension_numbers<[1], [0], [0], [1], [0, 0, 1, 1], [], []>} : vector<16x32xbf16>, vector<32x64xbf16>, vector<16x64xf32> -> vector<16x64xf32>
    %324 = vector.extract_strided_slice %3 {offsets = [3, 0], sizes = [1, 64], strides = [1, 1]} : vector<7x128xf32> to vector<1x64xf32>
    %325 = vector.shape_cast %324 : vector<1x64xf32> to vector<64xf32>
    %326 = vector.shape_cast %325 : vector<64xf32> to vector<1x64xf32>
    %327 = vector.broadcast %326 : vector<1x64xf32> to vector<16x64xf32>
    %328 = arith.addf %323, %327 : vector<16x64xf32>
    %329 = vector.extract_strided_slice %328 {offsets = [0, 0], sizes = [16, 32], strides = [1, 1]} : vector<16x64xf32> to vector<16x32xf32>
    %330 = vector.extract_strided_slice %328 {offsets = [0, 32], sizes = [16, 32], strides = [1, 1]} : vector<16x64xf32> to vector<16x32xf32>
    %c0_92 = arith.constant 0 : index
    %c0_93 = arith.constant 0 : index
    %331 = vector.load %arg10[%c0_92, %c0_93] : memref<32x32xbf16, #tpu.memory_space<vmem>>, vector<32x32xbf16>
    %332 = vector.extract_strided_slice %3 {offsets = [4, 0], sizes = [1, 32], strides = [1, 1]} : vector<7x128xf32> to vector<1x32xf32>
    %333 = vector.shape_cast %332 : vector<1x32xf32> to vector<32xf32>
    %334 = vector.extract_strided_slice %320 {offsets = [0, 0], sizes = [8, 32], strides = [1, 1]} : vector<16x32xf32> to vector<8x32xf32>
    %335 = vector.extract_strided_slice %329 {offsets = [0, 0], sizes = [8, 32], strides = [1, 1]} : vector<16x32xf32> to vector<8x32xf32>
    %336 = vector.extract_strided_slice %330 {offsets = [0, 0], sizes = [8, 32], strides = [1, 1]} : vector<16x32xf32> to vector<8x32xf32>
    %c0_94 = arith.constant 0 : index
    %c0_95 = arith.constant 0 : index
    %c0_96 = arith.constant 0 : index
    %337 = vector.load %arg3[%c0_94, %c0_95, %c0_96] : memref<2x1x8xf32, #tpu.memory_space<vmem>>, vector<1x1x8xf32>
    %338 = vector.shape_cast %337 : vector<1x1x8xf32> to vector<1x8xf32>
    %cst_97 = arith.constant 0.000000e+00 : f32
    %339 = vector.broadcast %cst_97 : f32 to vector<1x8xf32>
    %340 = arith.cmpf oeq, %338, %339 : vector<1x8xf32>
    %cst_98 = arith.constant 0.000000e+00 : f32
    %341 = vector.broadcast %cst_98 : f32 to vector<8x32xf32>
    %342 = vector.extract_strided_slice %334 {offsets = [0, 0], sizes = [8, 8], strides = [1, 1]} : vector<8x32xf32> to vector<8x8xf32>
    %343 = arith.truncf %342 : vector<8x8xf32> to vector<8x8xbf16>
    %344 = vector.extract_strided_slice %335 {offsets = [0, 0], sizes = [8, 8], strides = [1, 1]} : vector<8x32xf32> to vector<8x8xf32>
    %345 = arith.truncf %344 : vector<8x8xf32> to vector<8x8xbf16>
    %346 = vector.extract_strided_slice %336 {offsets = [0, 0], sizes = [8, 8], strides = [1, 1]} : vector<8x32xf32> to vector<8x8xf32>
    %347 = arith.truncf %346 : vector<8x8xf32> to vector<8x8xbf16>
    %cst_99 = arith.constant dense<0.000000e+00> : vector<8x8xf32>
    %348 = tpu.matmul %343, %345, %cst_99 {dimension_numbers = #tpu.dot_dimension_numbers<[1], [1], [0], [0], [0, 0, 1, 0], [], []>} : vector<8x8xbf16>, vector<8x8xbf16>, vector<8x8xf32> -> vector<8x8xf32>
    %cst_100 = arith.constant 0.353553385 : f32
    %349 = vector.broadcast %cst_100 : f32 to vector<8x8xf32>
    %350 = arith.mulf %348, %349 : vector<8x8xf32>
    %cst_101 = arith.constant -1.000000e+09 : f32
    %351 = vector.shape_cast %340 : vector<1x8xi1> to vector<1x8xi1>
    %352 = vector.broadcast %351 : vector<1x8xi1> to vector<8x8xi1>
    %353 = vector.broadcast %cst_101 : f32 to vector<8x8xf32>
    %354 = arith.select %352, %353, %350 : vector<8x8xi1>, vector<8x8xf32>
    %cst_102 = arith.constant dense<0xFF800000> : vector<8xf32>
    %355 = vector.multi_reduction <maximumf>, %354, %cst_102 [1] : vector<8x8xf32> to vector<8xf32>
    %356 = vector.shape_cast %355 : vector<8xf32> to vector<8x1xf32>
    %357 = vector.broadcast %356 : vector<8x1xf32> to vector<8x8xf32>
    %358 = arith.subf %354, %357 : vector<8x8xf32>
    %359 = math.exp %358 : vector<8x8xf32>
    %cst_103 = arith.constant dense<0.000000e+00> : vector<8xf32>
    %360 = vector.multi_reduction <add>, %359, %cst_103 [1] : vector<8x8xf32> to vector<8xf32>
    %361 = vector.shape_cast %360 : vector<8xf32> to vector<8x1xf32>
    %362 = tpu.reciprocal %361 {approx = true} : vector<8x1xf32> -> vector<8x1xf32>
    %363 = vector.broadcast %362 : vector<8x1xf32> to vector<8x8xf32>
    %364 = arith.mulf %359, %363 : vector<8x8xf32>
    %365 = arith.truncf %364 : vector<8x8xf32> to vector<8x8xbf16>
    %cst_104 = arith.constant dense<0.000000e+00> : vector<8x8xf32>
    %366 = tpu.matmul %365, %347, %cst_104 {dimension_numbers = #tpu.dot_dimension_numbers<[1], [0], [0], [1], [0, 0, 1, 1], [], []>} : vector<8x8xbf16>, vector<8x8xbf16>, vector<8x8xf32> -> vector<8x8xf32>
    %367 = arith.truncf %366 : vector<8x8xf32> to vector<8x8xbf16>
    %368 = vector.extract_strided_slice %331 {offsets = [0, 0], sizes = [8, 32], strides = [1, 1]} : vector<32x32xbf16> to vector<8x32xbf16>
    %cst_105 = arith.constant dense<0.000000e+00> : vector<8x32xf32>
    %369 = tpu.matmul %367, %368, %cst_105 {dimension_numbers = #tpu.dot_dimension_numbers<[1], [0], [0], [1], [0, 0, 1, 1], [], []>} : vector<8x8xbf16>, vector<8x32xbf16>, vector<8x32xf32> -> vector<8x32xf32>
    %370 = arith.addf %341, %369 : vector<8x32xf32>
    %371 = vector.extract_strided_slice %334 {offsets = [0, 8], sizes = [8, 8], strides = [1, 1]} : vector<8x32xf32> to vector<8x8xf32>
    %372 = arith.truncf %371 : vector<8x8xf32> to vector<8x8xbf16>
    %373 = vector.extract_strided_slice %335 {offsets = [0, 8], sizes = [8, 8], strides = [1, 1]} : vector<8x32xf32> to vector<8x8xf32>
    %374 = arith.truncf %373 : vector<8x8xf32> to vector<8x8xbf16>
    %375 = vector.extract_strided_slice %336 {offsets = [0, 8], sizes = [8, 8], strides = [1, 1]} : vector<8x32xf32> to vector<8x8xf32>
    %376 = arith.truncf %375 : vector<8x8xf32> to vector<8x8xbf16>
    %cst_106 = arith.constant dense<0.000000e+00> : vector<8x8xf32>
    %377 = tpu.matmul %372, %374, %cst_106 {dimension_numbers = #tpu.dot_dimension_numbers<[1], [1], [0], [0], [0, 0, 1, 0], [], []>} : vector<8x8xbf16>, vector<8x8xbf16>, vector<8x8xf32> -> vector<8x8xf32>
    %cst_107 = arith.constant 0.353553385 : f32
    %378 = vector.broadcast %cst_107 : f32 to vector<8x8xf32>
    %379 = arith.mulf %377, %378 : vector<8x8xf32>
    %cst_108 = arith.constant -1.000000e+09 : f32
    %380 = vector.shape_cast %340 : vector<1x8xi1> to vector<1x8xi1>
    %381 = vector.broadcast %380 : vector<1x8xi1> to vector<8x8xi1>
    %382 = vector.broadcast %cst_108 : f32 to vector<8x8xf32>
    %383 = arith.select %381, %382, %379 : vector<8x8xi1>, vector<8x8xf32>
    %cst_109 = arith.constant dense<0xFF800000> : vector<8xf32>
    %384 = vector.multi_reduction <maximumf>, %383, %cst_109 [1] : vector<8x8xf32> to vector<8xf32>
    %385 = vector.shape_cast %384 : vector<8xf32> to vector<8x1xf32>
    %386 = vector.broadcast %385 : vector<8x1xf32> to vector<8x8xf32>
    %387 = arith.subf %383, %386 : vector<8x8xf32>
    %388 = math.exp %387 : vector<8x8xf32>
    %cst_110 = arith.constant dense<0.000000e+00> : vector<8xf32>
    %389 = vector.multi_reduction <add>, %388, %cst_110 [1] : vector<8x8xf32> to vector<8xf32>
    %390 = vector.shape_cast %389 : vector<8xf32> to vector<8x1xf32>
    %391 = tpu.reciprocal %390 {approx = true} : vector<8x1xf32> -> vector<8x1xf32>
    %392 = vector.broadcast %391 : vector<8x1xf32> to vector<8x8xf32>
    %393 = arith.mulf %388, %392 : vector<8x8xf32>
    %394 = arith.truncf %393 : vector<8x8xf32> to vector<8x8xbf16>
    %cst_111 = arith.constant dense<0.000000e+00> : vector<8x8xf32>
    %395 = tpu.matmul %394, %376, %cst_111 {dimension_numbers = #tpu.dot_dimension_numbers<[1], [0], [0], [1], [0, 0, 1, 1], [], []>} : vector<8x8xbf16>, vector<8x8xbf16>, vector<8x8xf32> -> vector<8x8xf32>
    %396 = arith.truncf %395 : vector<8x8xf32> to vector<8x8xbf16>
    %397 = vector.extract_strided_slice %331 {offsets = [8, 0], sizes = [8, 32], strides = [1, 1]} : vector<32x32xbf16> to vector<8x32xbf16>
    %cst_112 = arith.constant dense<0.000000e+00> : vector<8x32xf32>
    %398 = tpu.matmul %396, %397, %cst_112 {dimension_numbers = #tpu.dot_dimension_numbers<[1], [0], [0], [1], [0, 0, 1, 1], [], []>} : vector<8x8xbf16>, vector<8x32xbf16>, vector<8x32xf32> -> vector<8x32xf32>
    %399 = arith.addf %370, %398 : vector<8x32xf32>
    %400 = vector.extract_strided_slice %334 {offsets = [0, 16], sizes = [8, 8], strides = [1, 1]} : vector<8x32xf32> to vector<8x8xf32>
    %401 = arith.truncf %400 : vector<8x8xf32> to vector<8x8xbf16>
    %402 = vector.extract_strided_slice %335 {offsets = [0, 16], sizes = [8, 8], strides = [1, 1]} : vector<8x32xf32> to vector<8x8xf32>
    %403 = arith.truncf %402 : vector<8x8xf32> to vector<8x8xbf16>
    %404 = vector.extract_strided_slice %336 {offsets = [0, 16], sizes = [8, 8], strides = [1, 1]} : vector<8x32xf32> to vector<8x8xf32>
    %405 = arith.truncf %404 : vector<8x8xf32> to vector<8x8xbf16>
    %cst_113 = arith.constant dense<0.000000e+00> : vector<8x8xf32>
    %406 = tpu.matmul %401, %403, %cst_113 {dimension_numbers = #tpu.dot_dimension_numbers<[1], [1], [0], [0], [0, 0, 1, 0], [], []>} : vector<8x8xbf16>, vector<8x8xbf16>, vector<8x8xf32> -> vector<8x8xf32>
    %cst_114 = arith.constant 0.353553385 : f32
    %407 = vector.broadcast %cst_114 : f32 to vector<8x8xf32>
    %408 = arith.mulf %406, %407 : vector<8x8xf32>
    %cst_115 = arith.constant -1.000000e+09 : f32
    %409 = vector.shape_cast %340 : vector<1x8xi1> to vector<1x8xi1>
    %410 = vector.broadcast %409 : vector<1x8xi1> to vector<8x8xi1>
    %411 = vector.broadcast %cst_115 : f32 to vector<8x8xf32>
    %412 = arith.select %410, %411, %408 : vector<8x8xi1>, vector<8x8xf32>
    %cst_116 = arith.constant dense<0xFF800000> : vector<8xf32>
    %413 = vector.multi_reduction <maximumf>, %412, %cst_116 [1] : vector<8x8xf32> to vector<8xf32>
    %414 = vector.shape_cast %413 : vector<8xf32> to vector<8x1xf32>
    %415 = vector.broadcast %414 : vector<8x1xf32> to vector<8x8xf32>
    %416 = arith.subf %412, %415 : vector<8x8xf32>
    %417 = math.exp %416 : vector<8x8xf32>
    %cst_117 = arith.constant dense<0.000000e+00> : vector<8xf32>
    %418 = vector.multi_reduction <add>, %417, %cst_117 [1] : vector<8x8xf32> to vector<8xf32>
    %419 = vector.shape_cast %418 : vector<8xf32> to vector<8x1xf32>
    %420 = tpu.reciprocal %419 {approx = true} : vector<8x1xf32> -> vector<8x1xf32>
    %421 = vector.broadcast %420 : vector<8x1xf32> to vector<8x8xf32>
    %422 = arith.mulf %417, %421 : vector<8x8xf32>
    %423 = arith.truncf %422 : vector<8x8xf32> to vector<8x8xbf16>
    %cst_118 = arith.constant dense<0.000000e+00> : vector<8x8xf32>
    %424 = tpu.matmul %423, %405, %cst_118 {dimension_numbers = #tpu.dot_dimension_numbers<[1], [0], [0], [1], [0, 0, 1, 1], [], []>} : vector<8x8xbf16>, vector<8x8xbf16>, vector<8x8xf32> -> vector<8x8xf32>
    %425 = arith.truncf %424 : vector<8x8xf32> to vector<8x8xbf16>
    %426 = vector.extract_strided_slice %331 {offsets = [16, 0], sizes = [8, 32], strides = [1, 1]} : vector<32x32xbf16> to vector<8x32xbf16>
    %cst_119 = arith.constant dense<0.000000e+00> : vector<8x32xf32>
    %427 = tpu.matmul %425, %426, %cst_119 {dimension_numbers = #tpu.dot_dimension_numbers<[1], [0], [0], [1], [0, 0, 1, 1], [], []>} : vector<8x8xbf16>, vector<8x32xbf16>, vector<8x32xf32> -> vector<8x32xf32>
    %428 = arith.addf %399, %427 : vector<8x32xf32>
    %429 = vector.extract_strided_slice %334 {offsets = [0, 24], sizes = [8, 8], strides = [1, 1]} : vector<8x32xf32> to vector<8x8xf32>
    %430 = arith.truncf %429 : vector<8x8xf32> to vector<8x8xbf16>
    %431 = vector.extract_strided_slice %335 {offsets = [0, 24], sizes = [8, 8], strides = [1, 1]} : vector<8x32xf32> to vector<8x8xf32>
    %432 = arith.truncf %431 : vector<8x8xf32> to vector<8x8xbf16>
    %433 = vector.extract_strided_slice %336 {offsets = [0, 24], sizes = [8, 8], strides = [1, 1]} : vector<8x32xf32> to vector<8x8xf32>
    %434 = arith.truncf %433 : vector<8x8xf32> to vector<8x8xbf16>
    %cst_120 = arith.constant dense<0.000000e+00> : vector<8x8xf32>
    %435 = tpu.matmul %430, %432, %cst_120 {dimension_numbers = #tpu.dot_dimension_numbers<[1], [1], [0], [0], [0, 0, 1, 0], [], []>} : vector<8x8xbf16>, vector<8x8xbf16>, vector<8x8xf32> -> vector<8x8xf32>
    %cst_121 = arith.constant 0.353553385 : f32
    %436 = vector.broadcast %cst_121 : f32 to vector<8x8xf32>
    %437 = arith.mulf %435, %436 : vector<8x8xf32>
    %cst_122 = arith.constant -1.000000e+09 : f32
    %438 = vector.shape_cast %340 : vector<1x8xi1> to vector<1x8xi1>
    %439 = vector.broadcast %438 : vector<1x8xi1> to vector<8x8xi1>
    %440 = vector.broadcast %cst_122 : f32 to vector<8x8xf32>
    %441 = arith.select %439, %440, %437 : vector<8x8xi1>, vector<8x8xf32>
    %cst_123 = arith.constant dense<0xFF800000> : vector<8xf32>
    %442 = vector.multi_reduction <maximumf>, %441, %cst_123 [1] : vector<8x8xf32> to vector<8xf32>
    %443 = vector.shape_cast %442 : vector<8xf32> to vector<8x1xf32>
    %444 = vector.broadcast %443 : vector<8x1xf32> to vector<8x8xf32>
    %445 = arith.subf %441, %444 : vector<8x8xf32>
    %446 = math.exp %445 : vector<8x8xf32>
    %cst_124 = arith.constant dense<0.000000e+00> : vector<8xf32>
    %447 = vector.multi_reduction <add>, %446, %cst_124 [1] : vector<8x8xf32> to vector<8xf32>
    %448 = vector.shape_cast %447 : vector<8xf32> to vector<8x1xf32>
    %449 = tpu.reciprocal %448 {approx = true} : vector<8x1xf32> -> vector<8x1xf32>
    %450 = vector.broadcast %449 : vector<8x1xf32> to vector<8x8xf32>
    %451 = arith.mulf %446, %450 : vector<8x8xf32>
    %452 = arith.truncf %451 : vector<8x8xf32> to vector<8x8xbf16>
    %cst_125 = arith.constant dense<0.000000e+00> : vector<8x8xf32>
    %453 = tpu.matmul %452, %434, %cst_125 {dimension_numbers = #tpu.dot_dimension_numbers<[1], [0], [0], [1], [0, 0, 1, 1], [], []>} : vector<8x8xbf16>, vector<8x8xbf16>, vector<8x8xf32> -> vector<8x8xf32>
    %454 = arith.truncf %453 : vector<8x8xf32> to vector<8x8xbf16>
    %455 = vector.extract_strided_slice %331 {offsets = [24, 0], sizes = [8, 32], strides = [1, 1]} : vector<32x32xbf16> to vector<8x32xbf16>
    %cst_126 = arith.constant dense<0.000000e+00> : vector<8x32xf32>
    %456 = tpu.matmul %454, %455, %cst_126 {dimension_numbers = #tpu.dot_dimension_numbers<[1], [0], [0], [1], [0, 0, 1, 1], [], []>} : vector<8x8xbf16>, vector<8x32xbf16>, vector<8x32xf32> -> vector<8x32xf32>
    %457 = arith.addf %428, %456 : vector<8x32xf32>
    %458 = vector.extract_strided_slice %320 {offsets = [8, 0], sizes = [8, 32], strides = [1, 1]} : vector<16x32xf32> to vector<8x32xf32>
    %459 = vector.extract_strided_slice %329 {offsets = [8, 0], sizes = [8, 32], strides = [1, 1]} : vector<16x32xf32> to vector<8x32xf32>
    %460 = vector.extract_strided_slice %330 {offsets = [8, 0], sizes = [8, 32], strides = [1, 1]} : vector<16x32xf32> to vector<8x32xf32>
    %c1_127 = arith.constant 1 : index
    %c0_128 = arith.constant 0 : index
    %c0_129 = arith.constant 0 : index
    %461 = vector.load %arg3[%c1_127, %c0_128, %c0_129] : memref<2x1x8xf32, #tpu.memory_space<vmem>>, vector<1x1x8xf32>
    %462 = vector.shape_cast %461 : vector<1x1x8xf32> to vector<1x8xf32>
    %cst_130 = arith.constant 0.000000e+00 : f32
    %463 = vector.broadcast %cst_130 : f32 to vector<1x8xf32>
    %464 = arith.cmpf oeq, %462, %463 : vector<1x8xf32>
    %cst_131 = arith.constant 0.000000e+00 : f32
    %465 = vector.broadcast %cst_131 : f32 to vector<8x32xf32>
    %466 = vector.extract_strided_slice %458 {offsets = [0, 0], sizes = [8, 8], strides = [1, 1]} : vector<8x32xf32> to vector<8x8xf32>
    %467 = arith.truncf %466 : vector<8x8xf32> to vector<8x8xbf16>
    %468 = vector.extract_strided_slice %459 {offsets = [0, 0], sizes = [8, 8], strides = [1, 1]} : vector<8x32xf32> to vector<8x8xf32>
    %469 = arith.truncf %468 : vector<8x8xf32> to vector<8x8xbf16>
    %470 = vector.extract_strided_slice %460 {offsets = [0, 0], sizes = [8, 8], strides = [1, 1]} : vector<8x32xf32> to vector<8x8xf32>
    %471 = arith.truncf %470 : vector<8x8xf32> to vector<8x8xbf16>
    %cst_132 = arith.constant dense<0.000000e+00> : vector<8x8xf32>
    %472 = tpu.matmul %467, %469, %cst_132 {dimension_numbers = #tpu.dot_dimension_numbers<[1], [1], [0], [0], [0, 0, 1, 0], [], []>} : vector<8x8xbf16>, vector<8x8xbf16>, vector<8x8xf32> -> vector<8x8xf32>
    %cst_133 = arith.constant 0.353553385 : f32
    %473 = vector.broadcast %cst_133 : f32 to vector<8x8xf32>
    %474 = arith.mulf %472, %473 : vector<8x8xf32>
    %cst_134 = arith.constant -1.000000e+09 : f32
    %475 = vector.shape_cast %464 : vector<1x8xi1> to vector<1x8xi1>
    %476 = vector.broadcast %475 : vector<1x8xi1> to vector<8x8xi1>
    %477 = vector.broadcast %cst_134 : f32 to vector<8x8xf32>
    %478 = arith.select %476, %477, %474 : vector<8x8xi1>, vector<8x8xf32>
    %cst_135 = arith.constant dense<0xFF800000> : vector<8xf32>
    %479 = vector.multi_reduction <maximumf>, %478, %cst_135 [1] : vector<8x8xf32> to vector<8xf32>
    %480 = vector.shape_cast %479 : vector<8xf32> to vector<8x1xf32>
    %481 = vector.broadcast %480 : vector<8x1xf32> to vector<8x8xf32>
    %482 = arith.subf %478, %481 : vector<8x8xf32>
    %483 = math.exp %482 : vector<8x8xf32>
    %cst_136 = arith.constant dense<0.000000e+00> : vector<8xf32>
    %484 = vector.multi_reduction <add>, %483, %cst_136 [1] : vector<8x8xf32> to vector<8xf32>
    %485 = vector.shape_cast %484 : vector<8xf32> to vector<8x1xf32>
    %486 = tpu.reciprocal %485 {approx = true} : vector<8x1xf32> -> vector<8x1xf32>
    %487 = vector.broadcast %486 : vector<8x1xf32> to vector<8x8xf32>
    %488 = arith.mulf %483, %487 : vector<8x8xf32>
    %489 = arith.truncf %488 : vector<8x8xf32> to vector<8x8xbf16>
    %cst_137 = arith.constant dense<0.000000e+00> : vector<8x8xf32>
    %490 = tpu.matmul %489, %471, %cst_137 {dimension_numbers = #tpu.dot_dimension_numbers<[1], [0], [0], [1], [0, 0, 1, 1], [], []>} : vector<8x8xbf16>, vector<8x8xbf16>, vector<8x8xf32> -> vector<8x8xf32>
    %491 = arith.truncf %490 : vector<8x8xf32> to vector<8x8xbf16>
    %492 = vector.extract_strided_slice %331 {offsets = [0, 0], sizes = [8, 32], strides = [1, 1]} : vector<32x32xbf16> to vector<8x32xbf16>
    %cst_138 = arith.constant dense<0.000000e+00> : vector<8x32xf32>
    %493 = tpu.matmul %491, %492, %cst_138 {dimension_numbers = #tpu.dot_dimension_numbers<[1], [0], [0], [1], [0, 0, 1, 1], [], []>} : vector<8x8xbf16>, vector<8x32xbf16>, vector<8x32xf32> -> vector<8x32xf32>
    %494 = arith.addf %465, %493 : vector<8x32xf32>
    %495 = vector.extract_strided_slice %458 {offsets = [0, 8], sizes = [8, 8], strides = [1, 1]} : vector<8x32xf32> to vector<8x8xf32>
    %496 = arith.truncf %495 : vector<8x8xf32> to vector<8x8xbf16>
    %497 = vector.extract_strided_slice %459 {offsets = [0, 8], sizes = [8, 8], strides = [1, 1]} : vector<8x32xf32> to vector<8x8xf32>
    %498 = arith.truncf %497 : vector<8x8xf32> to vector<8x8xbf16>
    %499 = vector.extract_strided_slice %460 {offsets = [0, 8], sizes = [8, 8], strides = [1, 1]} : vector<8x32xf32> to vector<8x8xf32>
    %500 = arith.truncf %499 : vector<8x8xf32> to vector<8x8xbf16>
    %cst_139 = arith.constant dense<0.000000e+00> : vector<8x8xf32>
    %501 = tpu.matmul %496, %498, %cst_139 {dimension_numbers = #tpu.dot_dimension_numbers<[1], [1], [0], [0], [0, 0, 1, 0], [], []>} : vector<8x8xbf16>, vector<8x8xbf16>, vector<8x8xf32> -> vector<8x8xf32>
    %cst_140 = arith.constant 0.353553385 : f32
    %502 = vector.broadcast %cst_140 : f32 to vector<8x8xf32>
    %503 = arith.mulf %501, %502 : vector<8x8xf32>
    %cst_141 = arith.constant -1.000000e+09 : f32
    %504 = vector.shape_cast %464 : vector<1x8xi1> to vector<1x8xi1>
    %505 = vector.broadcast %504 : vector<1x8xi1> to vector<8x8xi1>
    %506 = vector.broadcast %cst_141 : f32 to vector<8x8xf32>
    %507 = arith.select %505, %506, %503 : vector<8x8xi1>, vector<8x8xf32>
    %cst_142 = arith.constant dense<0xFF800000> : vector<8xf32>
    %508 = vector.multi_reduction <maximumf>, %507, %cst_142 [1] : vector<8x8xf32> to vector<8xf32>
    %509 = vector.shape_cast %508 : vector<8xf32> to vector<8x1xf32>
    %510 = vector.broadcast %509 : vector<8x1xf32> to vector<8x8xf32>
    %511 = arith.subf %507, %510 : vector<8x8xf32>
    %512 = math.exp %511 : vector<8x8xf32>
    %cst_143 = arith.constant dense<0.000000e+00> : vector<8xf32>
    %513 = vector.multi_reduction <add>, %512, %cst_143 [1] : vector<8x8xf32> to vector<8xf32>
    %514 = vector.shape_cast %513 : vector<8xf32> to vector<8x1xf32>
    %515 = tpu.reciprocal %514 {approx = true} : vector<8x1xf32> -> vector<8x1xf32>
    %516 = vector.broadcast %515 : vector<8x1xf32> to vector<8x8xf32>
    %517 = arith.mulf %512, %516 : vector<8x8xf32>
    %518 = arith.truncf %517 : vector<8x8xf32> to vector<8x8xbf16>
    %cst_144 = arith.constant dense<0.000000e+00> : vector<8x8xf32>
    %519 = tpu.matmul %518, %500, %cst_144 {dimension_numbers = #tpu.dot_dimension_numbers<[1], [0], [0], [1], [0, 0, 1, 1], [], []>} : vector<8x8xbf16>, vector<8x8xbf16>, vector<8x8xf32> -> vector<8x8xf32>
    %520 = arith.truncf %519 : vector<8x8xf32> to vector<8x8xbf16>
    %521 = vector.extract_strided_slice %331 {offsets = [8, 0], sizes = [8, 32], strides = [1, 1]} : vector<32x32xbf16> to vector<8x32xbf16>
    %cst_145 = arith.constant dense<0.000000e+00> : vector<8x32xf32>
    %522 = tpu.matmul %520, %521, %cst_145 {dimension_numbers = #tpu.dot_dimension_numbers<[1], [0], [0], [1], [0, 0, 1, 1], [], []>} : vector<8x8xbf16>, vector<8x32xbf16>, vector<8x32xf32> -> vector<8x32xf32>
    %523 = arith.addf %494, %522 : vector<8x32xf32>
    %524 = vector.extract_strided_slice %458 {offsets = [0, 16], sizes = [8, 8], strides = [1, 1]} : vector<8x32xf32> to vector<8x8xf32>
    %525 = arith.truncf %524 : vector<8x8xf32> to vector<8x8xbf16>
    %526 = vector.extract_strided_slice %459 {offsets = [0, 16], sizes = [8, 8], strides = [1, 1]} : vector<8x32xf32> to vector<8x8xf32>
    %527 = arith.truncf %526 : vector<8x8xf32> to vector<8x8xbf16>
    %528 = vector.extract_strided_slice %460 {offsets = [0, 16], sizes = [8, 8], strides = [1, 1]} : vector<8x32xf32> to vector<8x8xf32>
    %529 = arith.truncf %528 : vector<8x8xf32> to vector<8x8xbf16>
    %cst_146 = arith.constant dense<0.000000e+00> : vector<8x8xf32>
    %530 = tpu.matmul %525, %527, %cst_146 {dimension_numbers = #tpu.dot_dimension_numbers<[1], [1], [0], [0], [0, 0, 1, 0], [], []>} : vector<8x8xbf16>, vector<8x8xbf16>, vector<8x8xf32> -> vector<8x8xf32>
    %cst_147 = arith.constant 0.353553385 : f32
    %531 = vector.broadcast %cst_147 : f32 to vector<8x8xf32>
    %532 = arith.mulf %530, %531 : vector<8x8xf32>
    %cst_148 = arith.constant -1.000000e+09 : f32
    %533 = vector.shape_cast %464 : vector<1x8xi1> to vector<1x8xi1>
    %534 = vector.broadcast %533 : vector<1x8xi1> to vector<8x8xi1>
    %535 = vector.broadcast %cst_148 : f32 to vector<8x8xf32>
    %536 = arith.select %534, %535, %532 : vector<8x8xi1>, vector<8x8xf32>
    %cst_149 = arith.constant dense<0xFF800000> : vector<8xf32>
    %537 = vector.multi_reduction <maximumf>, %536, %cst_149 [1] : vector<8x8xf32> to vector<8xf32>
    %538 = vector.shape_cast %537 : vector<8xf32> to vector<8x1xf32>
    %539 = vector.broadcast %538 : vector<8x1xf32> to vector<8x8xf32>
    %540 = arith.subf %536, %539 : vector<8x8xf32>
    %541 = math.exp %540 : vector<8x8xf32>
    %cst_150 = arith.constant dense<0.000000e+00> : vector<8xf32>
    %542 = vector.multi_reduction <add>, %541, %cst_150 [1] : vector<8x8xf32> to vector<8xf32>
    %543 = vector.shape_cast %542 : vector<8xf32> to vector<8x1xf32>
    %544 = tpu.reciprocal %543 {approx = true} : vector<8x1xf32> -> vector<8x1xf32>
    %545 = vector.broadcast %544 : vector<8x1xf32> to vector<8x8xf32>
    %546 = arith.mulf %541, %545 : vector<8x8xf32>
    %547 = arith.truncf %546 : vector<8x8xf32> to vector<8x8xbf16>
    %cst_151 = arith.constant dense<0.000000e+00> : vector<8x8xf32>
    %548 = tpu.matmul %547, %529, %cst_151 {dimension_numbers = #tpu.dot_dimension_numbers<[1], [0], [0], [1], [0, 0, 1, 1], [], []>} : vector<8x8xbf16>, vector<8x8xbf16>, vector<8x8xf32> -> vector<8x8xf32>
    %549 = arith.truncf %548 : vector<8x8xf32> to vector<8x8xbf16>
    %550 = vector.extract_strided_slice %331 {offsets = [16, 0], sizes = [8, 32], strides = [1, 1]} : vector<32x32xbf16> to vector<8x32xbf16>
    %cst_152 = arith.constant dense<0.000000e+00> : vector<8x32xf32>
    %551 = tpu.matmul %549, %550, %cst_152 {dimension_numbers = #tpu.dot_dimension_numbers<[1], [0], [0], [1], [0, 0, 1, 1], [], []>} : vector<8x8xbf16>, vector<8x32xbf16>, vector<8x32xf32> -> vector<8x32xf32>
    %552 = arith.addf %523, %551 : vector<8x32xf32>
    %553 = vector.extract_strided_slice %458 {offsets = [0, 24], sizes = [8, 8], strides = [1, 1]} : vector<8x32xf32> to vector<8x8xf32>
    %554 = arith.truncf %553 : vector<8x8xf32> to vector<8x8xbf16>
    %555 = vector.extract_strided_slice %459 {offsets = [0, 24], sizes = [8, 8], strides = [1, 1]} : vector<8x32xf32> to vector<8x8xf32>
    %556 = arith.truncf %555 : vector<8x8xf32> to vector<8x8xbf16>
    %557 = vector.extract_strided_slice %460 {offsets = [0, 24], sizes = [8, 8], strides = [1, 1]} : vector<8x32xf32> to vector<8x8xf32>
    %558 = arith.truncf %557 : vector<8x8xf32> to vector<8x8xbf16>
    %cst_153 = arith.constant dense<0.000000e+00> : vector<8x8xf32>
    %559 = tpu.matmul %554, %556, %cst_153 {dimension_numbers = #tpu.dot_dimension_numbers<[1], [1], [0], [0], [0, 0, 1, 0], [], []>} : vector<8x8xbf16>, vector<8x8xbf16>, vector<8x8xf32> -> vector<8x8xf32>
    %cst_154 = arith.constant 0.353553385 : f32
    %560 = vector.broadcast %cst_154 : f32 to vector<8x8xf32>
    %561 = arith.mulf %559, %560 : vector<8x8xf32>
    %cst_155 = arith.constant -1.000000e+09 : f32
    %562 = vector.shape_cast %464 : vector<1x8xi1> to vector<1x8xi1>
    %563 = vector.broadcast %562 : vector<1x8xi1> to vector<8x8xi1>
    %564 = vector.broadcast %cst_155 : f32 to vector<8x8xf32>
    %565 = arith.select %563, %564, %561 : vector<8x8xi1>, vector<8x8xf32>
    %cst_156 = arith.constant dense<0xFF800000> : vector<8xf32>
    %566 = vector.multi_reduction <maximumf>, %565, %cst_156 [1] : vector<8x8xf32> to vector<8xf32>
    %567 = vector.shape_cast %566 : vector<8xf32> to vector<8x1xf32>
    %568 = vector.broadcast %567 : vector<8x1xf32> to vector<8x8xf32>
    %569 = arith.subf %565, %568 : vector<8x8xf32>
    %570 = math.exp %569 : vector<8x8xf32>
    %cst_157 = arith.constant dense<0.000000e+00> : vector<8xf32>
    %571 = vector.multi_reduction <add>, %570, %cst_157 [1] : vector<8x8xf32> to vector<8xf32>
    %572 = vector.shape_cast %571 : vector<8xf32> to vector<8x1xf32>
    %573 = tpu.reciprocal %572 {approx = true} : vector<8x1xf32> -> vector<8x1xf32>
    %574 = vector.broadcast %573 : vector<8x1xf32> to vector<8x8xf32>
    %575 = arith.mulf %570, %574 : vector<8x8xf32>
    %576 = arith.truncf %575 : vector<8x8xf32> to vector<8x8xbf16>
    %cst_158 = arith.constant dense<0.000000e+00> : vector<8x8xf32>
    %577 = tpu.matmul %576, %558, %cst_158 {dimension_numbers = #tpu.dot_dimension_numbers<[1], [0], [0], [1], [0, 0, 1, 1], [], []>} : vector<8x8xbf16>, vector<8x8xbf16>, vector<8x8xf32> -> vector<8x8xf32>
    %578 = arith.truncf %577 : vector<8x8xf32> to vector<8x8xbf16>
    %579 = vector.extract_strided_slice %331 {offsets = [24, 0], sizes = [8, 32], strides = [1, 1]} : vector<32x32xbf16> to vector<8x32xbf16>
    %cst_159 = arith.constant dense<0.000000e+00> : vector<8x32xf32>
    %580 = tpu.matmul %578, %579, %cst_159 {dimension_numbers = #tpu.dot_dimension_numbers<[1], [0], [0], [1], [0, 0, 1, 1], [], []>} : vector<8x8xbf16>, vector<8x32xbf16>, vector<8x32xf32> -> vector<8x32xf32>
    %581 = arith.addf %552, %580 : vector<8x32xf32>
    %582 = tpu.concatenate %457, %581 in 0 : vector<8x32xf32>, vector<8x32xf32> -> vector<16x32xf32>
    %583 = vector.shape_cast %333 : vector<32xf32> to vector<1x32xf32>
    %584 = vector.broadcast %583 : vector<1x32xf32> to vector<16x32xf32>
    %585 = arith.addf %582, %584 : vector<16x32xf32>
    %586 = arith.addf %283, %585 : vector<16x32xf32>
    %587 = vector.extract_strided_slice %2 {offsets = [4, 0], sizes = [1, 32], strides = [1, 1]} : vector<6x32xf32> to vector<1x32xf32>
    %588 = vector.shape_cast %587 : vector<1x32xf32> to vector<32xf32>
    %589 = vector.extract_strided_slice %2 {offsets = [5, 0], sizes = [1, 32], strides = [1, 1]} : vector<6x32xf32> to vector<1x32xf32>
    %590 = vector.shape_cast %589 : vector<1x32xf32> to vector<32xf32>
    %cst_160 = arith.constant dense<0.000000e+00> : vector<16xf32>
    %591 = vector.multi_reduction <add>, %586, %cst_160 [1] : vector<16x32xf32> to vector<16xf32>
    %592 = vector.shape_cast %591 : vector<16xf32> to vector<16x1xf32>
    %cst_161 = arith.constant 3.200000e+01 : f32
    %593 = vector.broadcast %cst_161 : f32 to vector<16x1xf32>
    %594 = arith.divf %592, %593 : vector<16x1xf32>
    %595 = vector.broadcast %594 : vector<16x1xf32> to vector<16x32xf32>
    %596 = arith.subf %586, %595 : vector<16x32xf32>
    %597 = arith.mulf %596, %596 : vector<16x32xf32>
    %cst_162 = arith.constant dense<0.000000e+00> : vector<16xf32>
    %598 = vector.multi_reduction <add>, %597, %cst_162 [1] : vector<16x32xf32> to vector<16xf32>
    %599 = vector.shape_cast %598 : vector<16xf32> to vector<16x1xf32>
    %cst_163 = arith.constant 0.0322580636 : f32
    %600 = vector.broadcast %cst_163 : f32 to vector<16x1xf32>
    %601 = arith.mulf %599, %600 : vector<16x1xf32>
    %602 = math.sqrt %601 : vector<16x1xf32>
    %cst_164 = arith.constant 9.99999997E-7 : f32
    %603 = vector.broadcast %cst_164 : f32 to vector<16x1xf32>
    %604 = arith.addf %602, %603 : vector<16x1xf32>
    %605 = tpu.reciprocal %604 {approx = true} : vector<16x1xf32> -> vector<16x1xf32>
    %606 = vector.shape_cast %588 : vector<32xf32> to vector<1x32xf32>
    %607 = vector.broadcast %594 : vector<16x1xf32> to vector<16x32xf32>
    %608 = arith.subf %586, %607 : vector<16x32xf32>
    %609 = vector.broadcast %606 : vector<1x32xf32> to vector<16x32xf32>
    %610 = arith.mulf %609, %608 : vector<16x32xf32>
    %611 = vector.broadcast %605 : vector<16x1xf32> to vector<16x32xf32>
    %612 = arith.mulf %610, %611 : vector<16x32xf32>
    %613 = vector.shape_cast %590 : vector<32xf32> to vector<1x32xf32>
    %614 = vector.broadcast %613 : vector<1x32xf32> to vector<16x32xf32>
    %615 = arith.addf %612, %614 : vector<16x32xf32>
    %616 = arith.truncf %615 : vector<16x32xf32> to vector<16x32xbf16>
    %c0_165 = arith.constant 0 : index
    %c0_166 = arith.constant 0 : index
    %617 = vector.load %arg11[%c0_165, %c0_166] : memref<32x128xbf16, #tpu.memory_space<vmem>>, vector<32x128xbf16>
    %cst_167 = arith.constant dense<0.000000e+00> : vector<16x128xf32>
    %618 = tpu.matmul %616, %617, %cst_167 {dimension_numbers = #tpu.dot_dimension_numbers<[1], [0], [0], [1], [0, 0, 1, 1], [], []>} : vector<16x32xbf16>, vector<32x128xbf16>, vector<16x128xf32> -> vector<16x128xf32>
    %619 = vector.extract_strided_slice %3 {offsets = [5, 0], sizes = [1, 128], strides = [1, 1]} : vector<7x128xf32> to vector<1x128xf32>
    %620 = vector.shape_cast %619 : vector<1x128xf32> to vector<128xf32>
    %621 = vector.shape_cast %620 : vector<128xf32> to vector<1x128xf32>
    %622 = vector.broadcast %621 : vector<1x128xf32> to vector<16x128xf32>
    %623 = arith.addf %618, %622 : vector<16x128xf32>
    %cst_168 = arith.constant 0.000000e+00 : f32
    %624 = vector.broadcast %cst_168 : f32 to vector<16x128xf32>
    %625 = arith.maximumf %623, %624 : vector<16x128xf32>
    %626 = arith.truncf %625 : vector<16x128xf32> to vector<16x128xbf16>
    %c0_169 = arith.constant 0 : index
    %c0_170 = arith.constant 0 : index
    %627 = vector.load %arg12[%c0_169, %c0_170] : memref<128x32xbf16, #tpu.memory_space<vmem>>, vector<128x32xbf16>
    %cst_171 = arith.constant dense<0.000000e+00> : vector<16x32xf32>
    %628 = tpu.matmul %626, %627, %cst_171 {dimension_numbers = #tpu.dot_dimension_numbers<[1], [0], [0], [1], [0, 0, 1, 1], [], []>} : vector<16x128xbf16>, vector<128x32xbf16>, vector<16x32xf32> -> vector<16x32xf32>
    %629 = vector.extract_strided_slice %3 {offsets = [6, 0], sizes = [1, 32], strides = [1, 1]} : vector<7x128xf32> to vector<1x32xf32>
    %630 = vector.shape_cast %629 : vector<1x32xf32> to vector<32xf32>
    %631 = vector.shape_cast %630 : vector<32xf32> to vector<1x32xf32>
    %632 = vector.broadcast %631 : vector<1x32xf32> to vector<16x32xf32>
    %633 = arith.addf %628, %632 : vector<16x32xf32>
    %634 = arith.addf %586, %633 : vector<16x32xf32>
    %c0_172 = arith.constant 0 : index
    %c0_173 = arith.constant 0 : index
    %635 = vector.load %arg13[%c0_172, %c0_173] : memref<16x32xf32, #tpu.memory_space<vmem>>, vector<16x32xf32>
    tpu.vector_store %arg13[%c0_172, %c0_173], %634 {strides = array<i32>} : memref<16x32xf32, #tpu.memory_space<vmem>>, vector<16x32xf32>,
    return
  }
}

</mosaic_0001>

<bundles_post_ra>
// kernel: tpu_custom_call.1
= control target key start
LH: loop header
LB: loop body
LE: loop exit
PB: predicated region body
PF: predicated region fallthrough
CT: control target
= control target key end

     0   :  { %18 = vsyncpa [#allocation3], 0  ;;  %s4891_s0 = inlined_call_operand.vmem [shape: f32[16,32], index: 0, kind: input, shape index: {}]   ;;  %s4892_s1 = inlined_call_operand.vmem [shape: f32[16,32], index: 1, kind: input, shape index: {}]   ;;  %s4893_s2 = inlined_call_operand.vmem [shape: f32[2,8,8], index: 2, kind: input, shape index: {}]   ;;  %s4894_s3 = inlined_call_operand.vmem [shape: f32[2,1,8], index: 3, kind: input, shape index: {}]   ;;  %s4895_s4 = inlined_call_operand.hbm [shape: f32[6,32], index: 4, kind: input, shape index: {}]   ;;  %s4896_s5 = inlined_call_operand.hbm [shape: f32[7,128], index: 5, kind: input, shape index: {}]   ;;  %s4897_s6 = inlined_call_operand.vmem [shape: bf16[32,96], index: 6, kind: input, shape index: {}]   ;;  %s4898_s7 = inlined_call_operand.vmem [shape: bf16[32,32], index: 7, kind: input, shape index: {}]   ;;  %s4899_s8 = inlined_call_operand.hbm [shape: bf16[32,32], index: 8, kind: input, shape index: {}]   ;;  %s4900_s9 = inlined_call_operand.vmem [shape: bf16[32,64], index: 9, kind: input, shape index: {}]   ;;  %s4901_s10 = inlined_call_operand.hbm [shape: bf16[32,32], index: 10, kind: input, shape index: {}]   ;;  %s4902_s11 = inlined_call_operand.hbm [shape: bf16[32,128], index: 11, kind: input, shape index: {}]   ;;  %s4903_s12 = inlined_call_operand.vmem [shape: bf16[128,32], index: 12, kind: input, shape index: {}]   ;;  %s4904_s13 = inlined_call_operand.hbm [shape: f32[16,32], index: 13, kind: output, shape index: {}]  }
   0x1   :  { %19 = vsyncpa [#allocation6], 0 }
   0x2   :  { %20 = vsyncpa [#allocation9], 0 }
   0x3   :  { %21 = vsyncpa [#allocation4], 0  ;;  %s4043_s25 = smov [#allocation5]   ;;  %s3903_s29 = scalar_lea.hbm %s4896_s5, 128 }
   0x4   :  { %s46_s26 = sshll.u32 %s4043_s25, 4  ;;  %p3904_p0 = scmp.ne.s32.totalorder %s4896_s5, %s3903_s29  ;;  %s47_s26 = int_to_ptr.vmem [resolvable:$true] %s46_s26 }
   0x5   :  { %p3907_p1 = scmp.lt.u32.totalorder %s3903_s29, %s4896_s5 }
   0x7   :  { %p3909_p2 = pnand %p3907_p1, %p3904_p0 }
   0x9   :  { %3912 = shalt.err (!%p3909_p2)
}
   0xa   :  { %s3913_s17 = scalar_lea.vmem %s47_s26, 128  ;;  %p3918_p4 = scmp.lt.s32.totalorder %s47_s26, %s47_s26 }
   0xb   :  { %p3914_p3 = scmp.ne.s32.totalorder %s47_s26, %s3913_s17  ;;  %p3919_p5 = scmp.lt.s32.totalorder %s3913_s17, %s3913_s17 }
   0xd   :  { %p3920_p6 = por %p3919_p5, %p3918_p4 }
   0xf   :  { %p3921_p7 = pnand %p3920_p6, %p3914_p3 }
  0x11   :  { %3924 = shalt.err (!%p3921_p7)
}
  0x12   :  { %49 = dma.hbm_to_vmem [thread:$0]  %s4896_s5, 128, %s47_s26, [#allocation6]  }
  0x13   :  { %s4044_s20 = smov [#allocation8]   ;;  %s4045_s22 = smov [#allocation2]  }
  0x14   :  { %s73_s21 = sshll.u32 %s4044_s20, 4  ;;  %s36_s23 = sshll.u32 %s4045_s22, 4  ;;  %s74_s21 = int_to_ptr.vmem [resolvable:$true] %s73_s21  ;;  %s37_s23 = int_to_ptr.vmem [resolvable:$true] %s36_s23 }
  0x15   :  { %s3925_s27 = scalar_lea.hbm %s4901_s10, 256 }
  0x16   :  { %p3926_p8 = scmp.ne.s32.totalorder %s4901_s10, %s3925_s27  ;;  %p3929_p9 = scmp.lt.u32.totalorder %s3925_s27, %s4901_s10 }
  0x18   :  { %p3931_p10 = pnand %p3929_p9, %p3926_p8 }
  0x1a   :  { %3934 = shalt.err (!%p3931_p10)
}
  0x1b   :  { %s3935_s5 = scalar_lea.vmem %s74_s21, 256  ;;  %p3940_p12 = scmp.lt.s32.totalorder %s74_s21, %s74_s21 }
  0x1c   :  { %p3936_p11 = scmp.ne.s32.totalorder %s74_s21, %s3935_s5  ;;  %p3941_p13 = scmp.lt.s32.totalorder %s3935_s5, %s3935_s5 }
  0x1e   :  { %p3942_p0 = por %p3941_p13, %p3940_p12 }
  0x20   :  { %p3943_p1 = pnand %p3942_p0, %p3936_p11 }
  0x22   :  { %3946 = shalt.err (!%p3943_p1)
}
  0x23   :  { %s4046_s26 = smov 64   ;;  %s4047_s15 = smov 4  }
  0x24   :  { %79 = dma.hbm_to_vmem [thread:$0]  %s4901_s10, 256, %s74_s21, [#allocation9], %s4046_s26, %s4046_s26, %s4047_s15  }
  0x25   :  { %s3947_s20 = scalar_lea.hbm %s4895_s4, 128 }
  0x26   :  { %p3948_p2 = scmp.ne.s32.totalorder %s4895_s4, %s3947_s20  ;;  %p3951_p3 = scmp.lt.u32.totalorder %s3947_s20, %s4895_s4 }
  0x28   :  { %p3953_p4 = pnand %p3951_p3, %p3948_p2 }
  0x2a   :  { %3956 = shalt.err (!%p3953_p4)
}
  0x2b   :  { %s3957_s28 = scalar_lea.vmem %s37_s23, 128  ;;  %p3962_p6 = scmp.lt.s32.totalorder %s37_s23, %s37_s23 }
  0x2c   :  { %p3958_p5 = scmp.ne.s32.totalorder %s37_s23, %s3957_s28  ;;  %p3963_p7 = scmp.lt.s32.totalorder %s3957_s28, %s3957_s28 }
  0x2e   :  { %p3964_p8 = por %p3963_p7, %p3962_p6 }
  0x30   :  { %p3965_p9 = pnand %p3964_p8, %p3958_p5 }
  0x32   :  { %3968 = shalt.err (!%p3965_p9)
}
  0x33   :  { %39 = dma.hbm_to_vmem [thread:$0]  %s4895_s4, 128, %s37_s23, [#allocation3]  }
  0x34   :  { %s4048_s29 = smov [#allocation7]   ;;  %s4049_s14 = smov [#allocation10]  }
  0x35   :  { %s59_s30 = sshll.u32 %s4048_s29, 4  ;;  %s85_s5 = sshll.u32 %s4049_s14, 4  ;;  %s60_s30 = int_to_ptr.vmem [resolvable:$true] %s59_s30  ;;  %s86_s5 = int_to_ptr.vmem [resolvable:$true] %s85_s5 }
  0x36   :  { %s3969_s18 = scalar_lea.hbm %s4899_s8, 256 }
  0x37   :  { %p3970_p10 = scmp.ne.s32.totalorder %s4899_s8, %s3969_s18  ;;  %p3973_p11 = scmp.lt.u32.totalorder %s3969_s18, %s4899_s8 }
  0x39   :  { %p3975_p12 = pnand %p3973_p11, %p3970_p10 }
  0x3b   :  { %3978 = shalt.err (!%p3975_p12)
}
  0x3c   :  { %s3979_s4 = scalar_lea.vmem %s60_s30, 256  ;;  %p3984_p0 = scmp.lt.s32.totalorder %s60_s30, %s60_s30 }
  0x3d   :  { %p3980_p13 = scmp.ne.s32.totalorder %s60_s30, %s3979_s4  ;;  %p3985_p1 = scmp.lt.s32.totalorder %s3979_s4, %s3979_s4 }
  0x3f   :  { %p3986_p2 = por %p3985_p1, %p3984_p0 }
  0x41   :  { %p3987_p3 = pnand %p3986_p2, %p3980_p13 }
  0x43   :  { %3990 = shalt.err (!%p3987_p3)
}
  0x44   :  { %65 = dma.hbm_to_vmem [thread:$0]  %s4899_s8, 256, %s60_s30, [#allocation6], %s4046_s26, %s4046_s26, %s4047_s15  }
  0x45   :  { %s3991_s10 = scalar_lea.hbm %s4902_s11, 256 }
  0x46   :  { %p3992_p4 = scmp.ne.s32.totalorder %s4902_s11, %s3991_s10  ;;  %p3995_p5 = scmp.lt.u32.totalorder %s3991_s10, %s4902_s11 }
  0x48   :  { %p3997_p6 = pnand %p3995_p5, %p3992_p4 }
  0x4a   :  { %4000 = shalt.err (!%p3997_p6)
}
  0x4b   :  { %s4001_s17 = scalar_lea.vmem %s86_s5, 256  ;;  %p4006_p8 = scmp.lt.s32.totalorder %s86_s5, %s86_s5 }
  0x4c   :  { %p4002_p7 = scmp.ne.s32.totalorder %s86_s5, %s4001_s17  ;;  %p4007_p9 = scmp.lt.s32.totalorder %s4001_s17, %s4001_s17 }
  0x4e   :  { %p4008_p10 = por %p4007_p9, %p4006_p8 }
  0x50   :  { %p4009_p11 = pnand %p4008_p10, %p4002_p7 }
  0x52   :  { %4012 = shalt.err (!%p4009_p11)
}
  0x53   :  { %91 = dma.hbm_to_vmem [thread:$0]  %s4902_s11, 256, %s86_s5, [#allocation9], %s4046_s26, %s4046_s26, %s4047_s15  }
  0x54   :  { %4035 = dma.done.wait [#allocation3], 128  }
  0x55   :  { %4036 = vsyncadd [#allocation3], 4294967168 }
  0x56   :  { %4037 = dma.done.wait [#allocation6], 384  }
  0x57   :  { %4038 = vsyncadd [#allocation6], 4294966912 }
  0x58   :  { %4039 = dma.done.wait [#allocation9], 512  }
  0x59   :  { %4040 = vsyncadd [#allocation9], 4294966784  ;;  %vm116_vm0 = vcmask 261120   ;;  %v4208_v0 = vld [vmem:[%s4891_s0] sm:$0xff]  ;;  %v111_v1 = vld [vmem:[%s4891_s0 + $0x8] sm:$0xff]  ;;  %v4050_v15 = vmov 0.0   ;;  %v156_v23 = vlaneseq }
  0x5a   :  { %v117_v2 = vsel %vm116_vm0, %v4208_v0, 0.0  ;;  %v120_v3 = vsel %vm116_vm0, %v111_v1, 0.0  ;;  %v3795_v14 = vld [vmem:[%s4897_s6] sm:$0xff]   ;;  %3432 = vmatprep.subr.bf16.mxu1 %v4050_v15  ;;  %vm4051_vm1 = vmmov 0   ;;  %v3796_v16 = vld [vmem:[%s4897_s6 + $0x8] sm:$0xff]   ;;  %3458 = vmatprep.subr.bf16.mxu0 %v4050_v15  ;;  %s4052_s6 = smov 96  }
  0x5b   :  { %118 = vadd.xlane.f32.xlu0 %v117_v2  ;;  %3436 = vmatprep.mubr.msk.bf16.mxu1 %vm4051_vm1, %v4050_v15  ;;  %v4233_v30 = vshrl.u32 %v156_v23, 7  ;;  %v4238_v36 = vld [vmem:[#allocation2] sm:$0x3f]  ;;  %v4249_v49 = vld [vmem:[#allocation5] sm:$0x7f]  ;;  %s4053_s4 = smov 88  }
  0x5c   :  { %3433 = vmatpush3.bf16.msra.mxu1 %v3795_v14  ;;  %3460 = vmatprep.mubr.msk.bf16.mxu0 %vm4051_vm1, %v4050_v15  ;;  %vm245_vm6 = vcmask 64512   ;;  %v4270_v60 = vld [vmem:[%s4893_s2] sm:$0xff]  ;;  %s4054_s27 = smov 120   ;;  %vm311_vm8 = vcmask 1043456   ;;  %s4055_s28 = smov 56  }
  0x5d   :  { %3434 = vmatprep.subr.bf16.mxu1 %v4050_v15  ;;  %v4236_v35 = vsub.s32 0, %v4233_v30  ;;  %v166_v38 = vsub.s32 1, %v4233_v30  ;;  %vm240_vm7 = vcmp.eq.f32.partialorder %v4270_v60, 0.0  ;;  %s4056_s10 = smov 112   ;;  %s4057_s21 = smov 80  }
  0x5e   :  { %s4058_s8 = smov 72   ;;  %s4059_s30 = smov 104  }
  0x5f   :  { %121 = vadd.xlane.f32.xlu0 %v120_v3  ;;  %v159_v37 = vrot.slane %v4238_v36, %v4236_v35  ;;  %v167_v43 = vrot.slane %v4238_v36, %v166_v38  ;;  %v178_v50 = vrot.slane %v4249_v49, %v4236_v35  ;;  %s4060_s18 = smov 48   ;;  %s4061_s22 = smov 40  }
  0x60   :  { %3435 = vmatpush3.bf16.msra.mxu1 %v3796_v16 }
  0x61   :  { %3440 = vmatprep.subr.bf16.mxu1 %v4050_v15 }
  0xe8   :  { %v119_v4 = vpop.xlane.xlu0 %118 }
  0xe9   :  { %v124_v5 = vmul.f32 0.03125, %v119_v4 }
  0xeb   :  { %v126_v6 = vsub.f32 %v4208_v0, %v124_v5 }
  0xec   :  { %v122_v7 = vpop.xlane.xlu0 %121 }
  0xed   :  { %v125_v8 = vmul.f32 0.03125, %v122_v7  ;;  %v128_v9 = vmul.f32 %v126_v6, %v126_v6  ;;  %v160_v40 = vmul.f32 %v159_v37, %v126_v6 }
  0xef   :  { %v127_v10 = vsub.f32 %v111_v1, %v125_v8  ;;  %v130_v11 = vsel %vm116_vm0, %v128_v9, 0.0 }
  0xf0   :  { %131 = vadd.xlane.f32.xlu1 %v130_v11 }
  0xf1   :  { %v129_v12 = vmul.f32 %v127_v10, %v127_v10  ;;  %v161_v41 = vmul.f32 %v159_v37, %v127_v10 }
  0xf3   :  { %v133_v13 = vsel %vm116_vm0, %v129_v12, 0.0 }
  0xf4   :  { %134 = vadd.xlane.f32.xlu1 %v133_v13 }
 0x17d   :  { %v132_v17 = vpop.xlane.xlu1 %131 }
 0x17e   :  { %v136_v18 = vmul.f32 0.032258064, %v132_v17 }
 0x180   :  { %3811 = vrsqrt.f32 %v136_v18  ;;  %vm140_vm2 = vcmp.eq.f32.partialorder %v136_v18, inf  ;;  %v143_v24 = vand.u32 2147483648, %v136_v18  ;;  %vm142_vm3 = vcmp.eq.f32.partialorder %v136_v18, 0.0 }
 0x181   :  { %v135_v19 = vpop.xlane.xlu1 %134 }
 0x182   :  { %v137_v20 = vmul.f32 0.032258064, %v135_v19 }
 0x184   :  { %3813 = vrsqrt.f32 %v137_v20  ;;  %vm147_vm4 = vcmp.eq.f32.partialorder %v137_v20, inf  ;;  %v150_v31 = vand.u32 2147483648, %v137_v20  ;;  %vm149_vm5 = vcmp.eq.f32.partialorder %v137_v20, 0.0 }
 0x18a   :  { %v3812_v21 = vpop.eup %3811 }
 0x18b   :  { %v139_v22 = vmul.f32 %v3812_v21, %v136_v18 }
 0x18d   :  { %v141_v25 = vsel %vm140_vm2, %v136_v18, %v139_v22 }
 0x18e   :  { %v3814_v26 = vpop.eup %3813  ;;  %v144_v27 = vsel %vm142_vm3, %v143_v24, %v141_v25 }
 0x18f   :  { %v152_v28 = vadd.f32 1e-06, %v144_v27  ;;  %v146_v29 = vmul.f32 %v3814_v26, %v137_v20 }
 0x191   :  { %3815 = vrcp.f32 %v152_v28  ;;  %v148_v32 = vsel %vm147_vm4, %v137_v20, %v146_v29 }
 0x192   :  { %v151_v33 = vsel %vm149_vm5, %v150_v31, %v148_v32 }
 0x193   :  { %v153_v34 = vadd.f32 1e-06, %v151_v33 }
 0x195   :  { %3817 = vrcp.f32 %v153_v34 }
 0x19b   :  { %v3816_v39 = vpop.eup %3815 }
 0x19c   :  { %v162_v42 = vmul.f32 %v3816_v39, %v160_v40 }
 0x19e   :  { %v168_v46 = vadd.f32 %v167_v43, %v162_v42  ;;  %v236_v42 = vld [vmem:[%s4898_s7 + $0x4] sm:$0xf] }
 0x19f   :  { %v3818_v44 = vpop.eup %3817 }
 0x1a0   :  { %v163_v45 = vmul.f32 %v3818_v44, %v161_v41 }
 0x1a2   :  { %v169_v47 = vadd.f32 %v167_v43, %v163_v45  ;;  %v4307_v43 = vsel %vm311_vm8, %v236_v42, 0 }
 0x1a4   :  { %v170_v48 = vpack.c.bf16 %v169_v47, %v168_v46  ;;  %v235_v46 = vld [vmem:[%s4898_s7] sm:$0xf] }
 0x1a6   :  { %3437 = vmatmul.mubr.msk.bf16.vlgmr.msra.gmra.mrb[0].mxu1 %vm116_vm0, %v170_v48 }
 0x1a7   :  { %3442 = vmatprep.mubr.msk.bf16.mxu1 %vm4051_vm1, %v4050_v15 }
 0x279   :  { %v228_v51 = vpop.f32.mrb[0].mxu1 }
 0x27a   :  { %v229_v52 = vadd.f32 %v228_v51, %v178_v50  ;;  %v3438_v53 = vpop.f32.mrb[1].mxu1 }
 0x27b   :  { %v231_v54 = vpop.f32.mrb[2].mxu1 }
 0x27c   :  { %v4253_v55 = vpack.c.bf16 %v229_v52, %v229_v52  ;;  %v4255_v56 = vadd.f32 %v231_v54, %v178_v50  ;;  %v3439_v57 = vpop.f32.mrb[3].mxu1  ;;  %v4315_v50 = vsel %vm311_vm8, %v235_v46, 0 }
 0x27e   :  { %243 = vrot.lane.b32.xlu0 %v4253_v55, %s4052_s6 }
 0x282   :  { %358 = vrot.lane.b32.xlu0 %v4253_v55, %s4053_s4 }
 0x2f0   :  { %v244_v58 = vpop.permute.xlu0 %243 }
 0x2f1   :  { %v250_v59 = vsel %vm245_vm6, %v244_v58, 0 }
 0x2f2   :  { %3441 = vmatpush3.bf16.xpose.msra.mxu1 %v250_v59 }
 0x2f3   :  { %3446 = vmatprep.subr.bf16.mxu1 %v4050_v15 }
 0x2f4   :  { %v359_v16 = vpop.permute.xlu0 %358 }
 0x2f5   :  { %v364_v18 = vsel %vm245_vm6, %v359_v16, 0 }
 0x2f9   :  { %3443 = vmatmul.mubr.msk.bf16.vlgmr.msra.gmra.mrb[4].mxu1 %vm245_vm6, %v4253_v55 }
 0x2fa   :  { %3448 = vmatprep.mubr.msk.bf16.mxu1 %vm4051_vm1, %v4050_v15 }
 0x3cc   :  { %v286_v61 = vpop.f32.mrb[4].mxu1 }
 0x3cd   :  { %v292_v62 = vmul.f32 0.35355338, %v286_v61  ;;  %v3444_v63 = vpop.f32.mrb[5].mxu1 }
 0x3ce   :  { %v289_v1 = vpop.f32.mrb[6].mxu1 }
 0x3cf   :  { %v3445_v2 = vpop.f32.mrb[7].mxu1  ;;  %v293_v3 = vsel %vm240_vm7, -1e+09, %v292_v62 }
 0x3d0   :  { %v294_v4 = vsel %vm245_vm6, %v293_v3, -inf }
 0x3d1   :  { %295 = vmax.xlane.f32.xlu1 %v294_v4 }
 0x45e   :  { %v296_v5 = vpop.xlane.xlu1 %295 }
 0x45f   :  { %v297_v6 = vsub.f32 %v293_v3, %v296_v5 }
 0x461   :  { %v298_v7 = vmul.f32 1.442695, %v297_v6 }
 0x463   :  { %3819 = vpow2.f32 %v298_v7 }
 0x46d   :  { %v3820_v8 = vpop.eup %3819 }
 0x46e   :  { %v300_v9 = vsel %vm245_vm6, %v3820_v8, 0.0 }
 0x46f   :  { %301 = vadd.xlane.f32.xlu1 %v300_v9 }
 0x480   :  { %306 = vrot.lane.b32.xlu1 %v4253_v55, %s4046_s26 }
 0x484   :  { %356 = vrot.lane.b32.xlu1 %v4253_v55, %s4054_s27 }
 0x4fc   :  { %v302_v10 = vpop.xlane.xlu1 %301 }
 0x4fd   :  { %3821 = vrcp.f32 %v302_v10 }
 0x500   :  { %v307_v11 = vpop.permute.xlu1 %306 }
 0x501   :  { %v313_v12 = vsel %vm311_vm8, %v307_v11, 0 }
 0x502   :  { %3447 = vmatpush3.bf16.msra.mxu1 %v313_v12 }
 0x503   :  { %3452 = vmatprep.subr.bf16.mxu1 %v4050_v15 }
 0x504   :  { %v357_v19 = vpop.permute.xlu1 %356 }
 0x507   :  { %v3822_v13 = vpop.eup %3821 }
 0x508   :  { %v304_v14 = vmul.f32 %v3822_v13, %v3820_v8 }
 0x50a   :  { %v305_v17 = vpack.c.bf16 %v304_v14, %v304_v14 }
 0x50c   :  { %3449 = vmatmul.mubr.msk.bf16.vlgmr.msra.gmra.mrb[8].mxu1 %vm245_vm6, %v305_v17 }
 0x50d   :  { %3453 = vmatpush3.bf16.xpose.msra.mxu1 %v364_v18  ;;  %3454 = vmatprep.mubr.msk.bf16.mxu1 %vm4051_vm1, %v4050_v15 }
 0x50e   :  { %3464 = vmatprep.subr.bf16.mxu1 %v4050_v15 }
 0x514   :  { %3455 = vmatmul.mubr.msk.bf16.vlgmr.msra.gmra.mrb[12].mxu1 %vm245_vm6, %v357_v19 }
 0x515   :  { %3466 = vmatprep.mubr.msk.bf16.mxu1 %vm4051_vm1, %v4050_v15  ;;  %3465 = vmatpush3.bf16.msra.mxu1 %v4307_v43 }
 0x516   :  { %3476 = vmatprep.subr.bf16.mxu1 %v4050_v15 }
 0x5df   :  { %v349_v20 = vpop.f32.mrb[8].mxu1 }
 0x5e0   :  { %v3450_v21 = vpop.f32.mrb[9].mxu1  ;;  %v355_v51 = vpack.c.bf16 %v349_v20, %v349_v20 }
 0x5e1   :  { %v352_v22 = vpop.f32.mrb[10].mxu1 }
 0x5e2   :  { %v3451_v23 = vpop.f32.mrb[11].mxu1 }
 0x5e7   :  { %v400_v24 = vpop.f32.mrb[12].mxu1 }
 0x5e8   :  { %v406_v25 = vmul.f32 0.35355338, %v400_v24  ;;  %v3456_v26 = vpop.f32.mrb[13].mxu1 }
 0x5e9   :  { %v403_v27 = vpop.f32.mrb[14].mxu1 }
 0x5ea   :  { %v3457_v28 = vpop.f32.mrb[15].mxu1  ;;  %v407_v29 = vsel %vm240_vm7, -1e+09, %v406_v25 }
 0x5eb   :  { %v408_v31 = vsel %vm245_vm6, %v407_v29, -inf }
 0x5ec   :  { %409 = vmax.xlane.f32.xlu0 %v408_v31 }
 0x602   :  { %420 = vrot.lane.b32.xlu0 %v4253_v55, %s4055_s28 }
 0x606   :  { %561 = vrot.lane.b32.xlu0 %v4253_v55, %s4056_s10 }
 0x679   :  { %v410_v32 = vpop.xlane.xlu0 %409 }
 0x67a   :  { %v411_v33 = vsub.f32 %v407_v29, %v410_v32  ;;  %v237_v32 = vld [vmem:[%s4898_s7 + $0x8] sm:$0xf] }
 0x67c   :  { %v412_v34 = vmul.f32 1.442695, %v411_v33  ;;  %v4359_v33 = vsel %vm311_vm8, %v237_v32, 0 }
 0x67d   :  { %v421_v37 = vpop.permute.xlu0 %420 }
 0x67e   :  { %3823 = vpow2.f32 %v412_v34  ;;  %v426_v39 = vsel %vm311_vm8, %v421_v37, 0 }
 0x67f   :  { %3459 = vmatpush3.bf16.msra.mxu0 %v426_v39 }
 0x680   :  { %3470 = vmatprep.subr.bf16.mxu0 %v4050_v15 }
 0x681   :  { %v562_v1 = vpop.permute.xlu0 %561 }
 0x688   :  { %v3824_v40 = vpop.eup %3823 }
 0x689   :  { %v414_v41 = vsel %vm245_vm6, %v3824_v40, 0.0 }
 0x68a   :  { %415 = vadd.xlane.f32.xlu1 %v414_v41 }
 0x69b   :  { %563 = vrot.lane.b32.xlu1 %v4253_v55, %s4057_s21 }
 0x717   :  { %v416_v44 = vpop.xlane.xlu1 %415 }
 0x718   :  { %3825 = vrcp.f32 %v416_v44 }
 0x71b   :  { %v564_v52 = vpop.permute.xlu1 %563 }
 0x71c   :  { %v569_v59 = vsel %vm245_vm6, %v564_v52, 0  ;;  %v4373_v52 = vpack.c.bf16 %v4255_v56, %v4255_v56 }
 0x722   :  { %v3826_v45 = vpop.eup %3825 }
 0x723   :  { %v418_v47 = vmul.f32 %v3826_v45, %v3824_v40 }
 0x725   :  { %v419_v48 = vpack.c.bf16 %v418_v47, %v418_v47 }
 0x727   :  { %3461 = vmatmul.mubr.msk.bf16.vlgmr.msra.gmra.mrb[0].mxu0 %vm245_vm6, %v419_v48 }
 0x728   :  { %3471 = vmatpush3.bf16.msra.mxu0 %v4315_v50  ;;  %3472 = vmatprep.mubr.msk.bf16.mxu0 %vm4051_vm1, %v4050_v15 }
 0x729   :  { %3482 = vmatprep.subr.bf16.mxu0 %v4050_v15 }
 0x72f   :  { %3473 = vmatmul.mubr.msk.bf16.vlgmr.msra.gmra.mrb[4].mxu0 %vm245_vm6, %v355_v51 }
 0x730   :  { %3484 = vmatprep.mubr.msk.bf16.mxu0 %vm4051_vm1, %v4050_v15 }
 0x7fa   :  { %v462_v53 = vpop.f32.mrb[0].mxu0 }
 0x7fb   :  { %v468_v54 = vpack.c.bf16 %v462_v53, %v462_v53  ;;  %v3462_v57 = vpop.f32.mrb[1].mxu0 }
 0x7fc   :  { %v465_v58 = vpop.f32.mrb[2].mxu0 }
 0x7fd   :  { %v3463_v61 = vpop.f32.mrb[3].mxu0  ;;  %3467 = vmatmul.mubr.msk.bf16.vlgmr.msra.gmra.mrb[16].mxu1 %vm245_vm6, %v468_v54 }
 0x7fe   :  { %3477 = vmatpush3.bf16.xpose.msra.mxu1 %v569_v59  ;;  %3478 = vmatprep.mubr.msk.bf16.mxu1 %vm4051_vm1, %v4050_v15 }
 0x7ff   :  { %3488 = vmatprep.subr.bf16.mxu1 %v4050_v15 }
 0x802   :  { %v555_v62 = vpop.f32.mrb[4].mxu0 }
 0x803   :  { %v3474_v63 = vpop.f32.mrb[5].mxu0 }
 0x804   :  { %v558_v2 = vpop.f32.mrb[6].mxu0 }
 0x805   :  { %v3475_v3 = vpop.f32.mrb[7].mxu0  ;;  %3479 = vmatmul.mubr.msk.bf16.vlgmr.msra.gmra.mrb[20].mxu1 %vm245_vm6, %v562_v1 }
 0x806   :  { %3490 = vmatprep.mubr.msk.bf16.mxu1 %vm4051_vm1, %v4050_v15  ;;  %3489 = vmatpush3.bf16.msra.mxu1 %v4359_v33 }
 0x807   :  { %3500 = vmatprep.subr.bf16.mxu1 %v4050_v15 }
 0x8d0   :  { %v509_v4 = vpop.f32.mrb[16].mxu1 }
 0x8d1   :  { %v4333_v5 = vadd.f32 %v555_v62, %v509_v4  ;;  %v3468_v6 = vpop.f32.mrb[17].mxu1 }
 0x8d2   :  { %v512_v7 = vpop.f32.mrb[18].mxu1 }
 0x8d3   :  { %v3469_v8 = vpop.f32.mrb[19].mxu1 }
 0x8d8   :  { %v605_v9 = vpop.f32.mrb[20].mxu1 }
 0x8d9   :  { %v611_v10 = vmul.f32 0.35355338, %v605_v9  ;;  %v3480_v11 = vpop.f32.mrb[21].mxu1 }
 0x8da   :  { %v608_v12 = vpop.f32.mrb[22].mxu1  ;;  %v238_v11 = vld [vmem:[%s4898_s7 + $0xc] sm:$0xf] }
 0x8db   :  { %v3481_v13 = vpop.f32.mrb[23].mxu1  ;;  %v612_v14 = vsel %vm240_vm7, -1e+09, %v611_v10  ;;  %v4407_v12 = vsel %vm311_vm8, %v238_v11, 0 }
 0x8dc   :  { %v613_v16 = vsel %vm245_vm6, %v612_v14, -inf }
 0x8dd   :  { %614 = vmax.xlane.f32.xlu1 %v613_v16 }
 0x8ee   :  { %723 = vrot.lane.b32.xlu1 %v4253_v55, %s4058_s8 }
 0x8f2   :  { %721 = vrot.lane.b32.xlu1 %v4253_v55, %s4059_s30 }
 0x96a   :  { %v615_v17 = vpop.xlane.xlu1 %614 }
 0x96b   :  { %v616_v18 = vsub.f32 %v612_v14, %v615_v17 }
 0x96d   :  { %v617_v19 = vmul.f32 1.442695, %v616_v18  ;;  %v4417_v18 = vld [vmem:[%s4893_s2 + $0x8] sm:$0xff] }
 0x96e   :  { %v724_v27 = vpop.permute.xlu1 %723  ;;  %vm883_vm9 = vcmp.eq.f32.partialorder %v4417_v18, 0.0 }
 0x96f   :  { %3827 = vpow2.f32 %v617_v19  ;;  %v729_v29 = vsel %vm245_vm6, %v724_v27, 0 }
 0x972   :  { %v722_v31 = vpop.permute.xlu1 %721 }
 0x979   :  { %v3828_v20 = vpop.eup %3827 }
 0x97a   :  { %v619_v21 = vsel %vm245_vm6, %v3828_v20, 0.0 }
 0x97b   :  { %620 = vadd.xlane.f32.xlu0 %v619_v21 }
 0x991   :  { %625 = vrot.lane.b32.xlu0 %v4253_v55, %s4060_s18 }
 0xa08   :  { %v621_v22 = vpop.xlane.xlu0 %620 }
 0xa09   :  { %3829 = vrcp.f32 %v621_v22 }
 0xa0c   :  { %v626_v23 = vpop.permute.xlu0 %625 }
 0xa0d   :  { %v631_v24 = vsel %vm311_vm8, %v626_v23, 0 }
 0xa0e   :  { %3483 = vmatpush3.bf16.msra.mxu0 %v631_v24 }
 0xa0f   :  { %3494 = vmatprep.subr.bf16.mxu0 %v4050_v15 }
 0xa13   :  { %v3830_v25 = vpop.eup %3829 }
 0xa14   :  { %v623_v26 = vmul.f32 %v3830_v25, %v3828_v20 }
 0xa16   :  { %v624_v28 = vpack.c.bf16 %v623_v26, %v623_v26 }
 0xa18   :  { %3485 = vmatmul.mubr.msk.bf16.vlgmr.msra.gmra.mrb[8].mxu0 %vm245_vm6, %v624_v28 }
 0xa19   :  { %3495 = vmatpush3.bf16.xpose.msra.mxu0 %v729_v29  ;;  %3496 = vmatprep.mubr.msk.bf16.mxu0 %vm4051_vm1, %v4050_v15 }
 0xa1a   :  { %3506 = vmatprep.subr.bf16.mxu0 %v4050_v15 }
 0xa20   :  { %3497 = vmatmul.mubr.msk.bf16.vlgmr.msra.gmra.mrb[12].mxu0 %vm245_vm6, %v722_v31 }
 0xa21   :  { %3508 = vmatprep.mubr.msk.bf16.mxu0 %vm4051_vm1, %v4050_v15  ;;  %3507 = vmatpush3.bf16.msra.mxu0 %v4407_v12 }
 0xa22   :  { %3518 = vmatprep.subr.bf16.mxu0 %v4050_v15 }
 0xaeb   :  { %v667_v34 = vpop.f32.mrb[8].mxu0 }
 0xaec   :  { %v673_v37 = vpack.c.bf16 %v667_v34, %v667_v34  ;;  %v3486_v39 = vpop.f32.mrb[9].mxu0 }
 0xaed   :  { %v670_v40 = vpop.f32.mrb[10].mxu0 }
 0xaee   :  { %v3487_v41 = vpop.f32.mrb[11].mxu0  ;;  %3491 = vmatmul.mubr.msk.bf16.vlgmr.msra.gmra.mrb[24].mxu1 %vm245_vm6, %v673_v37 }
 0xaef   :  { %3502 = vmatprep.mubr.msk.bf16.mxu1 %vm4051_vm1, %v4050_v15 }
 0xaf3   :  { %v765_v42 = vpop.f32.mrb[12].mxu0 }
 0xaf4   :  { %v771_v44 = vmul.f32 0.35355338, %v765_v42  ;;  %v3498_v45 = vpop.f32.mrb[13].mxu0 }
 0xaf5   :  { %v768_v46 = vpop.f32.mrb[14].mxu0 }
 0xaf6   :  { %v3499_v47 = vpop.f32.mrb[15].mxu0  ;;  %v772_v48 = vsel %vm240_vm7, -1e+09, %v771_v44 }
 0xaf7   :  { %v773_v51 = vsel %vm245_vm6, %v772_v48, -inf }
 0xaf8   :  { %774 = vmax.xlane.f32.xlu0 %v773_v51 }
 0xb0e   :  { %785 = vrot.lane.b32.xlu0 %v4253_v55, %s4061_s22 }
 0xb12   :  { %999 = vrot.lane.b32.xlu0 %v4373_v52, %s4053_s4 }
 0xb85   :  { %v775_v53 = vpop.xlane.xlu0 %774 }
 0xb86   :  { %v776_v54 = vsub.f32 %v772_v48, %v775_v53 }
 0xb88   :  { %v777_v57 = vmul.f32 1.442695, %v776_v54 }
 0xb89   :  { %v786_v58 = vpop.permute.xlu0 %785 }
 0xb8a   :  { %3831 = vpow2.f32 %v777_v57  ;;  %v791_v60 = vsel %vm311_vm8, %v786_v58, 0 }
 0xb8b   :  { %3501 = vmatpush3.bf16.msra.mxu1 %v791_v60 }
 0xb8c   :  { %3512 = vmatprep.subr.bf16.mxu1 %v4050_v15 }
 0xb94   :  { %v3832_v59 = vpop.eup %3831 }
 0xb95   :  { %v779_v55 = vsel %vm245_vm6, %v3832_v59, 0.0 }
 0xb96   :  { %780 = vadd.xlane.f32.xlu1 %v779_v55 }
 0xba7   :  { %886 = vrot.lane.b32.xlu1 %v4373_v52, %s4052_s6 }
 0xbab   :  { %997 = vrot.lane.b32.xlu1 %v4373_v52, %s4054_s27 }
 0xbc1   :  { %v714_v56 = vpop.f32.mrb[24].mxu1 }
 0xbc2   :  { %v4385_v61 = vadd.f32 %v714_v56, %v4333_v5  ;;  %v3492_v62 = vpop.f32.mrb[25].mxu1  ;;  %v1000_v5 = vpop.permute.xlu0 %999 }
 0xbc3   :  { %v717_v63 = vpop.f32.mrb[26].mxu1  ;;  %v1005_v9 = vsel %vm245_vm6, %v1000_v5, 0 }
 0xbc4   :  { %v3493_v1 = vpop.f32.mrb[27].mxu1 }
 0xc23   :  { %v781_v2 = vpop.xlane.xlu1 %780 }
 0xc24   :  { %3833 = vrcp.f32 %v781_v2 }
 0xc27   :  { %v887_v6 = vpop.permute.xlu1 %886 }
 0xc28   :  { %v892_v8 = vsel %vm245_vm6, %v887_v6, 0 }
 0xc2b   :  { %v998_v10 = vpop.permute.xlu1 %997 }
 0xc2e   :  { %v3834_v3 = vpop.eup %3833 }
 0xc2f   :  { %v783_v4 = vmul.f32 %v3834_v3, %v3832_v59 }
 0xc31   :  { %v784_v7 = vpack.c.bf16 %v783_v4, %v783_v4 }
 0xc33   :  { %3503 = vmatmul.mubr.msk.bf16.vlgmr.msra.gmra.mrb[28].mxu1 %vm245_vm6, %v784_v7 }
 0xc34   :  { %3513 = vmatpush3.bf16.xpose.msra.mxu1 %v892_v8  ;;  %3514 = vmatprep.mubr.msk.bf16.mxu1 %vm4051_vm1, %v4050_v15 }
 0xc35   :  { %3524 = vmatprep.subr.bf16.mxu1 %v4050_v15 }
 0xc3b   :  { %3515 = vmatmul.mubr.msk.bf16.vlgmr.msra.gmra.mrb[32].mxu1 %vm245_vm6, %v4373_v52 }
 0xc3c   :  { %3525 = vmatpush3.bf16.xpose.msra.mxu1 %v1005_v9  ;;  %3526 = vmatprep.mubr.msk.bf16.mxu1 %vm4051_vm1, %v4050_v15 }
 0xc3d   :  { %3536 = vmatprep.subr.bf16.mxu1 %v4050_v15 }
 0xc43   :  { %3527 = vmatmul.mubr.msk.bf16.vlgmr.msra.gmra.mrb[36].mxu1 %vm245_vm6, %v998_v10 }
 0xc44   :  { %3537 = vmatpush3.bf16.msra.mxu1 %v4307_v43  ;;  %3538 = vmatprep.mubr.msk.bf16.mxu1 %vm4051_vm1, %v4050_v15 }
 0xc45   :  { %3548 = vmatprep.subr.bf16.mxu1 %v4050_v15 }
 0xd06   :  { %v827_v13 = vpop.f32.mrb[28].mxu1 }
 0xd07   :  { %v833_v14 = vpack.c.bf16 %v827_v13, %v827_v13  ;;  %v3504_v16 = vpop.f32.mrb[29].mxu1 }
 0xd08   :  { %v830_v43 = vpop.f32.mrb[30].mxu1 }
 0xd09   :  { %v3505_v17 = vpop.f32.mrb[31].mxu1  ;;  %3509 = vmatmul.mubr.msk.bf16.vlgmr.msra.gmra.mrb[16].mxu0 %vm245_vm6, %v833_v14 }
 0xd0a   :  { %3520 = vmatprep.mubr.msk.bf16.mxu0 %vm4051_vm1, %v4050_v15 }
 0xd0e   :  { %v928_v19 = vpop.f32.mrb[32].mxu1 }
 0xd0f   :  { %v934_v20 = vmul.f32 0.35355338, %v928_v19  ;;  %v3516_v21 = vpop.f32.mrb[33].mxu1 }
 0xd10   :  { %v931_v22 = vpop.f32.mrb[34].mxu1 }
 0xd11   :  { %v3517_v23 = vpop.f32.mrb[35].mxu1  ;;  %v935_v24 = vsel %vm883_vm9, -1e+09, %v934_v20 }
 0xd12   :  { %v936_v25 = vsel %vm245_vm6, %v935_v24, -inf }
 0xd13   :  { %937 = vmax.xlane.f32.xlu0 %v936_v25 }
 0xd16   :  { %v1041_v26 = vpop.f32.mrb[36].mxu1 }
 0xd17   :  { %v1047_v27 = vmul.f32 0.35355338, %v1041_v26  ;;  %v3528_v28 = vpop.f32.mrb[37].mxu1 }
 0xd18   :  { %v1044_v29 = vpop.f32.mrb[38].mxu1 }
 0xd19   :  { %v3529_v31 = vpop.f32.mrb[39].mxu1  ;;  %v1048_v32 = vsel %vm883_vm9, -1e+09, %v1047_v27 }
 0xd1a   :  { %v1049_v34 = vsel %vm245_vm6, %v1048_v32, -inf }
 0xd1b   :  { %1050 = vmax.xlane.f32.xlu1 %v1049_v34 }
 0xd2c   :  { %1061 = vrot.lane.b32.xlu1 %v4373_v52, %s4055_s28 }
 0xd30   :  { %1198 = vrot.lane.b32.xlu1 %v4373_v52, %s4057_s21 }
 0xd34   :  { %1196 = vrot.lane.b32.xlu1 %v4373_v52, %s4056_s10 }
 0xda0   :  { %v938_v37 = vpop.xlane.xlu0 %937 }
 0xda1   :  { %v939_v39 = vsub.f32 %v935_v24, %v938_v37 }
 0xda3   :  { %v940_v40 = vmul.f32 1.442695, %v939_v39 }
 0xda5   :  { %3835 = vpow2.f32 %v940_v40 }
 0xda8   :  { %v1051_v41 = vpop.xlane.xlu1 %1050 }
 0xda9   :  { %v1052_v42 = vsub.f32 %v1048_v32, %v1051_v41 }
 0xdab   :  { %v1053_v44 = vmul.f32 1.442695, %v1052_v42 }
 0xdac   :  { %v1062_v1 = vpop.permute.xlu1 %1061 }
 0xdad   :  { %3837 = vpow2.f32 %v1053_v44 }
 0xdaf   :  { %v3836_v45 = vpop.eup %3835 }
 0xdb0   :  { %v942_v46 = vsel %vm245_vm6, %v3836_v45, 0.0  ;;  %v1199_v11 = vpop.permute.xlu1 %1198 }
 0xdb1   :  { %943 = vadd.xlane.f32.xlu0 %v942_v46  ;;  %v1204_v43 = vsel %vm245_vm6, %v1199_v11, 0 }
 0xdb4   :  { %v1197_v19 = vpop.permute.xlu1 %1196 }
 0xdb7   :  { %v3838_v47 = vpop.eup %3837 }
 0xdb8   :  { %v1055_v48 = vsel %vm245_vm6, %v3838_v47, 0.0 }
 0xdb9   :  { %1056 = vadd.xlane.f32.xlu0 %v1055_v48 }
 0xdcf   :  { %948 = vrot.lane.b32.xlu0 %v4373_v52, %s4046_s26 }
 0xddc   :  { %v874_v51 = vpop.f32.mrb[16].mxu0 }
 0xddd   :  { %v4437_v53 = vadd.f32 %v874_v51, %v4385_v61  ;;  %v3510_v54 = vpop.f32.mrb[17].mxu0  ;;  %v1067_v61 = vsel %vm311_vm8, %v1062_v1, 0 }
 0xdde   :  { %v877_v57 = vpop.f32.mrb[18].mxu0 }
 0xddf   :  { %v3511_v58 = vpop.f32.mrb[19].mxu0 }
 0xe3e   :  { %v944_v60 = vpop.xlane.xlu0 %943 }
 0xe3f   :  { %3839 = vrcp.f32 %v944_v60 }
 0xe46   :  { %v1057_v59 = vpop.xlane.xlu0 %1056 }
 0xe47   :  { %3841 = vrcp.f32 %v1057_v59 }
 0xe49   :  { %v3840_v55 = vpop.eup %3839 }
 0xe4a   :  { %v946_v56 = vmul.f32 %v3840_v55, %v3836_v45  ;;  %v949_v62 = vpop.permute.xlu0 %948 }
 0xe4b   :  { %v954_v63 = vsel %vm311_vm8, %v949_v62, 0 }
 0xe4c   :  { %3519 = vmatpush3.bf16.msra.mxu0 %v954_v63  ;;  %v947_v2 = vpack.c.bf16 %v946_v56, %v946_v56 }
 0xe4d   :  { %3530 = vmatprep.subr.bf16.mxu0 %v4050_v15 }
 0xe4f   :  { %3521 = vmatmul.mubr.msk.bf16.vlgmr.msra.gmra.mrb[20].mxu0 %vm245_vm6, %v947_v2  ;;  %v1513_v2 = vrot.slane %v4249_v49, %v166_v38 }
 0xe50   :  { %3531 = vmatpush3.bf16.msra.mxu0 %v1067_v61  ;;  %3532 = vmatprep.mubr.msk.bf16.mxu0 %vm4051_vm1, %v4050_v15 }
 0xe51   :  { %v3842_v3 = vpop.eup %3841  ;;  %3542 = vmatprep.subr.bf16.mxu0 %v4050_v15 }
 0xe52   :  { %v1059_v4 = vmul.f32 %v3842_v3, %v3838_v47 }
 0xe54   :  { %v1060_v6 = vpack.c.bf16 %v1059_v4, %v1059_v4 }
 0xe57   :  { %3533 = vmatmul.mubr.msk.bf16.vlgmr.msra.gmra.mrb[24].mxu0 %vm245_vm6, %v1060_v6 }
 0xe58   :  { %3543 = vmatpush3.bf16.msra.mxu0 %v4315_v50  ;;  %3544 = vmatprep.mubr.msk.bf16.mxu0 %vm4051_vm1, %v4050_v15 }
 0xe59   :  { %3554 = vmatprep.subr.bf16.mxu0 %v4050_v15 }
 0xf22   :  { %v990_v7 = vpop.f32.mrb[20].mxu0 }
 0xf23   :  { %v996_v8 = vpack.c.bf16 %v990_v7, %v990_v7  ;;  %v3522_v5 = vpop.f32.mrb[21].mxu0 }
 0xf24   :  { %v993_v9 = vpop.f32.mrb[22].mxu0 }
 0xf25   :  { %v3523_v10 = vpop.f32.mrb[23].mxu0  ;;  %3545 = vmatmul.mubr.msk.bf16.vlgmr.msra.gmra.mrb[28].mxu0 %vm245_vm6, %v996_v8 }
 0xf26   :  { %3556 = vmatprep.mubr.msk.bf16.mxu0 %vm4051_vm1, %v4050_v15 }
 0xf2a   :  { %v1103_v13 = vpop.f32.mrb[24].mxu0 }
 0xf2b   :  { %v1109_v14 = vpack.c.bf16 %v1103_v13, %v1103_v13  ;;  %v3534_v16 = vpop.f32.mrb[25].mxu0 }
 0xf2c   :  { %v1106_v50 = vpop.f32.mrb[26].mxu0 }
 0xf2d   :  { %v3535_v17 = vpop.f32.mrb[27].mxu0  ;;  %3539 = vmatmul.mubr.msk.bf16.vlgmr.msra.gmra.mrb[40].mxu1 %vm245_vm6, %v1109_v14 }
 0xf2e   :  { %3549 = vmatpush3.bf16.xpose.msra.mxu1 %v1204_v43  ;;  %3550 = vmatprep.mubr.msk.bf16.mxu1 %vm4051_vm1, %v4050_v15 }
 0xf2f   :  { %3560 = vmatprep.subr.bf16.mxu1 %v4050_v15 }
 0xf35   :  { %3551 = vmatmul.mubr.msk.bf16.vlgmr.msra.gmra.mrb[44].mxu1 %vm245_vm6, %v1197_v19 }
 0xf36   :  { %3561 = vmatpush3.bf16.msra.mxu1 %v4359_v33  ;;  %3562 = vmatprep.mubr.msk.bf16.mxu1 %vm4051_vm1, %v4050_v15 }
 0xf37   :  { %3572 = vmatprep.subr.bf16.mxu1 %v4050_v15 }
 0xff8   :  { %v1190_v20 = vpop.f32.mrb[28].mxu0 }
 0xff9   :  { %v3546_v21 = vpop.f32.mrb[29].mxu0 }
 0xffa   :  { %v1193_v22 = vpop.f32.mrb[30].mxu0 }
 0xffb   :  { %v3547_v23 = vpop.f32.mrb[31].mxu0 }
0x1000   :  { %v1147_v24 = vpop.f32.mrb[40].mxu1 }
0x1001   :  { %v4464_v25 = vadd.f32 %v1190_v20, %v1147_v24  ;;  %v3540_v26 = vpop.f32.mrb[41].mxu1 }
0x1002   :  { %v1150_v27 = vpop.f32.mrb[42].mxu1 }
0x1003   :  { %v3541_v28 = vpop.f32.mrb[43].mxu1 }
0x1008   :  { %v1240_v29 = vpop.f32.mrb[44].mxu1 }
0x1009   :  { %v1246_v31 = vmul.f32 0.35355338, %v1240_v29  ;;  %v3552_v32 = vpop.f32.mrb[45].mxu1 }
0x100a   :  { %v1243_v34 = vpop.f32.mrb[46].mxu1 }
0x100b   :  { %v3553_v33 = vpop.f32.mrb[47].mxu1  ;;  %v1247_v37 = vsel %vm883_vm9, -1e+09, %v1246_v31 }
0x100c   :  { %v1248_v39 = vsel %vm245_vm6, %v1247_v37, -inf }
0x100d   :  { %1249 = vmax.xlane.f32.xlu0 %v1248_v39 }
0x1023   :  { %1260 = vrot.lane.b32.xlu0 %v4373_v52, %s4060_s18 }
0x1027   :  { %1353 = vrot.lane.b32.xlu0 %v4373_v52, %s4059_s30 }
0x109a   :  { %v1250_v40 = vpop.xlane.xlu0 %1249 }
0x109b   :  { %v1251_v41 = vsub.f32 %v1247_v37, %v1250_v40 }
0x109d   :  { %v1252_v42 = vmul.f32 1.442695, %v1251_v41  ;;  %v3899_v41 = vld [vmem:[%s4891_s0 + $0x8] sm:$0xff] }
0x109e   :  { %v1261_v44 = vpop.permute.xlu0 %1260 }
0x109f   :  { %3843 = vpow2.f32 %v1252_v42  ;;  %v1266_v45 = vsel %vm311_vm8, %v1261_v44, 0 }
0x10a0   :  { %3555 = vmatpush3.bf16.msra.mxu0 %v1266_v45 }
0x10a1   :  { %3566 = vmatprep.subr.bf16.mxu0 %v4050_v15 }
0x10a2   :  { %v1354_v59 = vpop.permute.xlu0 %1353 }
0x10a9   :  { %v3844_v46 = vpop.eup %3843 }
0x10aa   :  { %v1254_v47 = vsel %vm245_vm6, %v3844_v46, 0.0 }
0x10ab   :  { %1255 = vadd.xlane.f32.xlu1 %v1254_v47 }
0x10bc   :  { %1355 = vrot.lane.b32.xlu1 %v4373_v52, %s4058_s8 }
0x1138   :  { %v1256_v48 = vpop.xlane.xlu1 %1255 }
0x1139   :  { %3845 = vrcp.f32 %v1256_v48 }
0x113c   :  { %v1356_v57 = vpop.permute.xlu1 %1355 }
0x113d   :  { %v1361_v60 = vsel %vm245_vm6, %v1356_v57, 0 }
0x1143   :  { %v3846_v51 = vpop.eup %3845 }
0x1144   :  { %v1258_v54 = vmul.f32 %v3846_v51, %v3844_v46 }
0x1146   :  { %v1259_v58 = vpack.c.bf16 %v1258_v54, %v1258_v54 }
0x1148   :  { %3557 = vmatmul.mubr.msk.bf16.vlgmr.msra.gmra.mrb[32].mxu0 %vm245_vm6, %v1259_v58  ;;  %v3797_v58 = vld [vmem:[%s4900_s9] sm:$0xff]  }
0x1149   :  { %3567 = vmatpush3.bf16.xpose.msra.mxu0 %v1361_v60  ;;  %3568 = vmatprep.mubr.msk.bf16.mxu0 %vm4051_vm1, %v4050_v15  ;;  %v3798_v60 = vld [vmem:[%s4900_s9 + $0x8] sm:$0xff]  }
0x114a   :  { %3578 = vmatprep.subr.bf16.mxu0 %v4050_v15 }
0x1150   :  { %3569 = vmatmul.mubr.msk.bf16.vlgmr.msra.gmra.mrb[36].mxu0 %vm245_vm6, %v1354_v59  ;;  %v112_v59 = vld [vmem:[%s4892_s1] sm:$0xff] }
0x1151   :  { %3579 = vmatpush3.bf16.msra.mxu0 %v4407_v12  ;;  %3580 = vmatprep.mubr.msk.bf16.mxu0 %vm4051_vm1, %v4050_v15  ;;  %v1514_v12 = vadd.f32 %v1513_v2, %v4437_v53 }
0x1152   :  { %3592 = vmatprep.subr.bf16.mxu0 %v4050_v15 }
0x1153   :  { %v4498_v5 = vadd.f32 %v1514_v12, %v4208_v0 }
0x1155   :  { %v1518_v38 = vsel %vm116_vm0, %v4498_v5, 0.0 }
0x121b   :  { %v1302_v55 = vpop.f32.mrb[32].mxu0 }
0x121c   :  { %v1308_v56 = vpack.c.bf16 %v1302_v55, %v1302_v55  ;;  %v3558_v62 = vpop.f32.mrb[33].mxu0  ;;  %v113_v55 = vld [vmem:[%s4892_s1 + $0x8] sm:$0xff] }
0x121d   :  { %v1305_v63 = vpop.f32.mrb[34].mxu0  ;;  %v1635_v62 = vpack.c.bf16 %v113_v55, %v112_v59 }
0x121e   :  { %v3559_v1 = vpop.f32.mrb[35].mxu0  ;;  %3563 = vmatmul.mubr.msk.bf16.vlgmr.msra.gmra.mrb[48].mxu1 %vm245_vm6, %v1308_v56  ;;  %v3799_v56 = vld [vmem:[#allocation7] sm:$0xff]   ;;  %v3800_v63 = vld [vmem:[#allocation7 + $0x8] sm:$0xff]  }
0x121f   :  { %3574 = vmatprep.mubr.msk.bf16.mxu1 %vm4051_vm1, %v4050_v15 }
0x1223   :  { %v1397_v61 = vpop.f32.mrb[36].mxu0 }
0x1224   :  { %v1403_v3 = vmul.f32 0.35355338, %v1397_v61  ;;  %v3570_v4 = vpop.f32.mrb[37].mxu0 }
0x1225   :  { %v1400_v6 = vpop.f32.mrb[38].mxu0 }
0x1226   :  { %v3571_v7 = vpop.f32.mrb[39].mxu0  ;;  %v1404_v8 = vsel %vm883_vm9, -1e+09, %v1403_v3 }
0x1227   :  { %v1405_v9 = vsel %vm245_vm6, %v1404_v8, -inf }
0x1228   :  { %1406 = vmax.xlane.f32.xlu1 %v1405_v9 }
0x122c   :  { %1519 = vadd.xlane.f32.xlu1 %v1518_v38 }
0x12b5   :  { %v1407_v10 = vpop.xlane.xlu1 %1406 }
0x12b6   :  { %v1408_v53 = vsub.f32 %v1404_v8, %v1407_v10 }
0x12b8   :  { %v1409_v11 = vmul.f32 1.442695, %v1408_v53 }
0x12b9   :  { %v1520_v28 = vpop.xlane.xlu1 %1519 }
0x12ba   :  { %3847 = vpow2.f32 %v1409_v11  ;;  %v1524_v29 = vmul.f32 0.03125, %v1520_v28 }
0x12bc   :  { %v1526_v37 = vsub.f32 %v4498_v5, %v1524_v29 }
0x12be   :  { %v1528_v45 = vmul.f32 %v1526_v37, %v1526_v37 }
0x12c0   :  { %v1530_v46 = vsel %vm116_vm0, %v1528_v45, 0.0 }
0x12c4   :  { %v3848_v13 = vpop.eup %3847 }
0x12c5   :  { %v1411_v14 = vsel %vm245_vm6, %v3848_v13, 0.0 }
0x12c6   :  { %1412 = vadd.xlane.f32.xlu0 %v1411_v14 }
0x12dc   :  { %1417 = vrot.lane.b32.xlu0 %v4373_v52, %s4061_s22 }
0x12f1   :  { %v1346_v0 = vpop.f32.mrb[48].mxu1 }
0x12f2   :  { %v1352_v18 = vadd.f32 %v1346_v0, %v4464_v25  ;;  %v3564_v16 = vpop.f32.mrb[49].mxu1  ;;  %v1558_v0 = vsub.s32 2, %v4233_v30 }
0x12f3   :  { %v1349_v50 = vpop.f32.mrb[50].mxu1  ;;  %v1566_v16 = vsub.s32 3, %v4233_v30 }
0x12f4   :  { %v3565_v43 = vpop.f32.mrb[51].mxu1 }
0x1353   :  { %v1413_v17 = vpop.xlane.xlu0 %1412 }
0x1354   :  { %3849 = vrcp.f32 %v1413_v17 }
0x1357   :  { %v1418_v19 = vpop.permute.xlu0 %1417 }
0x1358   :  { %v1423_v20 = vsel %vm311_vm8, %v1418_v19, 0 }
0x1359   :  { %3573 = vmatpush3.bf16.msra.mxu1 %v1423_v20  ;;  %v4548_v20 = vld [vmem:[#allocation2] sm:$0x3f] }
0x135a   :  { %3584 = vmatprep.subr.bf16.mxu1 %v4050_v15 }
0x135e   :  { %v3850_v21 = vpop.eup %3849 }
0x135f   :  { %v1415_v22 = vmul.f32 %v3850_v21, %v3848_v13  ;;  %v1567_v21 = vrot.slane %v4548_v20, %v1566_v16 }
0x1361   :  { %v1416_v23 = vpack.c.bf16 %v1415_v22, %v1415_v22 }
0x1363   :  { %3575 = vmatmul.mubr.msk.bf16.vlgmr.msra.gmra.mrb[52].mxu1 %vm245_vm6, %v1416_v23 }
0x1364   :  { %3588 = vmatprep.mubr.msk.bf16.mxu1 %vm4051_vm1, %v4050_v15  ;;  %3585 = vmatpush3.bf16.msra.mxu1 %v3799_v56 }
0x1365   :  { %3586 = vmatprep.subr.bf16.mxu1 %v4050_v15 }
0x1368   :  { %3587 = vmatpush3.bf16.msra.mxu1 %v3800_v63 }
0x1369   :  { %3600 = vmatprep.subr.bf16.mxu1 %v4050_v15 }
0x1436   :  { %v1459_v52 = vpop.f32.mrb[52].mxu1 }
0x1437   :  { %v1465_v24 = vpack.c.bf16 %v1459_v52, %v1459_v52  ;;  %v3576_v25 = vpop.f32.mrb[53].mxu1 }
0x1438   :  { %v1462_v26 = vpop.f32.mrb[54].mxu1 }
0x1439   :  { %v3577_v27 = vpop.f32.mrb[55].mxu1  ;;  %3581 = vmatmul.mubr.msk.bf16.vlgmr.msra.gmra.mrb[40].mxu0 %vm245_vm6, %v1465_v24 }
0x143a   :  { %3596 = vmatprep.mubr.msk.bf16.mxu0 %vm4051_vm1, %v4050_v15  ;;  %3593 = vmatpush3.bf16.msra.mxu0 %v3797_v58  ;;  %v4062_v58 = vmov 0  }
0x143b   :  { %3594 = vmatprep.subr.bf16.mxu0 %v4050_v15 }
0x143e   :  { %3595 = vmatpush3.bf16.msra.mxu0 %v3798_v60 }
0x143f   :  { %3606 = vmatprep.subr.bf16.mxu0 %v4050_v15 }
0x1441   :  { %3597 = vmatmul.mubr.msk.bf16.vlgmr.msra.gmra.mrb[44].mxu0 %vm116_vm0, %v1635_v62 }
0x1442   :  { %3608 = vmatprep.mubr.msk.bf16.mxu0 %vm4051_vm1, %v4050_v15 }
0x150c   :  { %v1503_v31 = vpop.f32.mrb[40].mxu0 }
0x150d   :  { %v1509_v32 = vadd.f32 %v1503_v31, %v1352_v18  ;;  %v3582_v34 = vpop.f32.mrb[41].mxu0  ;;  %v1559_v18 = vrot.slane %v4238_v36, %v1558_v0  ;;  %v1643_v36 = vrot.slane %v4249_v49, %v1566_v16 }
0x150e   :  { %v1506_v33 = vpop.f32.mrb[42].mxu0 }
0x150f   :  { %v1515_v39 = vadd.f32 %v1513_v2, %v1509_v32  ;;  %v3583_v40 = vpop.f32.mrb[43].mxu0  ;;  %v1560_v43 = vmul.f32 %v1559_v18, %v1526_v37  ;;  %v4564_v37 = vld [vmem:[#allocation5] sm:$0x7f] }
0x1510   :  { %v1578_v49 = vrot.slane %v4564_v37, %v1558_v0 }
0x1511   :  { %v4519_v42 = vadd.f32 %v3899_v41, %v1515_v39 }
0x1513   :  { %v1521_v44 = vsel %vm116_vm0, %v4519_v42, 0.0 }
0x1514   :  { %1522 = vadd.xlane.f32.xlu1 %v1521_v44  ;;  %v1693_v26 = vpop.f32.mrb[44].mxu0 }
0x1515   :  { %v1694_v27 = vadd.f32 %v1693_v26, %v1643_v36  ;;  %v3598_v28 = vpop.f32.mrb[45].mxu0 }
0x1516   :  { %v1696_v29 = vpop.f32.mrb[46].mxu0 }
0x1517   :  { %v4555_v31 = vpack.c.bf16 %v1694_v27, %v1694_v27  ;;  %v4557_v32 = vadd.f32 %v1696_v29, %v1643_v36  ;;  %v3599_v34 = vpop.f32.mrb[47].mxu0  ;;  %v1700_v29 = vld [vmem:[#allocation8] sm:$0xf] }
0x1518   :  { %1531 = vadd.xlane.f32.xlu1 %v1530_v46  ;;  %v4618_v34 = vsel %vm311_vm8, %v1700_v29, 0 }
0x1519   :  { %v1712_v33 = vsel %vm245_vm6, %v4555_v31, 0 }
0x15a1   :  { %v1523_v47 = vpop.xlane.xlu1 %1522 }
0x15a2   :  { %v1525_v48 = vmul.f32 0.03125, %v1523_v47 }
0x15a4   :  { %v1527_v51 = vsub.f32 %v4519_v42, %v1525_v48 }
0x15a5   :  { %v1532_v1 = vpop.xlane.xlu1 %1531 }
0x15a6   :  { %v1529_v54 = vmul.f32 %v1527_v51, %v1527_v51  ;;  %v1536_v2 = vmul.f32 0.032258064, %v1532_v1  ;;  %v1561_v17 = vmul.f32 %v1559_v18, %v1527_v51 }
0x15a8   :  { %v1533_v57 = vsel %vm116_vm0, %v1529_v54, 0.0  ;;  %3851 = vrsqrt.f32 %v1536_v2  ;;  %vm1540_vm10 = vcmp.eq.f32.partialorder %v1536_v2, inf  ;;  %v1543_v7 = vand.u32 2147483648, %v1536_v2 }
0x15a9   :  { %1534 = vadd.xlane.f32.xlu1 %v1533_v57  ;;  %vm1542_vm11 = vcmp.eq.f32.partialorder %v1536_v2, 0.0  ;;  %v1704_v57 = vld [vmem:[%s4894_s3] sm:$0x1] }
0x15aa   :  { %vm1705_vm14 = vcmp.eq.f32.partialorder %v1704_v57, 0.0 }
0x15ab   :  { %v1755_v60 = vsel %vm1705_vm14, 1, %v4062_v58 }
0x15ac   :  { %v1759_v59 = vrot.slane %v1755_v60, %v4236_v35 }
0x15ae   :  { %vm4587_vm15 = vcmp.eq.s32.totalorder %v1759_v59, 1 }
0x15b2   :  { %v3852_v12 = vpop.eup %3851 }
0x15b3   :  { %v1539_v4 = vmul.f32 %v3852_v12, %v1536_v2 }
0x15b5   :  { %v1541_v6 = vsel %vm1540_vm10, %v1536_v2, %v1539_v4 }
0x15b6   :  { %v1544_v8 = vsel %vm1542_vm11, %v1543_v7, %v1541_v6 }
0x15b7   :  { %v1552_v9 = vadd.f32 1e-06, %v1544_v8 }
0x15ba   :  { %1827 = vrot.lane.b32.xlu1 %v4555_v31, %s4054_s27 }
0x1636   :  { %v1535_v61 = vpop.xlane.xlu1 %1534 }
0x1637   :  { %v1537_v3 = vmul.f32 0.032258064, %v1535_v61 }
0x1639   :  { %3853 = vrsqrt.f32 %v1537_v3  ;;  %vm1547_vm12 = vcmp.eq.f32.partialorder %v1537_v3, inf  ;;  %v1550_v53 = vand.u32 2147483648, %v1537_v3  ;;  %vm1549_vm13 = vcmp.eq.f32.partialorder %v1537_v3, 0.0 }
0x163a   :  { %3855 = vrcp.f32 %v1552_v9  ;;  %v1828_v40 = vpop.permute.xlu1 %1827 }
0x163b   :  { %v1833_v51 = vsel %vm245_vm6, %v1828_v40, 0 }
0x1643   :  { %v3854_v38 = vpop.eup %3853 }
0x1644   :  { %v1546_v10 = vmul.f32 %v3854_v38, %v1537_v3  ;;  %v3856_v50 = vpop.eup %3855 }
0x1645   :  { %v1562_v19 = vmul.f32 %v3856_v50, %v1560_v43 }
0x1646   :  { %v1548_v11 = vsel %vm1547_vm12, %v1537_v3, %v1546_v10 }
0x1647   :  { %v1551_v13 = vsel %vm1549_vm13, %v1550_v53, %v1548_v11  ;;  %v1568_v52 = vadd.f32 %v1567_v21, %v1562_v19 }
0x1648   :  { %v1553_v14 = vadd.f32 1e-06, %v1551_v13 }
0x164a   :  { %3857 = vrcp.f32 %v1553_v14 }
0x1654   :  { %v3858_v22 = vpop.eup %3857 }
0x1655   :  { %v1563_v23 = vmul.f32 %v3858_v22, %v1561_v17 }
0x1657   :  { %v1569_v24 = vadd.f32 %v1567_v21, %v1563_v23 }
0x1659   :  { %v1570_v25 = vpack.c.bf16 %v1569_v24, %v1568_v52 }
0x165b   :  { %3589 = vmatmul.mubr.msk.bf16.vlgmr.msra.gmra.mrb[56].mxu1 %vm116_vm0, %v1570_v25 }
0x165c   :  { %3602 = vmatprep.mubr.msk.bf16.mxu1 %vm4051_vm1, %v4050_v15  ;;  %3601 = vmatpush3.bf16.xpose.msra.mxu1 %v1712_v33  ;;  %v1701_v33 = vld [vmem:[#allocation8 + $0x4] sm:$0xf] }
0x165d   :  { %3612 = vmatprep.subr.bf16.mxu1 %v4050_v15 }
0x172e   :  { %v1628_v39 = vpop.f32.mrb[56].mxu1 }
0x172f   :  { %v1629_v41 = vadd.f32 %v1628_v39, %v1578_v49  ;;  %v3590_v44 = vpop.f32.mrb[57].mxu1 }
0x1730   :  { %v1631_v45 = vpop.f32.mrb[58].mxu1 }
0x1731   :  { %v4567_v46 = vpack.c.bf16 %v1629_v41, %v1629_v41  ;;  %v4569_v47 = vadd.f32 %v1631_v45, %v1578_v49  ;;  %v3591_v48 = vpop.f32.mrb[59].mxu1  ;;  %v4622_v49 = vsel %vm311_vm8, %v1701_v33, 0 }
0x1733   :  { %1825 = vrot.lane.b32.xlu0 %v4567_v46, %s4054_s27  ;;  %3603 = vmatmul.mubr.msk.bf16.vlgmr.msra.gmra.mrb[60].mxu1 %vm245_vm6, %v4567_v46 }
0x1734   :  { %3613 = vmatpush3.bf16.xpose.msra.mxu1 %v1833_v51  ;;  %3614 = vmatprep.mubr.msk.bf16.mxu1 %vm4051_vm1, %v4050_v15 }
0x1735   :  { %3624 = vmatprep.subr.bf16.mxu1 %v4050_v15 }
0x17a5   :  { %v1826_v54 = vpop.permute.xlu0 %1825 }
0x17a6   :  { %3615 = vmatmul.mubr.msk.bf16.vlgmr.msra.gmra.mrb[64].mxu1 %vm245_vm6, %v1826_v54 }
0x17a7   :  { %3626 = vmatprep.mubr.msk.bf16.mxu1 %vm4051_vm1, %v4050_v15  ;;  %3625 = vmatpush3.bf16.msra.mxu1 %v4622_v49 }
0x17a8   :  { %3636 = vmatprep.subr.bf16.mxu1 %v4050_v15 }
0x1806   :  { %v1748_v55 = vpop.f32.mrb[60].mxu1 }
0x1807   :  { %v1754_v62 = vmul.f32 0.35355338, %v1748_v55  ;;  %v3604_v63 = vpop.f32.mrb[61].mxu1 }
0x1808   :  { %v1751_v1 = vpop.f32.mrb[62].mxu1 }
0x1809   :  { %v3605_v2 = vpop.f32.mrb[63].mxu1  ;;  %v1761_v12 = vsel %vm4587_vm15, -1e+09, %v1754_v62 }
0x180a   :  { %v1762_v61 = vsel %vm245_vm6, %v1761_v12, -inf }
0x180b   :  { %1763 = vmax.xlane.f32.xlu0 %v1762_v61 }
0x1879   :  { %v1869_v3 = vpop.f32.mrb[64].mxu1 }
0x187a   :  { %v1875_v4 = vmul.f32 0.35355338, %v1869_v3  ;;  %v3616_v6 = vpop.f32.mrb[65].mxu1 }
0x187b   :  { %v1872_v7 = vpop.f32.mrb[66].mxu1 }
0x187c   :  { %v3617_v8 = vpop.f32.mrb[67].mxu1  ;;  %v1876_v9 = vsel %vm4587_vm15, -1e+09, %v1875_v4 }
0x187d   :  { %v1877_v38 = vsel %vm245_vm6, %v1876_v9, -inf }
0x187e   :  { %1878 = vmax.xlane.f32.xlu1 %v1877_v38 }
0x188f   :  { %1889 = vrot.lane.b32.xlu1 %v4555_v31, %s4053_s4 }
0x1893   :  { %2030 = vrot.lane.b32.xlu1 %v4567_v46, %s4056_s10 }
0x1898   :  { %v1764_v10 = vpop.xlane.xlu0 %1763 }
0x1899   :  { %v1765_v53 = vsub.f32 %v1761_v12, %v1764_v10 }
0x189b   :  { %v1766_v11 = vmul.f32 1.442695, %v1765_v53 }
0x189d   :  { %3859 = vpow2.f32 %v1766_v11 }
0x18a7   :  { %v3860_v13 = vpop.eup %3859 }
0x18a8   :  { %v1768_v14 = vsel %vm245_vm6, %v3860_v13, 0.0 }
0x18a9   :  { %1769 = vadd.xlane.f32.xlu0 %v1768_v14 }
0x190b   :  { %v1879_v0 = vpop.xlane.xlu1 %1878 }
0x190c   :  { %v1880_v18 = vsub.f32 %v1876_v9, %v1879_v0 }
0x190e   :  { %v1881_v16 = vmul.f32 1.442695, %v1880_v18 }
0x190f   :  { %v1890_v24 = vpop.permute.xlu1 %1889 }
0x1910   :  { %3861 = vpow2.f32 %v1881_v16  ;;  %v1895_v36 = vsel %vm311_vm8, %v1890_v24, 0 }
0x1913   :  { %v2031_v62 = vpop.permute.xlu1 %2030 }
0x191a   :  { %v3862_v50 = vpop.eup %3861 }
0x191b   :  { %v1883_v43 = vsel %vm245_vm6, %v3862_v50, 0.0 }
0x191c   :  { %1884 = vadd.xlane.f32.xlu0 %v1883_v43 }
0x1932   :  { %1775 = vrot.lane.b32.xlu0 %v4555_v31, %s4052_s6 }
0x1936   :  { %2032 = vrot.lane.b32.xlu0 %v4555_v31, %s4056_s10  ;;  %v1770_v17 = vpop.xlane.xlu0 %1769 }
0x1937   :  { %3863 = vrcp.f32 %v1770_v17 }
0x1941   :  { %v3864_v19 = vpop.eup %3863 }
0x1942   :  { %v1772_v22 = vmul.f32 %v3864_v19, %v3860_v13 }
0x1944   :  { %v1773_v25 = vpack.c.bf16 %v1772_v22, %v1772_v22 }
0x19a9   :  { %v1885_v21 = vpop.xlane.xlu0 %1884 }
0x19aa   :  { %3865 = vrcp.f32 %v1885_v21 }
0x19ad   :  { %v1776_v23 = vpop.permute.xlu0 %1775 }
0x19ae   :  { %v1781_v52 = vsel %vm311_vm8, %v1776_v23, 0 }
0x19af   :  { %3607 = vmatpush3.bf16.msra.mxu0 %v1781_v52 }
0x19b0   :  { %3618 = vmatprep.subr.bf16.mxu0 %v4050_v15 }
0x19b1   :  { %v2033_v48 = vpop.permute.xlu0 %2032 }
0x19b2   :  { %3609 = vmatmul.mubr.msk.bf16.vlgmr.msra.gmra.mrb[48].mxu0 %vm245_vm6, %v1773_v25  ;;  %v2038_v59 = vsel %vm245_vm6, %v2033_v48, 0  ;;  %v1702_v25 = vld [vmem:[#allocation8 + $0x8] sm:$0xf] }
0x19b3   :  { %3619 = vmatpush3.bf16.msra.mxu0 %v1895_v36  ;;  %3620 = vmatprep.mubr.msk.bf16.mxu0 %vm4051_vm1, %v4050_v15  ;;  %v4661_v36 = vsel %vm311_vm8, %v1702_v25, 0 }
0x19b4   :  { %v3866_v26 = vpop.eup %3865  ;;  %3630 = vmatprep.subr.bf16.mxu0 %v4050_v15 }
0x19b5   :  { %v1887_v27 = vmul.f32 %v3866_v26, %v3862_v50 }
0x19b7   :  { %v1888_v28 = vpack.c.bf16 %v1887_v27, %v1887_v27 }
0x19ba   :  { %3621 = vmatmul.mubr.msk.bf16.vlgmr.msra.gmra.mrb[52].mxu0 %vm245_vm6, %v1888_v28 }
0x19bb   :  { %3632 = vmatprep.mubr.msk.bf16.mxu0 %vm4051_vm1, %v4050_v15  ;;  %3631 = vmatpush3.bf16.msra.mxu0 %v4618_v34 }
0x19bc   :  { %3642 = vmatprep.subr.bf16.mxu0 %v4050_v15 }
0x1a85   :  { %v1817_v39 = vpop.f32.mrb[48].mxu0 }
0x1a86   :  { %v1823_v40 = vpack.c.bf16 %v1817_v39, %v1817_v39  ;;  %v3610_v41 = vpop.f32.mrb[49].mxu0 }
0x1a87   :  { %v1820_v44 = vpop.f32.mrb[50].mxu0 }
0x1a88   :  { %v3611_v45 = vpop.f32.mrb[51].mxu0  ;;  %3633 = vmatmul.mubr.msk.bf16.vlgmr.msra.gmra.mrb[56].mxu0 %vm245_vm6, %v1823_v40 }
0x1a89   :  { %3644 = vmatprep.mubr.msk.bf16.mxu0 %vm4051_vm1, %v4050_v15 }
0x1a8d   :  { %v1931_v51 = vpop.f32.mrb[52].mxu0 }
0x1a8e   :  { %v1937_v54 = vpack.c.bf16 %v1931_v51, %v1931_v51  ;;  %v3622_v57 = vpop.f32.mrb[53].mxu0 }
0x1a8f   :  { %v1934_v60 = vpop.f32.mrb[54].mxu0  ;;  %v4679_v57 = vpack.c.bf16 %v4569_v47, %v4569_v47 }
0x1a90   :  { %v3623_v55 = vpop.f32.mrb[55].mxu0  ;;  %3627 = vmatmul.mubr.msk.bf16.vlgmr.msra.gmra.mrb[68].mxu1 %vm245_vm6, %v1937_v54  ;;  %v4673_v54 = vpack.c.bf16 %v4557_v32, %v4557_v32 }
0x1a91   :  { %3637 = vmatpush3.bf16.xpose.msra.mxu1 %v2038_v59  ;;  %3638 = vmatprep.mubr.msk.bf16.mxu1 %vm4051_vm1, %v4050_v15 }
0x1a92   :  { %3648 = vmatprep.subr.bf16.mxu1 %v4050_v15 }
0x1a98   :  { %3639 = vmatmul.mubr.msk.bf16.vlgmr.msra.gmra.mrb[72].mxu1 %vm245_vm6, %v2031_v62 }
0x1a99   :  { %3650 = vmatprep.mubr.msk.bf16.mxu1 %vm4051_vm1, %v4050_v15  ;;  %3649 = vmatpush3.bf16.msra.mxu1 %v4661_v36 }
0x1a9a   :  { %3660 = vmatprep.subr.bf16.mxu1 %v4050_v15 }
0x1b5b   :  { %v2024_v63 = vpop.f32.mrb[56].mxu0 }
0x1b5c   :  { %v3634_v1 = vpop.f32.mrb[57].mxu0 }
0x1b5d   :  { %v2027_v2 = vpop.f32.mrb[58].mxu0 }
0x1b5e   :  { %v3635_v12 = vpop.f32.mrb[59].mxu0 }
0x1b63   :  { %v1978_v61 = vpop.f32.mrb[68].mxu1 }
0x1b64   :  { %v4638_v3 = vadd.f32 %v2024_v63, %v1978_v61  ;;  %v3628_v4 = vpop.f32.mrb[69].mxu1 }
0x1b65   :  { %v1981_v6 = vpop.f32.mrb[70].mxu1 }
0x1b66   :  { %v3629_v7 = vpop.f32.mrb[71].mxu1 }
0x1b6b   :  { %v2074_v8 = vpop.f32.mrb[72].mxu1 }
0x1b6c   :  { %v2080_v9 = vmul.f32 0.35355338, %v2074_v8  ;;  %v3640_v38 = vpop.f32.mrb[73].mxu1 }
0x1b6d   :  { %v2077_v10 = vpop.f32.mrb[74].mxu1 }
0x1b6e   :  { %v3641_v53 = vpop.f32.mrb[75].mxu1  ;;  %v2081_v11 = vsel %vm4587_vm15, -1e+09, %v2080_v9  ;;  %v1703_v10 = vld [vmem:[#allocation8 + $0xc] sm:$0xf] }
0x1b6f   :  { %v2082_v13 = vsel %vm245_vm6, %v2081_v11, -inf  ;;  %v4709_v53 = vsel %vm311_vm8, %v1703_v10, 0 }
0x1b70   :  { %2083 = vmax.xlane.f32.xlu0 %v2082_v13 }
0x1b86   :  { %2094 = vrot.lane.b32.xlu0 %v4555_v31, %s4057_s21 }
0x1b8a   :  { %2190 = vrot.lane.b32.xlu0 %v4567_v46, %s4059_s30 }
0x1bfd   :  { %v2084_v14 = vpop.xlane.xlu0 %2083 }
0x1bfe   :  { %v2085_v0 = vsub.f32 %v2081_v11, %v2084_v14  ;;  %v3291_v11 = vld [vmem:[%s4894_s3 + $0x1] sm:$0x1] }
0x1bff   :  { %vm2352_vm2 = vcmp.eq.f32.partialorder %v3291_v11, 0.0 }
0x1c00   :  { %v2086_v18 = vmul.f32 1.442695, %v2085_v0  ;;  %v2402_v0 = vsel %vm2352_vm2, 1, %v4062_v58 }
0x1c01   :  { %v2095_v16 = vpop.permute.xlu0 %2094 }
0x1c02   :  { %3867 = vpow2.f32 %v2086_v18  ;;  %v2100_v50 = vsel %vm311_vm8, %v2095_v16, 0 }
0x1c03   :  { %3643 = vmatpush3.bf16.msra.mxu0 %v2100_v50  ;;  %v2406_v50 = vrot.slane %v2402_v0, %v4236_v35 }
0x1c04   :  { %3654 = vmatprep.subr.bf16.mxu0 %v4050_v15 }
0x1c05   :  { %v2191_v24 = vpop.permute.xlu0 %2190  ;;  %vm4721_vm3 = vcmp.eq.s32.totalorder %v2406_v50, 1 }
0x1c0c   :  { %v3868_v43 = vpop.eup %3867 }
0x1c0d   :  { %v2088_v17 = vsel %vm245_vm6, %v3868_v43, 0.0 }
0x1c0e   :  { %2089 = vadd.xlane.f32.xlu1 %v2088_v17 }
0x1c1f   :  { %2192 = vrot.lane.b32.xlu1 %v4555_v31, %s4059_s30 }
0x1c9b   :  { %v2090_v19 = vpop.xlane.xlu1 %2089 }
0x1c9c   :  { %3869 = vrcp.f32 %v2090_v19 }
0x1c9f   :  { %v2193_v22 = vpop.permute.xlu1 %2192 }
0x1ca0   :  { %v2198_v52 = vsel %vm245_vm6, %v2193_v22, 0 }
0x1ca6   :  { %v3870_v46 = vpop.eup %3869 }
0x1ca7   :  { %v2092_v21 = vmul.f32 %v3870_v46, %v3868_v43 }
0x1ca9   :  { %v2093_v23 = vpack.c.bf16 %v2092_v21, %v2092_v21 }
0x1cab   :  { %3645 = vmatmul.mubr.msk.bf16.vlgmr.msra.gmra.mrb[60].mxu0 %vm245_vm6, %v2093_v23 }
0x1cac   :  { %3655 = vmatpush3.bf16.xpose.msra.mxu0 %v2198_v52  ;;  %3656 = vmatprep.mubr.msk.bf16.mxu0 %vm4051_vm1, %v4050_v15 }
0x1cad   :  { %3666 = vmatprep.subr.bf16.mxu0 %v4050_v15 }
0x1cb3   :  { %3657 = vmatmul.mubr.msk.bf16.vlgmr.msra.gmra.mrb[64].mxu0 %vm245_vm6, %v2191_v24 }
0x1cb4   :  { %3668 = vmatprep.mubr.msk.bf16.mxu0 %vm4051_vm1, %v4050_v15  ;;  %3667 = vmatpush3.bf16.msra.mxu0 %v4709_v53 }
0x1cb5   :  { %3678 = vmatprep.subr.bf16.mxu0 %v4050_v15 }
0x1d7e   :  { %v2136_v26 = vpop.f32.mrb[60].mxu0 }
0x1d7f   :  { %v2142_v27 = vpack.c.bf16 %v2136_v26, %v2136_v26  ;;  %v3646_v28 = vpop.f32.mrb[61].mxu0 }
0x1d80   :  { %v2139_v29 = vpop.f32.mrb[62].mxu0 }
0x1d81   :  { %v3647_v33 = vpop.f32.mrb[63].mxu0  ;;  %3651 = vmatmul.mubr.msk.bf16.vlgmr.msra.gmra.mrb[76].mxu1 %vm245_vm6, %v2142_v27 }
0x1d82   :  { %3662 = vmatprep.mubr.msk.bf16.mxu1 %vm4051_vm1, %v4050_v15 }
0x1d86   :  { %v2234_v39 = vpop.f32.mrb[64].mxu0 }
0x1d87   :  { %v2240_v40 = vmul.f32 0.35355338, %v2234_v39  ;;  %v3658_v41 = vpop.f32.mrb[65].mxu0 }
0x1d88   :  { %v2237_v44 = vpop.f32.mrb[66].mxu0 }
0x1d89   :  { %v3659_v45 = vpop.f32.mrb[67].mxu0  ;;  %v2241_v48 = vsel %vm4587_vm15, -1e+09, %v2240_v40 }
0x1d8a   :  { %v2242_v51 = vsel %vm245_vm6, %v2241_v48, -inf }
0x1d8b   :  { %2243 = vmax.xlane.f32.xlu1 %v2242_v51 }
0x1d9c   :  { %2474 = vrot.lane.b32.xlu1 %v4673_v54, %s4054_s27 }
0x1da0   :  { %2472 = vrot.lane.b32.xlu1 %v4679_v57, %s4054_s27 }
0x1e18   :  { %v2244_v60 = vpop.xlane.xlu1 %2243 }
0x1e19   :  { %v2245_v56 = vsub.f32 %v2241_v48, %v2244_v60 }
0x1e1b   :  { %v2246_v59 = vmul.f32 1.442695, %v2245_v56 }
0x1e1d   :  { %3871 = vpow2.f32 %v2246_v59 }
0x1e27   :  { %v3872_v55 = vpop.eup %3871 }
0x1e28   :  { %v2248_v62 = vsel %vm245_vm6, %v3872_v55, 0.0 }
0x1e29   :  { %2249 = vadd.xlane.f32.xlu0 %v2248_v62 }
0x1e3f   :  { %2254 = vrot.lane.b32.xlu0 %v4555_v31, %s4058_s8  ;;  %v2359_v31 = vsel %vm245_vm6, %v4673_v54, 0 }
0x1e54   :  { %v2183_v32 = vpop.f32.mrb[76].mxu1 }
0x1e55   :  { %v4687_v63 = vadd.f32 %v2183_v32, %v4638_v3  ;;  %v3652_v47 = vpop.f32.mrb[77].mxu1  ;;  %v2475_v3 = vpop.permute.xlu1 %2474 }
0x1e56   :  { %v2186_v1 = vpop.f32.mrb[78].mxu1  ;;  %v2480_v9 = vsel %vm245_vm6, %v2475_v3, 0 }
0x1e57   :  { %v3653_v2 = vpop.f32.mrb[79].mxu1 }
0x1e59   :  { %v2473_v38 = vpop.permute.xlu1 %2472 }
0x1eb6   :  { %v2250_v12 = vpop.xlane.xlu0 %2249 }
0x1eb7   :  { %3873 = vrcp.f32 %v2250_v12 }
0x1eba   :  { %v2255_v61 = vpop.permute.xlu0 %2254 }
0x1ebb   :  { %v2260_v4 = vsel %vm311_vm8, %v2255_v61, 0 }
0x1ebc   :  { %3661 = vmatpush3.bf16.msra.mxu1 %v2260_v4 }
0x1ebd   :  { %3672 = vmatprep.subr.bf16.mxu1 %v4050_v15 }
0x1ec1   :  { %v3874_v6 = vpop.eup %3873 }
0x1ec2   :  { %v2252_v7 = vmul.f32 %v3874_v6, %v3872_v55 }
0x1ec4   :  { %v2253_v8 = vpack.c.bf16 %v2252_v7, %v2252_v7 }
0x1ec6   :  { %3663 = vmatmul.mubr.msk.bf16.vlgmr.msra.gmra.mrb[80].mxu1 %vm245_vm6, %v2253_v8 }
0x1ec7   :  { %3673 = vmatpush3.bf16.xpose.msra.mxu1 %v2359_v31  ;;  %3674 = vmatprep.mubr.msk.bf16.mxu1 %vm4051_vm1, %v4050_v15 }
0x1ec8   :  { %3684 = vmatprep.subr.bf16.mxu1 %v4050_v15 }
0x1ece   :  { %3675 = vmatmul.mubr.msk.bf16.vlgmr.msra.gmra.mrb[84].mxu1 %vm245_vm6, %v4679_v57 }
0x1ecf   :  { %3685 = vmatpush3.bf16.xpose.msra.mxu1 %v2480_v9  ;;  %3686 = vmatprep.mubr.msk.bf16.mxu1 %vm4051_vm1, %v4050_v15 }
0x1ed0   :  { %3696 = vmatprep.subr.bf16.mxu1 %v4050_v15 }
0x1ed6   :  { %3687 = vmatmul.mubr.msk.bf16.vlgmr.msra.gmra.mrb[88].mxu1 %vm245_vm6, %v2473_v38 }
0x1ed7   :  { %3697 = vmatpush3.bf16.msra.mxu1 %v4622_v49  ;;  %3698 = vmatprep.mubr.msk.bf16.mxu1 %vm4051_vm1, %v4050_v15 }
0x1ed8   :  { %3708 = vmatprep.subr.bf16.mxu1 %v4050_v15 }
0x1f99   :  { %v2296_v13 = vpop.f32.mrb[80].mxu1 }
0x1f9a   :  { %v2302_v49 = vpack.c.bf16 %v2296_v13, %v2296_v13  ;;  %v3664_v14 = vpop.f32.mrb[81].mxu1 }
0x1f9b   :  { %v2299_v18 = vpop.f32.mrb[82].mxu1 }
0x1f9c   :  { %v3665_v16 = vpop.f32.mrb[83].mxu1  ;;  %3669 = vmatmul.mubr.msk.bf16.vlgmr.msra.gmra.mrb[68].mxu0 %vm245_vm6, %v2302_v49 }
0x1f9d   :  { %3680 = vmatprep.mubr.msk.bf16.mxu0 %vm4051_vm1, %v4050_v15 }
0x1fa1   :  { %v2395_v43 = vpop.f32.mrb[84].mxu1 }
0x1fa2   :  { %v2401_v19 = vmul.f32 0.35355338, %v2395_v43  ;;  %v3676_v46 = vpop.f32.mrb[85].mxu1 }
0x1fa3   :  { %v2398_v21 = vpop.f32.mrb[86].mxu1 }
0x1fa4   :  { %v3677_v22 = vpop.f32.mrb[87].mxu1  ;;  %v2408_v58 = vsel %vm4721_vm3, -1e+09, %v2401_v19 }
0x1fa5   :  { %v2409_v23 = vsel %vm245_vm6, %v2408_v58, -inf }
0x1fa6   :  { %2410 = vmax.xlane.f32.xlu0 %v2409_v23 }
0x1fa9   :  { %v2516_v52 = vpop.f32.mrb[88].mxu1 }
0x1faa   :  { %v2522_v35 = vmul.f32 0.35355338, %v2516_v52  ;;  %v3688_v24 = vpop.f32.mrb[89].mxu1 }
0x1fab   :  { %v2519_v25 = vpop.f32.mrb[90].mxu1 }
0x1fac   :  { %v3689_v26 = vpop.f32.mrb[91].mxu1  ;;  %v2523_v27 = vsel %vm4721_vm3, -1e+09, %v2522_v35 }
0x1fad   :  { %v2524_v28 = vsel %vm245_vm6, %v2523_v27, -inf }
0x1fae   :  { %2525 = vmax.xlane.f32.xlu1 %v2524_v28 }
0x1fbf   :  { %2536 = vrot.lane.b32.xlu1 %v4673_v54, %s4053_s4 }
0x1fc3   :  { %2673 = vrot.lane.b32.xlu1 %v4673_v54, %s4056_s10 }
0x1fc7   :  { %2671 = vrot.lane.b32.xlu1 %v4679_v57, %s4056_s10 }
0x2033   :  { %v2411_v29 = vpop.xlane.xlu0 %2410 }
0x2034   :  { %v2412_v33 = vsub.f32 %v2408_v58, %v2411_v29 }
0x2036   :  { %v2413_v39 = vmul.f32 1.442695, %v2412_v33 }
0x2038   :  { %3875 = vpow2.f32 %v2413_v39 }
0x203b   :  { %v2526_v40 = vpop.xlane.xlu1 %2525 }
0x203c   :  { %v2527_v41 = vsub.f32 %v2523_v27, %v2526_v40 }
0x203e   :  { %v2528_v44 = vmul.f32 1.442695, %v2527_v41 }
0x203f   :  { %v2537_v6 = vpop.permute.xlu1 %2536 }
0x2040   :  { %3877 = vpow2.f32 %v2528_v44 }
0x2042   :  { %v3876_v45 = vpop.eup %3875 }
0x2043   :  { %v2415_v48 = vsel %vm245_vm6, %v3876_v45, 0.0  ;;  %v2674_v49 = vpop.permute.xlu1 %2673 }
0x2044   :  { %2416 = vadd.xlane.f32.xlu0 %v2415_v48  ;;  %v2679_v16 = vsel %vm245_vm6, %v2674_v49, 0 }
0x2047   :  { %v2672_v43 = vpop.permute.xlu1 %2671 }
0x204a   :  { %v3878_v51 = vpop.eup %3877 }
0x204b   :  { %v2530_v60 = vsel %vm245_vm6, %v3878_v51, 0.0 }
0x204c   :  { %2531 = vadd.xlane.f32.xlu0 %v2530_v60 }
0x2062   :  { %2422 = vrot.lane.b32.xlu0 %v4673_v54, %s4052_s6 }
0x206f   :  { %v2343_v56 = vpop.f32.mrb[68].mxu0 }
0x2070   :  { %v4742_v59 = vadd.f32 %v2343_v56, %v4687_v63  ;;  %v3670_v55 = vpop.f32.mrb[69].mxu0  ;;  %v2542_v63 = vsel %vm311_vm8, %v2537_v6, 0 }
0x2071   :  { %v2346_v62 = vpop.f32.mrb[70].mxu0 }
0x2072   :  { %v3671_v32 = vpop.f32.mrb[71].mxu0 }
0x20d1   :  { %v2417_v47 = vpop.xlane.xlu0 %2416 }
0x20d2   :  { %3879 = vrcp.f32 %v2417_v47 }
0x20d9   :  { %v2532_v1 = vpop.xlane.xlu0 %2531 }
0x20da   :  { %3881 = vrcp.f32 %v2532_v1  ;;  %v2987_v1 = vsub.s32 4, %v4233_v30 }
0x20dc   :  { %v3880_v2 = vpop.eup %3879 }
0x20dd   :  { %v2419_v12 = vmul.f32 %v3880_v2, %v3876_v45  ;;  %v2423_v61 = vpop.permute.xlu0 %2422 }
0x20de   :  { %v2428_v4 = vsel %vm311_vm8, %v2423_v61, 0 }
0x20df   :  { %3679 = vmatpush3.bf16.msra.mxu0 %v2428_v4  ;;  %v2420_v7 = vpack.c.bf16 %v2419_v12, %v2419_v12 }
0x20e0   :  { %3690 = vmatprep.subr.bf16.mxu0 %v4050_v15 }
0x20e2   :  { %3681 = vmatmul.mubr.msk.bf16.vlgmr.msra.gmra.mrb[72].mxu0 %vm245_vm6, %v2420_v7  ;;  %v2988_v7 = vrot.slane %v4564_v37, %v2987_v1 }
0x20e3   :  { %3691 = vmatpush3.bf16.msra.mxu0 %v2542_v63  ;;  %3692 = vmatprep.mubr.msk.bf16.mxu0 %vm4051_vm1, %v4050_v15 }
0x20e4   :  { %v3882_v8 = vpop.eup %3881  ;;  %3702 = vmatprep.subr.bf16.mxu0 %v4050_v15 }
0x20e5   :  { %v2534_v31 = vmul.f32 %v3882_v8, %v3878_v51 }
0x20e7   :  { %v2535_v3 = vpack.c.bf16 %v2534_v31, %v2534_v31 }
0x20ea   :  { %3693 = vmatmul.mubr.msk.bf16.vlgmr.msra.gmra.mrb[76].mxu0 %vm245_vm6, %v2535_v3 }
0x20eb   :  { %3703 = vmatpush3.bf16.msra.mxu0 %v4618_v34  ;;  %3704 = vmatprep.mubr.msk.bf16.mxu0 %vm4051_vm1, %v4050_v15 }
0x20ec   :  { %3714 = vmatprep.subr.bf16.mxu0 %v4050_v15 }
0x21b5   :  { %v2464_v9 = vpop.f32.mrb[72].mxu0 }
0x21b6   :  { %v2470_v38 = vpack.c.bf16 %v2464_v9, %v2464_v9  ;;  %v3682_v10 = vpop.f32.mrb[73].mxu0 }
0x21b7   :  { %v2467_v11 = vpop.f32.mrb[74].mxu0 }
0x21b8   :  { %v3683_v13 = vpop.f32.mrb[75].mxu0  ;;  %3705 = vmatmul.mubr.msk.bf16.vlgmr.msra.gmra.mrb[80].mxu0 %vm245_vm6, %v2470_v38 }
0x21b9   :  { %3716 = vmatprep.mubr.msk.bf16.mxu0 %vm4051_vm1, %v4050_v15 }
0x21bd   :  { %v2578_v14 = vpop.f32.mrb[76].mxu0 }
0x21be   :  { %v2584_v0 = vpack.c.bf16 %v2578_v14, %v2578_v14  ;;  %v3694_v18 = vpop.f32.mrb[77].mxu0 }
0x21bf   :  { %v2581_v34 = vpop.f32.mrb[78].mxu0 }
0x21c0   :  { %v3695_v50 = vpop.f32.mrb[79].mxu0  ;;  %3699 = vmatmul.mubr.msk.bf16.vlgmr.msra.gmra.mrb[92].mxu1 %vm245_vm6, %v2584_v0 }
0x21c1   :  { %3709 = vmatpush3.bf16.xpose.msra.mxu1 %v2679_v16  ;;  %3710 = vmatprep.mubr.msk.bf16.mxu1 %vm4051_vm1, %v4050_v15 }
0x21c2   :  { %3720 = vmatprep.subr.bf16.mxu1 %v4050_v15 }
0x21c8   :  { %3711 = vmatmul.mubr.msk.bf16.vlgmr.msra.gmra.mrb[96].mxu1 %vm245_vm6, %v2672_v43 }
0x21c9   :  { %3721 = vmatpush3.bf16.msra.mxu1 %v4661_v36  ;;  %3722 = vmatprep.mubr.msk.bf16.mxu1 %vm4051_vm1, %v4050_v15 }
0x21ca   :  { %3732 = vmatprep.subr.bf16.mxu1 %v4050_v15 }
0x228b   :  { %v2665_v19 = vpop.f32.mrb[80].mxu0 }
0x228c   :  { %v3706_v46 = vpop.f32.mrb[81].mxu0 }
0x228d   :  { %v2668_v21 = vpop.f32.mrb[82].mxu0 }
0x228e   :  { %v3707_v22 = vpop.f32.mrb[83].mxu0 }
0x2293   :  { %v2622_v58 = vpop.f32.mrb[92].mxu1 }
0x2294   :  { %v4769_v23 = vadd.f32 %v2665_v19, %v2622_v58  ;;  %v3700_v52 = vpop.f32.mrb[93].mxu1 }
0x2295   :  { %v2625_v35 = vpop.f32.mrb[94].mxu1 }
0x2296   :  { %v3701_v24 = vpop.f32.mrb[95].mxu1 }
0x229b   :  { %v2715_v25 = vpop.f32.mrb[96].mxu1 }
0x229c   :  { %v2721_v26 = vmul.f32 0.35355338, %v2715_v25  ;;  %v3712_v27 = vpop.f32.mrb[97].mxu1 }
0x229d   :  { %v2718_v28 = vpop.f32.mrb[98].mxu1 }
0x229e   :  { %v3713_v36 = vpop.f32.mrb[99].mxu1  ;;  %v2722_v29 = vsel %vm4721_vm3, -1e+09, %v2721_v26 }
0x229f   :  { %v2723_v33 = vsel %vm245_vm6, %v2722_v29, -inf }
0x22a0   :  { %2724 = vmax.xlane.f32.xlu0 %v2723_v33 }
0x22b6   :  { %2735 = vrot.lane.b32.xlu0 %v4673_v54, %s4057_s21 }
0x22ba   :  { %2828 = vrot.lane.b32.xlu0 %v4679_v57, %s4059_s30 }
0x232d   :  { %v2725_v39 = vpop.xlane.xlu0 %2724 }
0x232e   :  { %v2726_v40 = vsub.f32 %v2722_v29, %v2725_v39 }
0x2330   :  { %v2727_v41 = vmul.f32 1.442695, %v2726_v40 }
0x2331   :  { %v2736_v44 = vpop.permute.xlu0 %2735 }
0x2332   :  { %3883 = vpow2.f32 %v2727_v41  ;;  %v2741_v45 = vsel %vm311_vm8, %v2736_v44, 0 }
0x2333   :  { %3715 = vmatpush3.bf16.msra.mxu0 %v2741_v45 }
0x2334   :  { %3726 = vmatprep.subr.bf16.mxu0 %v4050_v15 }
0x2335   :  { %v2829_v47 = vpop.permute.xlu0 %2828 }
0x233c   :  { %v3884_v48 = vpop.eup %3883 }
0x233d   :  { %v2729_v51 = vsel %vm245_vm6, %v3884_v48, 0.0 }
0x233e   :  { %2730 = vadd.xlane.f32.xlu1 %v2729_v51 }
0x234f   :  { %2830 = vrot.lane.b32.xlu1 %v4673_v54, %s4059_s30 }
0x23cb   :  { %v2731_v60 = vpop.xlane.xlu1 %2730 }
0x23cc   :  { %3885 = vrcp.f32 %v2731_v60 }
0x23cf   :  { %v2831_v55 = vpop.permute.xlu1 %2830 }
0x23d0   :  { %v2836_v32 = vsel %vm245_vm6, %v2831_v55, 0 }
0x23d6   :  { %v3886_v57 = vpop.eup %3885 }
0x23d7   :  { %v2733_v56 = vmul.f32 %v3886_v57, %v3884_v48 }
0x23d9   :  { %v2734_v62 = vpack.c.bf16 %v2733_v56, %v2733_v56 }
0x23db   :  { %3717 = vmatmul.mubr.msk.bf16.vlgmr.msra.gmra.mrb[84].mxu0 %vm245_vm6, %v2734_v62  ;;  %v3802_v62 = vld [vmem:[#allocation10 + $0x8] sm:$0xff]  }
0x23dc   :  { %3727 = vmatpush3.bf16.xpose.msra.mxu0 %v2836_v32  ;;  %3728 = vmatprep.mubr.msk.bf16.mxu0 %vm4051_vm1, %v4050_v15  ;;  %v3803_v32 = vld [vmem:[%s4903_s12] sm:$0xff]  }
0x23dd   :  { %3738 = vmatprep.subr.bf16.mxu0 %v4050_v15 }
0x23e3   :  { %3729 = vmatmul.mubr.msk.bf16.vlgmr.msra.gmra.mrb[88].mxu0 %vm245_vm6, %v2829_v47  ;;  %v3804_v47 = vld [vmem:[%s4903_s12 + $0x8] sm:$0xff]  }
0x23e4   :  { %3739 = vmatpush3.bf16.msra.mxu0 %v4709_v53  ;;  %3740 = vmatprep.mubr.msk.bf16.mxu0 %vm4051_vm1, %v4050_v15  ;;  %v2989_v53 = vadd.f32 %v2988_v7, %v4742_v59 }
0x23e5   :  { %3752 = vmatprep.subr.bf16.mxu0 %v4050_v15 }
0x23e6   :  { %v4804_v10 = vadd.f32 %v2989_v53, %v4498_v5 }
0x23e8   :  { %v2993_v13 = vsel %vm116_vm0, %v4804_v10, 0.0 }
0x24ae   :  { %v2777_v2 = vpop.f32.mrb[84].mxu0 }
0x24af   :  { %v2783_v12 = vpack.c.bf16 %v2777_v2, %v2777_v2  ;;  %v3718_v61 = vpop.f32.mrb[85].mxu0  ;;  %v3805_v2 = vld [vmem:[%s4903_s12 + $0x10] sm:$0xff]  }
0x24b0   :  { %v2780_v4 = vpop.f32.mrb[86].mxu0  ;;  %v3807_v61 = vld [vmem:[%s4903_s12 + $0x20] sm:$0xff]  }
0x24b1   :  { %v3719_v6 = vpop.f32.mrb[87].mxu0  ;;  %3723 = vmatmul.mubr.msk.bf16.vlgmr.msra.gmra.mrb[100].mxu1 %vm245_vm6, %v2783_v12  ;;  %v3806_v12 = vld [vmem:[%s4903_s12 + $0x18] sm:$0xff]   ;;  %v3808_v4 = vld [vmem:[%s4903_s12 + $0x28] sm:$0xff]  }
0x24b2   :  { %3734 = vmatprep.mubr.msk.bf16.mxu1 %vm4051_vm1, %v4050_v15 }
0x24b6   :  { %v2872_v63 = vpop.f32.mrb[88].mxu0 }
0x24b7   :  { %v2878_v8 = vmul.f32 0.35355338, %v2872_v63  ;;  %v3730_v31 = vpop.f32.mrb[89].mxu0 }
0x24b8   :  { %v2875_v3 = vpop.f32.mrb[90].mxu0 }
0x24b9   :  { %v3731_v9 = vpop.f32.mrb[91].mxu0  ;;  %v2879_v38 = vsel %vm4721_vm3, -1e+09, %v2878_v8 }
0x24ba   :  { %v2880_v11 = vsel %vm245_vm6, %v2879_v38, -inf }
0x24bb   :  { %2881 = vmax.xlane.f32.xlu1 %v2880_v11 }
0x24bf   :  { %2994 = vadd.xlane.f32.xlu1 %v2993_v13 }
0x2548   :  { %v2882_v49 = vpop.xlane.xlu1 %2881 }
0x2549   :  { %v2883_v59 = vsub.f32 %v2879_v38, %v2882_v49 }
0x254b   :  { %v2884_v14 = vmul.f32 1.442695, %v2883_v59 }
0x254c   :  { %v2995_v25 = vpop.xlane.xlu1 %2994 }
0x254d   :  { %3887 = vpow2.f32 %v2884_v14  ;;  %v2999_v26 = vmul.f32 0.03125, %v2995_v25 }
0x254f   :  { %v4822_v33 = vsub.f32 %v4804_v10, %v2999_v26 }
0x2551   :  { %v3003_v45 = vmul.f32 %v4822_v33, %v4822_v33 }
0x2553   :  { %v3005_v48 = vsel %vm116_vm0, %v3003_v45, 0.0 }
0x2557   :  { %v3888_v0 = vpop.eup %3887 }
0x2558   :  { %v2886_v18 = vsel %vm245_vm6, %v3888_v0, 0.0 }
0x2559   :  { %2887 = vadd.xlane.f32.xlu0 %v2886_v18 }
0x256f   :  { %2892 = vrot.lane.b32.xlu0 %v4673_v54, %s4058_s8 }
0x2584   :  { %v2821_v5 = vpop.f32.mrb[100].mxu1 }
0x2585   :  { %v2827_v17 = vadd.f32 %v2821_v5, %v4769_v23  ;;  %v3724_v34 = vpop.f32.mrb[101].mxu1  ;;  %v3034_v5 = vrot.slane %v4548_v20, %v2987_v1  ;;  %v3809_v1 = vld [vmem:[%s4903_s12 + $0x30] sm:$0xff]  }
0x2586   :  { %v2824_v16 = vpop.f32.mrb[102].mxu1 }
0x2587   :  { %v3725_v50 = vpop.f32.mrb[103].mxu1  ;;  %v3035_v16 = vmul.f32 %v3034_v5, %v4822_v33  ;;  %v3131_v33 = vsub.s32 6, %v4233_v30 }
0x25e6   :  { %v2888_v43 = vpop.xlane.xlu0 %2887 }
0x25e7   :  { %3889 = vrcp.f32 %v2888_v43 }
0x25ea   :  { %v2893_v19 = vpop.permute.xlu0 %2892 }
0x25eb   :  { %v2898_v46 = vsel %vm311_vm8, %v2893_v19, 0 }
0x25ec   :  { %3733 = vmatpush3.bf16.msra.mxu1 %v2898_v46 }
0x25ed   :  { %3744 = vmatprep.subr.bf16.mxu1 %v4050_v15 }
0x25f1   :  { %v3890_v21 = vpop.eup %3889 }
0x25f2   :  { %v2890_v22 = vmul.f32 %v3890_v21, %v3888_v0 }
0x25f4   :  { %v2891_v58 = vpack.c.bf16 %v2890_v22, %v2890_v22 }
0x25f6   :  { %3735 = vmatmul.mubr.msk.bf16.vlgmr.msra.gmra.mrb[104].mxu1 %vm245_vm6, %v2891_v58 }
0x25f7   :  { %3748 = vmatprep.mubr.msk.bf16.mxu1 %vm4051_vm1, %v4050_v15 }
0x26c9   :  { %v2934_v54 = vpop.f32.mrb[104].mxu1 }
0x26ca   :  { %v2940_v23 = vpack.c.bf16 %v2934_v54, %v2934_v54  ;;  %v3736_v52 = vpop.f32.mrb[105].mxu1 }
0x26cb   :  { %v2937_v35 = vpop.f32.mrb[106].mxu1 }
0x26cc   :  { %v3737_v24 = vpop.f32.mrb[107].mxu1  ;;  %3741 = vmatmul.mubr.msk.bf16.vlgmr.msra.gmra.mrb[92].mxu0 %vm245_vm6, %v2940_v23  ;;  %v3810_v23 = vld [vmem:[%s4903_s12 + $0x38] sm:$0xff]   ;;  %s4063_s12 = smov [#allocation11]  }
0x26cd   :  { %3768 = vmatprep.mubr.msk.bf16.mxu0 %vm4051_vm1, %v4050_v15  ;;  %3753 = vmatpush3.bf16.msra.mxu0 %v3803_v32  ;;  %s3231_s7 = sshll.u32 %s4063_s12, 4  ;;  %s3232_s7 = int_to_ptr.vmem [resolvable:$true] %s3231_s7 }
0x26ce   :  { %3754 = vmatprep.subr.bf16.mxu0 %v4050_v15  ;;  %s4013_s26 = scalar_lea.vmem %s3232_s7, 256  ;;  %p4018_p13 = scmp.lt.s32.totalorder %s3232_s7, %s3232_s7 }
0x26cf   :  { %p4014_p12 = scmp.ne.s32.totalorder %s3232_s7, %s4013_s26  ;;  %p4019_p0 = scmp.lt.s32.totalorder %s4013_s26, %s4013_s26 }
0x26d1   :  { %3755 = vmatpush3.bf16.msra.mxu0 %v3804_v47  ;;  %p4020_p1 = por %p4019_p0, %p4018_p13 }
0x26d2   :  { %3756 = vmatprep.subr.bf16.mxu0 %v4050_v15 }
0x26d3   :  { %p4021_p2 = pnand %p4020_p1, %p4014_p12 }
0x26d5   :  { %3757 = vmatpush3.bf16.msra.mxu0 %v3805_v2 }
0x26d6   :  { %3758 = vmatprep.subr.bf16.mxu0 %v4050_v15 }
0x26d9   :  { %3759 = vmatpush3.bf16.msra.mxu0 %v3806_v12 }
0x26da   :  { %3760 = vmatprep.subr.bf16.mxu0 %v4050_v15 }
0x26dd   :  { %3761 = vmatpush3.bf16.msra.mxu0 %v3807_v61 }
0x26de   :  { %3762 = vmatprep.subr.bf16.mxu0 %v4050_v15 }
0x26e1   :  { %3763 = vmatpush3.bf16.msra.mxu0 %v3808_v4 }
0x26e2   :  { %3764 = vmatprep.subr.bf16.mxu0 %v4050_v15 }
0x26e5   :  { %3765 = vmatpush3.bf16.msra.mxu0 %v3809_v1 }
0x26e6   :  { %3766 = vmatprep.subr.bf16.mxu0 %v4050_v15 }
0x26e9   :  { %3767 = vmatpush3.bf16.msra.mxu0 %v3810_v23 }
0x279f   :  { %v2978_v27 = vpop.f32.mrb[92].mxu0 }
0x27a0   :  { %v2984_v28 = vadd.f32 %v2978_v27, %v2827_v17  ;;  %v3742_v36 = vpop.f32.mrb[93].mxu0  ;;  %v3041_v17 = vsub.s32 5, %v4233_v30 }
0x27a1   :  { %v2981_v29 = vpop.f32.mrb[94].mxu0 }
0x27a2   :  { %v2990_v39 = vadd.f32 %v2988_v7, %v2984_v28  ;;  %v3743_v40 = vpop.f32.mrb[95].mxu0  ;;  %v3042_v19 = vrot.slane %v4548_v20, %v3041_v17  ;;  %v3053_v20 = vrot.slane %v4564_v37, %v3041_v17 }
0x27a4   :  { %v4825_v41 = vadd.f32 %v2990_v39, %v4519_v42  ;;  %v3801_v42 = vld [vmem:[#allocation10] sm:$0xff]  }
0x27a5   :  { %3745 = vmatpush3.bf16.msra.mxu1 %v3801_v42 }
0x27a6   :  { %v2996_v44 = vsel %vm116_vm0, %v4825_v41, 0.0  ;;  %3746 = vmatprep.subr.bf16.mxu1 %v4050_v15  ;;  %v3902_v15 = vld [vmem:[#allocation5] sm:$0x7f] }
0x27a7   :  { %2997 = vadd.xlane.f32.xlu1 %v2996_v44  ;;  %v3132_v39 = vrot.slane %v3902_v15, %v3131_v33 }
0x27a9   :  { %3747 = vmatpush3.bf16.msra.mxu1 %v3802_v62 }
0x27ab   :  { %3006 = vadd.xlane.f32.xlu1 %v3005_v48 }
0x2834   :  { %v2998_v51 = vpop.xlane.xlu1 %2997 }
0x2835   :  { %v3000_v60 = vmul.f32 0.03125, %v2998_v51 }
0x2837   :  { %v3002_v57 = vsub.f32 %v4825_v41, %v3000_v60 }
0x2838   :  { %v3007_v6 = vpop.xlane.xlu1 %3006 }
0x2839   :  { %v3004_v56 = vmul.f32 %v3002_v57, %v3002_v57  ;;  %v3011_v7 = vmul.f32 0.032258064, %v3007_v6  ;;  %v3036_v50 = vmul.f32 %v3034_v5, %v3002_v57 }
0x283b   :  { %v3008_v55 = vsel %vm116_vm0, %v3004_v56, 0.0  ;;  %3891 = vrsqrt.f32 %v3011_v7  ;;  %vm3015_vm1 = vcmp.eq.f32.partialorder %v3011_v7, inf  ;;  %v3018_v9 = vand.u32 2147483648, %v3011_v7 }
0x283c   :  { %3009 = vadd.xlane.f32.xlu1 %v3008_v55  ;;  %vm3017_vm4 = vcmp.eq.f32.partialorder %v3011_v7, 0.0 }
0x2845   :  { %v3892_v53 = vpop.eup %3891 }
0x2846   :  { %v3014_v31 = vmul.f32 %v3892_v53, %v3011_v7 }
0x2848   :  { %v3016_v3 = vsel %vm3015_vm1, %v3011_v7, %v3014_v31 }
0x2849   :  { %v3019_v38 = vsel %vm3017_vm4, %v3018_v9, %v3016_v3 }
0x284a   :  { %v3027_v11 = vadd.f32 1e-06, %v3019_v38 }
0x28c9   :  { %v3010_v63 = vpop.xlane.xlu1 %3009 }
0x28ca   :  { %v3012_v8 = vmul.f32 0.032258064, %v3010_v63 }
0x28cc   :  { %3893 = vrsqrt.f32 %v3012_v8  ;;  %vm3022_vm5 = vcmp.eq.f32.partialorder %v3012_v8, inf  ;;  %v3025_v59 = vand.u32 2147483648, %v3012_v8  ;;  %vm3024_vm6 = vcmp.eq.f32.partialorder %v3012_v8, 0.0 }
0x28cd   :  { %3895 = vrcp.f32 %v3027_v11 }
0x28d6   :  { %v3894_v13 = vpop.eup %3893 }
0x28d7   :  { %v3021_v49 = vmul.f32 %v3894_v13, %v3012_v8  ;;  %v3896_v34 = vpop.eup %3895 }
0x28d8   :  { %v3037_v43 = vmul.f32 %v3896_v34, %v3035_v16 }
0x28d9   :  { %v3023_v14 = vsel %vm3022_vm5, %v3012_v8, %v3021_v49 }
0x28da   :  { %v3026_v0 = vsel %vm3024_vm6, %v3025_v59, %v3023_v14  ;;  %v3043_v22 = vadd.f32 %v3042_v19, %v3037_v43 }
0x28db   :  { %v3028_v18 = vadd.f32 1e-06, %v3026_v0 }
0x28dd   :  { %3897 = vrcp.f32 %v3028_v18 }
0x28e7   :  { %v3898_v46 = vpop.eup %3897 }
0x28e8   :  { %v3038_v21 = vmul.f32 %v3898_v46, %v3036_v50 }
0x28ea   :  { %v3044_v58 = vadd.f32 %v3042_v19, %v3038_v21 }
0x28ec   :  { %v3045_v54 = vpack.c.bf16 %v3044_v58, %v3043_v22 }
0x28ee   :  { %3749 = vmatmul.mubr.msk.bf16.vlgmr.msra.gmra.mrb[108].mxu1 %vm116_vm0, %v3045_v54 }
0x29c1   :  { %v3103_v52 = vpop.f32.mrb[108].mxu1 }
0x29c2   :  { %v3104_v35 = vadd.f32 %v3103_v52, %v3053_v20  ;;  %v3750_v24 = vpop.f32.mrb[109].mxu1 }
0x29c3   :  { %v3106_v25 = vpop.f32.mrb[110].mxu1 }
0x29c4   :  { %v3107_v26 = vadd.f32 %v3106_v25, %v3053_v20  ;;  %v3751_v27 = vpop.f32.mrb[111].mxu1  ;;  %v3110_v28 = vmax.f32 %v3104_v35, 0.0 }
0x29c6   :  { %v3111_v36 = vmax.f32 %v3107_v26, 0.0 }
0x29c8   :  { %v3112_v29 = vpack.c.bf16 %v3111_v36, %v3110_v28 }
0x29ca   :  { %3769 = vmatmul.mubr.bf16.vlgmr.msra.gmra.mrb[96].mxu0 %v3112_v29 }
0x2a9d   :  { %v3215_v40 = vpop.f32.mrb[96].mxu0 }
0x2a9e   :  { %v3216_v44 = vadd.f32 %v3215_v40, %v3132_v39  ;;  %v3770_v45 = vpop.f32.mrb[97].mxu0 }
0x2a9f   :  { %v3218_v37 = vpop.f32.mrb[98].mxu0 }
0x2aa0   :  { %v3222_v48 = vadd.f32 %v3216_v44, %v4804_v10  ;;  %v3219_v51 = vadd.f32 %v3218_v37, %v3132_v39  ;;  %v3771_v60 = vpop.f32.mrb[99].mxu0 }
0x2aa2   :  { %3224 = vst.msk [vmem:[#allocation11] sm:$0xff] %vm116_vm0, %v3222_v48  ;;  %v3223_v57 = vadd.f32 %v3219_v51, %v4825_v41 }
0x2aa4   :  { %3225 = vst.msk [vmem:[#allocation11 + $0x8] sm:$0xff] %vm116_vm0, %v3223_v57 }
0x2aa5   :  { %4024 = shalt.err (!%p4021_p2)
}
0x2aa6   :  { %s4025_s25 = scalar_lea.hbm %s4904_s13, 256 }
0x2aa7   :  { %p4026_p3 = scmp.ne.s32.totalorder %s4904_s13, %s4025_s25  ;;  %p4029_p4 = scmp.lt.u32.totalorder %s4025_s25, %s4904_s13 }
0x2aa9   :  { %p4031_p5 = pnand %p4029_p4, %p4026_p3 }
0x2aab   :  { %4034 = shalt.err (!%p4031_p5)
}
0x2aac   :  { %s4064_s1 = smov 128   ;;  %s4065_s9 = smov 8  }
0x2aad   :  { %3237 = dma.vmem_to_hbm [thread:$0]  %s3232_s7, 256, %s4904_s13, [#allocation4], %s4064_s1, %s4064_s1, %s4065_s9  }
0x2aae   :  { %4041 = dma.done.wait [#allocation4], 256  }
0x2aaf   :  { %4042 = vsyncadd [#allocation4], 4294967040 }
0x2ab0   :  { %3241 = vsyncpa [#allocation3], 1 }
0x2ab1   :  { %3242 = vsyncpa [#allocation6], 1 }
0x2ab2   :  { %3243 = vsyncpa [#allocation9], 1 }
0x2ab3   :  { %3244 = vsyncpa [#allocation4], 1 }

</bundles_post_ra>
